<compile_context>
chip_gen: v5e
topology: v5e:2x2
jax: 0.10.0
libtpu: 0.0.40
codegen_flags: <defaults>
</compile_context>

<pallas_src>
import math
import functools

import jax
import jax.numpy as jnp
from jax.experimental import pallas as pl
from jax.experimental.pallas import tpu as pltpu

NUM_HEADS = 8
_VMEM_LIMIT_BYTES = 64 * 1024 * 1024


def _round_up(x, m):
    return (x + m - 1) // m * m


# ---------------------------------------------------------------------------
# Kernel 1: the whole decoder stack in a single pallas_call.
#   grid = (batch_tiles ["parallel"], num_layers ["arbitrary"])
#   The activation is resident in the output VMEM block across the layer axis.
# ---------------------------------------------------------------------------

def _decoder_stack_kernel(
    tgt_hbm,      # (B*S, D)   f32   raw HBM ref (pl.ANY), read once per batch tile
    mem_ref,      # (bt*S, D)  bf16  encoder memory tile for this batch tile
    wq_s_ref, bq_s_ref, wkv_s_ref, bkv_s_ref, wo_s_ref, bo_s_ref,   # self-attn
    wq_c_ref, bq_c_ref, wkv_c_ref, bkv_c_ref, wo_c_ref, bo_c_ref,   # cross-attn
    w1_ref, b1_ref, w2_ref, b2_ref,                                 # feed-forward
    lnw_ref, lnb_ref,                                               # (3, 1, D) each
    out_ref,      # (bt*S, D)  f32   resident activation / final output
    *, bt, seq, num_heads):

    btile = pl.program_id(0)
    layer = pl.program_id(1)
    rows = bt * seq

    # Load the embedded+PE target into the resident activation block once per
    # batch tile (tgt never occupies a pipelined VMEM input block).
    @pl.when(layer == 0)
    def _():
        pltpu.sync_copy(tgt_hbm.at[pl.ds(btile * rows, rows)], out_ref)

    x = out_ref[...]                        # (rows, D) f32, resident across layers
    D = x.shape[1]
    H = num_heads
    dh = D // H
    scale = 1.0 / math.sqrt(dh)

    def layer_norm(z, idx):                 # post-norm, eps=1e-5 (PyTorch default)
        mu = jnp.mean(z, axis=-1, keepdims=True)
        d = z - mu
        var = jnp.mean(d * d, axis=-1, keepdims=True)
        return d * jax.lax.rsqrt(var + 1e-5) * lnw_ref[idx] + lnb_ref[idx]

    def mha(q_in_b16, kv_in_b16, wq_ref, bq_ref, wkv_ref, bkv_ref, wo_ref, bo_ref):
        # q_in_b16: (bt*Lq, D) bf16, kv_in_b16: (bt*Lk, D) bf16.
        Mq = q_in_b16.shape[0]
        Mk = kv_in_b16.shape[0]
        Lq = Mq // bt
        Lk = Mk // bt
        # Fused, lane-dense projections on the MXU (f32 accumulation).
        q = (jnp.dot(q_in_b16, wq_ref[...],
                     preferred_element_type=jnp.float32)
             + bq_ref[...]).astype(jnp.bfloat16)                       # (Mq, D)
        kv = (jnp.dot(kv_in_b16, wkv_ref[...],
                      preferred_element_type=jnp.float32)
              + bkv_ref[...]).astype(jnp.bfloat16)                     # (Mk, 2D)

        head_outs = []
        for h in range(H):
            qh = q[:, h * dh:(h + 1) * dh].reshape(bt, Lq, dh)
            kh = kv[:, h * dh:(h + 1) * dh].reshape(bt, Lk, dh)
            vh = kv[:, D + h * dh:D + (h + 1) * dh].reshape(bt, Lk, dh)
            s = jnp.einsum("bqd,bkd->bqk", qh, kh,
                           preferred_element_type=jnp.float32) * scale
            s = s - jnp.max(s, axis=-1, keepdims=True)
            p = jnp.exp(s)
            p = p * pl.reciprocal(jnp.sum(p, axis=-1, keepdims=True), approx=True)
            oh = jnp.einsum("bqk,bkd->bqd", p.astype(jnp.bfloat16), vh,
                            preferred_element_type=jnp.float32)
            head_outs.append(oh.reshape(Mq, dh))
        # Contiguous head merge + single lane-dense out-projection.
        o = jnp.concatenate(head_outs, axis=-1).astype(jnp.bfloat16)   # (Mq, D)
        return jnp.dot(o, wo_ref[...],
                       preferred_element_type=jnp.float32) + bo_ref[...]

    mem_b = mem_ref[...]                    # (rows, D) bf16

    # --- self-attention + residual + LayerNorm1 ---
    xb = x.astype(jnp.bfloat16)
    sa = mha(xb, xb, wq_s_ref, bq_s_ref, wkv_s_ref, bkv_s_ref, wo_s_ref, bo_s_ref)
    x = layer_norm(x + sa, 0)

    # --- cross-attention over encoded speech + residual + LayerNorm2 ---
    xb = x.astype(jnp.bfloat16)
    ca = mha(xb, mem_b, wq_c_ref, bq_c_ref, wkv_c_ref, bkv_c_ref, wo_c_ref, bo_c_ref)
    x = layer_norm(x + ca, 1)

    # --- feed-forward (relu) + residual + LayerNorm3 ---
    xb = x.astype(jnp.bfloat16)
    h1 = jnp.dot(xb, w1_ref[...], preferred_element_type=jnp.float32) + b1_ref[...]
    h1 = jnp.maximum(h1, 0.0)
    ff = jnp.dot(h1.astype(jnp.bfloat16), w2_ref[...],
                 preferred_element_type=jnp.float32) + b2_ref[...]
    x = layer_norm(x + ff, 2)

    out_ref[...] = x


def decoder_stack(tgt2d, mem2d, prep, batch, seq, batch_tile=1):
    """tgt2d: (B*S, D) f32, mem2d: (B*S, D) bf16 -> (B*S, D) f32."""
    M, D = tgt2d.shape
    L = prep["num_layers"]
    H = prep["num_heads"]
    F = prep["ff_dim"]

    bt = batch_tile
    if batch % bt != 0 or (bt * seq) % 8 != 0:
        bt = batch                     # fall back to one tile covering all rows (always legal)
    rows = bt * seq
    grid = (batch // bt, L)

    kernel = functools.partial(_decoder_stack_kernel, bt=bt, seq=seq, num_heads=H)

    xmap = lambda b, l: (b, 0)           # activation / memory tiles: per batch tile
    wmap = lambda b, l: (l, 0, 0)        # per-layer weights
    lmap = lambda b, l: (l, 0, 0, 0)     # per-layer layer-norm params

    return pl.pallas_call(
        kernel,
        out_shape=jax.ShapeDtypeStruct((M, D), jnp.float32),
        grid=grid,
        in_specs=[
            pl.BlockSpec(memory_space=pl.ANY),        # tgt stays in HBM
            pl.BlockSpec((rows, D), xmap),            # mem
            pl.BlockSpec((None, D, D), wmap),         # wq_s
            pl.BlockSpec((None, 1, D), wmap),         # bq_s
            pl.BlockSpec((None, D, 2 * D), wmap),     # wkv_s
            pl.BlockSpec((None, 1, 2 * D), wmap),     # bkv_s
            pl.BlockSpec((None, D, D), wmap),         # wo_s
            pl.BlockSpec((None, 1, D), wmap),         # bo_s
            pl.BlockSpec((None, D, D), wmap),         # wq_c
            pl.BlockSpec((None, 1, D), wmap),         # bq_c
            pl.BlockSpec((None, D, 2 * D), wmap),     # wkv_c
            pl.BlockSpec((None, 1, 2 * D), wmap),     # bkv_c
            pl.BlockSpec((None, D, D), wmap),         # wo_c
            pl.BlockSpec((None, 1, D), wmap),         # bo_c
            pl.BlockSpec((None, D, F), wmap),         # w1
            pl.BlockSpec((None, 1, F), wmap),         # b1
            pl.BlockSpec((None, F, D), wmap),         # w2
            pl.BlockSpec((None, 1, D), wmap),         # b2
            pl.BlockSpec((None, 3, 1, D), lmap),      # lnw
            pl.BlockSpec((None, 3, 1, D), lmap),      # lnb
        ],
        out_specs=pl.BlockSpec((rows, D), xmap),
        compiler_params=pltpu.CompilerParams(
            dimension_semantics=("parallel", "arbitrary"),
            vmem_limit_bytes=_VMEM_LIMIT_BYTES),
    )(tgt2d, mem2d,
      prep["wq_s"], prep["bq_s"], prep["wkv_s"], prep["bkv_s"],
      prep["wo_s"], prep["bo_s"],
      prep["wq_c"], prep["bq_c"], prep["wkv_c"], prep["bkv_c"],
      prep["wo_c"], prep["bo_c"],
      prep["w1"], prep["b1"], prep["w2"], prep["b2"],
      prep["lnw"], prep["lnb"])


# ---------------------------------------------------------------------------
# Kernel 2: tiled vocabulary projection (batch-first rows, lane-dense vocab).
# ---------------------------------------------------------------------------

def _logits_kernel(x_ref, w_ref, b_ref, o_ref):
    o_ref[...] = (jnp.dot(x_ref[...], w_ref[...],
                          preferred_element_type=jnp.float32) + b_ref[...])


def project_logits(x2d, w, b, *, tile_m=256, tile_v=512):
    """x2d: (M, D) bf16, w: (D, Vp) bf16, b: (1, Vp) f32 -> (M, Vp) f32."""
    M, D = x2d.shape
    Vp = w.shape[1]
    tv = min(tile_v, Vp)
    assert Vp % tv == 0, "vocab is padded to a multiple of the vocab tile at prep time"
    tm = min(tile_m, _round_up(M, 8))
    Mp = _round_up(M, tm)
    if Mp != M:
        x2d = jnp.pad(x2d, ((0, Mp - M), (0, 0)))
    out = pl.pallas_call(
        _logits_kernel,
        out_shape=jax.ShapeDtypeStruct((Mp, Vp), jnp.float32),
        grid=(Mp // tm, Vp // tv),
        in_specs=[
            pl.BlockSpec((tm, D), lambda i, j: (i, 0)),
            pl.BlockSpec((D, tv), lambda i, j: (0, j)),
            pl.BlockSpec((1, tv), lambda i, j: (0, j)),
        ],
        out_specs=pl.BlockSpec((tm, tv), lambda i, j: (i, j)),
        compiler_params=pltpu.CompilerParams(
            dimension_semantics=("parallel", "parallel"),
            vmem_limit_bytes=_VMEM_LIMIT_BYTES),
    )(x2d, w, b)
    return out[:M] if Mp != M else out


# ---------------------------------------------------------------------------
# Model glue (plain JAX, cold path): embedding lookup, positional encoding.
# ---------------------------------------------------------------------------

def make_positional_encoding(max_len, model_dim):
    position = jnp.arange(max_len, dtype=jnp.float32)[:, None]
    div_term = jnp.exp(
        jnp.arange(0, model_dim, 2, dtype=jnp.float32)
        * (-math.log(10000.0) / model_dim))
    pe_sin = jnp.sin(position * div_term)
    pe_cos = jnp.cos(position * div_term)
    # even cols = sin, odd cols = cos (matches PyTorch interleave)
    return jnp.stack([pe_sin, pe_cos], axis=-1).reshape(max_len, model_dim)


def text_decoder_first_pass(prep, encoded_speech, target_subwords):
    """encoded_speech: (S_mem, B, D) f32; target_subwords: (B, S_tgt) int -> (B, S_mem, V)."""
    V = prep["vocab_size"]
    D = prep["model_dim"]

    ts = target_subwords
    if ts.ndim == 3:                               # PyTorch path: mean over last dim, round
        ts = jnp.round(ts.astype(jnp.float32).mean(axis=-1))
    ids = jnp.clip(ts.astype(jnp.int32), 0, V - 1)
    tgt = jnp.take(prep["embedding"], ids, axis=0)          # (B, S_t, D) batch-first
    B, S_t, _ = tgt.shape
    tgt = tgt + prep["pe"][:S_t][None, :, :]                # positional encoding

    S_m = encoded_speech.shape[0]
    if S_t > S_m:
        tgt = tgt[:, :S_m]
    elif S_t < S_m:
        pad = jnp.zeros((B, S_m - S_t, D), dtype=tgt.dtype)
        tgt = jnp.concatenate([tgt, pad], axis=1)

    # Batch-first layout everywhere (math identical to PyTorch's seq-first);
    # memory cast to bf16 once at the MXU boundary.
    mem2d = encoded_speech.transpose(1, 0, 2).reshape(B * S_m, D).astype(jnp.bfloat16)
    x0 = tgt.reshape(B * S_m, D).astype(jnp.float32)

    x = decoder_stack(x0, mem2d, prep, B, S_m)               # (B*S_m, D) f32

    logits = project_logits(x.astype(jnp.bfloat16), prep["out_w"], prep["out_b"])
    # rows are already (batch, seq) ordered -> logits come out batch-first, no transpose
    return logits.reshape(B, S_m, prep["vocab_padded"])[:, :, :V]


# ---------------------------------------------------------------------------
# Parameter prep: transpose / fuse / stack / bf16-cast all weights ONCE.
# ---------------------------------------------------------------------------

def prepare_params(params, num_heads):
    V, D = params["embedding"].shape
    H = num_heads
    F = params["layers"][0]["lin1_w"].shape[0]
    L = len(params["layers"])
    Vp = max(_round_up(V, 512), 512)               # lane-dense, tile-divisible vocab

    def q_w(p):
        return p["in_proj_weight"][:D].T                                   # (D, D)

    def q_b(p):
        return p["in_proj_bias"][:D].reshape(1, D)

    def kv_w(p):                                                           # (D, 2D)
        return jnp.concatenate(
            [p["in_proj_weight"][D:2 * D].T, p["in_proj_weight"][2 * D:].T], axis=1)

    def kv_b(p):
        return p["in_proj_bias"][D:].reshape(1, 2 * D)

    def o_w(p):
        return p["out_proj_weight"].T                                      # (D, D)

    def o_b(p):
        return p["out_proj_bias"].reshape(1, D)

    def stack(fn, dtype):
        return jnp.stack([fn(lp) for lp in params["layers"]]).astype(dtype)

    return {
        "model_dim": D, "vocab_size": V, "vocab_padded": Vp,
        "ff_dim": F, "num_layers": L, "num_heads": H,
        "embedding": params["embedding"].astype(jnp.float32),
        "pe": params["pe"].astype(jnp.float32),
        # self-attention (fused lane-dense projections: Q (D,D), KV (D,2D))
        "wq_s": stack(lambda p: q_w(p["self_attn"]), jnp.bfloat16),
        "bq_s": stack(lambda p: q_b(p["self_attn"]), jnp.float32),
        "wkv_s": stack(lambda p: kv_w(p["self_attn"]), jnp.bfloat16),
        "bkv_s": stack(lambda p: kv_b(p["self_attn"]), jnp.float32),
        "wo_s": stack(lambda p: o_w(p["self_attn"]), jnp.bfloat16),
        "bo_s": stack(lambda p: o_b(p["self_attn"]), jnp.float32),
        # cross-attention
        "wq_c": stack(lambda p: q_w(p["cross_attn"]), jnp.bfloat16),
        "bq_c": stack(lambda p: q_b(p["cross_attn"]), jnp.float32),
        "wkv_c": stack(lambda p: kv_w(p["cross_attn"]), jnp.bfloat16),
        "bkv_c": stack(lambda p: kv_b(p["cross_attn"]), jnp.float32),
        "wo_c": stack(lambda p: o_w(p["cross_attn"]), jnp.bfloat16),
        "bo_c": stack(lambda p: o_b(p["cross_attn"]), jnp.float32),
        # feed-forward
        "w1": stack(lambda p: p["lin1_w"].T, jnp.bfloat16),                # (D, F)
        "b1": stack(lambda p: p["lin1_b"].reshape(1, F), jnp.float32),
        "w2": stack(lambda p: p["lin2_w"].T, jnp.bfloat16),                # (F, D)
        "b2": stack(lambda p: p["lin2_b"].reshape(1, D), jnp.float32),
        # layer norms (post-norm): [norm1, norm2, norm3]
        "lnw": stack(lambda p: jnp.stack([p["norm1_w"], p["norm2_w"], p["norm3_w"]])[:, None, :],
                     jnp.float32),
        "lnb": stack(lambda p: jnp.stack([p["norm1_b"], p["norm2_b"], p["norm3_b"]])[:, None, :],
                     jnp.float32),
        # output projection, padded to Vp lanes (multiple of the 512-wide vocab tile)
        "out_w": jnp.pad(params["out_w"].T, ((0, 0), (0, Vp - V))).astype(jnp.bfloat16),
        "out_b": jnp.pad(params["out_b"], (0, Vp - V)).reshape(1, Vp).astype(jnp.float32),
    }


# ---------------------------------------------------------------------------
# Deterministic synthetic parameters (PyTorch-shaped, no checkpoint)
# ---------------------------------------------------------------------------

def init_params(key, model_dim, vocab_size, num_layers, ff_dim=1024, max_len=128):
    D, V, F = model_dim, vocab_size, ff_dim

    def nrm(k, shape, scale=0.02):
        return (scale * jax.random.normal(k, shape)).astype(jnp.float32)

    keys = jax.random.split(key, 3 + num_layers)
    params = {
        "embedding": nrm(keys[0], (V, D)),
        "pe": make_positional_encoding(max_len, D),
        "out_w": nrm(keys[1], (V, D)),
        "out_b": nrm(keys[2], (V,)),
        "layers": [],
    }
    for li in range(num_layers):
        lk = jax.random.split(keys[3 + li], 12)
        params["layers"].append({
            "self_attn": {
                "in_proj_weight": nrm(lk[0], (3 * D, D)),
                "in_proj_bias": nrm(lk[1], (3 * D,)),
                "out_proj_weight": nrm(lk[2], (D, D)),
                "out_proj_bias": nrm(lk[3], (D,)),
            },
            "cross_attn": {
                "in_proj_weight": nrm(lk[4], (3 * D, D)),
                "in_proj_bias": nrm(lk[5], (3 * D,)),
                "out_proj_weight": nrm(lk[6], (D, D)),
                "out_proj_bias": nrm(lk[7], (D,)),
            },
            "lin1_w": nrm(lk[8], (F, D)),
            "lin1_b": nrm(lk[9], (F,)),
            "lin2_w": nrm(lk[10], (D, F)),
            "lin2_b": nrm(lk[11], (D,)),
            "norm1_w": jnp.ones((D,), jnp.float32),
            "norm1_b": jnp.zeros((D,), jnp.float32),
            "norm2_w": jnp.ones((D,), jnp.float32),
            "norm2_b": jnp.zeros((D,), jnp.float32),
            "norm3_w": jnp.ones((D,), jnp.float32),
            "norm3_b": jnp.zeros((D,), jnp.float32),
        })
    return params


# ---------------------------------------------------------------------------
# Main
# ---------------------------------------------------------------------------

if __name__ == "__main__":
    MODEL_DIM = 32      # divisible by nhead=8 -> head_dim=4
    VOCAB_SIZE = 50
    NUM_LAYERS = 2      # small stack for quick compile (module default is 6)
    BATCH = 2
    S_MEM = 8
    S_TGT = 8

    root = jax.random.PRNGKey(0)
    k_par, k_mem, k_ids = jax.random.split(root, 3)

    raw_params = init_params(k_par, MODEL_DIM, VOCAB_SIZE, NUM_LAYERS)
    prep = prepare_params(raw_params, NUM_HEADS)

    encoded_speech = jax.random.normal(
        k_mem, (S_MEM, BATCH, MODEL_DIM), dtype=jnp.float32)
    target_subwords = jax.random.randint(
        k_ids, (BATCH, S_TGT), 0, VOCAB_SIZE, dtype=jnp.int32)

    fwd = jax.jit(lambda es, ts: text_decoder_first_pass(prep, es, ts))
    logits = fwd(encoded_speech, target_subwords)
    logits = jax.block_until_ready(logits)

    assert logits.shape == (BATCH, S_MEM, VOCAB_SIZE), logits.shape
    assert bool(jnp.all(jnp.isfinite(logits)))
    print("KERNEL_OK")
</pallas_src>

<mosaic_0001>
module attributes {stable_mosaic.version = 11 : i64} {
  func.func @_logits_kernel(%arg0: i32, %arg1: i32, %arg2: memref<16x32xbf16, #tpu.memory_space<vmem>>, %arg3: memref<32x512xbf16, #tpu.memory_space<vmem>>, %arg4: memref<1x512xf32, #tpu.memory_space<vmem>>, %arg5: memref<16x512xf32, #tpu.memory_space<vmem>>) attributes {dimension_semantics = [#tpu.dimension_semantics<parallel>, #tpu.dimension_semantics<parallel>], iteration_bounds = array<i64: 1, 1>, scalar_prefetch = 0 : i64, scratch_operands = 0 : i64, tpu.core_type = #tpu.core_type<tc>, window_params = [{transform_indices = @transform_0, window_bounds = array<i64: 16, 32>}, {transform_indices = @transform_1, window_bounds = array<i64: 32, 512>}, {transform_indices = @transform_2, window_bounds = array<i64: 1, 512>}, {transform_indices = @transform_3, window_bounds = array<i64: 16, 512>}]} {
    %c0 = arith.constant 0 : index
    %c0_0 = arith.constant 0 : index
    %0 = vector.load %arg2[%c0, %c0_0] : memref<16x32xbf16, #tpu.memory_space<vmem>>, vector<16x32xbf16>
    %c0_1 = arith.constant 0 : index
    %c0_2 = arith.constant 0 : index
    %1 = vector.load %arg3[%c0_1, %c0_2] : memref<32x512xbf16, #tpu.memory_space<vmem>>, vector<32x512xbf16>
    %cst = arith.constant dense<0.000000e+00> : vector<16x512xf32>
    %2 = tpu.matmul %0, %1, %cst {dimension_numbers = #tpu.dot_dimension_numbers<[1], [0], [0], [1], [0, 0, 1, 1], [], []>} : vector<16x32xbf16>, vector<32x512xbf16>, vector<16x512xf32> -> vector<16x512xf32>
    %c0_3 = arith.constant 0 : index
    %c0_4 = arith.constant 0 : index
    %3 = vector.load %arg4[%c0_3, %c0_4] : memref<1x512xf32, #tpu.memory_space<vmem>>, vector<1x512xf32>
    %4 = vector.broadcast %3 : vector<1x512xf32> to vector<16x512xf32>
    %5 = arith.addf %2, %4 : vector<16x512xf32>
    %c0_5 = arith.constant 0 : index
    %c0_6 = arith.constant 0 : index
    %6 = vector.load %arg5[%c0_5, %c0_6] : memref<16x512xf32, #tpu.memory_space<vmem>>, vector<16x512xf32>
    tpu.vector_store %arg5[%c0_5, %c0_6], %5 {strides = array<i32>} : memref<16x512xf32, #tpu.memory_space<vmem>>, vector<16x512xf32>,
    return
  }
  func.func @transform_0(%arg0: i32, %arg1: i32) -> (i32, i32) {
    %c0_i32 = arith.constant 0 : i32
    %c0_i32_0 = arith.constant 0 : i32
    return %arg0, %c0_i32 : i32, i32
  }
  func.func @transform_1(%arg0: i32, %arg1: i32) -> (i32, i32) {
    %c0_i32 = arith.constant 0 : i32
    %c0_i32_0 = arith.constant 0 : i32
    return %c0_i32, %arg1 : i32, i32
  }
  func.func @transform_2(%arg0: i32, %arg1: i32) -> (i32, i32) {
    %c0_i32 = arith.constant 0 : i32
    %c0_i32_0 = arith.constant 0 : i32
    return %c0_i32, %arg1 : i32, i32
  }
  func.func @transform_3(%arg0: i32, %arg1: i32) -> (i32, i32) {
    %c0_i32 = arith.constant 0 : i32
    return %arg0, %arg1 : i32, i32
  }
}

module attributes {stable_mosaic.version = 11 : i64} {
  func.func @_decoder_stack_kernel(%arg0: i32, %arg1: i32, %arg2: memref<16x32xf32, #tpu.memory_space<any>>, %arg3: memref<8x32xbf16, #tpu.memory_space<vmem>>, %arg4: memref<1x32x32xbf16, #tpu.memory_space<vmem>>, %arg5: memref<1x1x32xf32, #tpu.memory_space<vmem>>, %arg6: memref<1x32x64xbf16, #tpu.memory_space<vmem>>, %arg7: memref<1x1x64xf32, #tpu.memory_space<vmem>>, %arg8: memref<1x32x32xbf16, #tpu.memory_space<vmem>>, %arg9: memref<1x1x32xf32, #tpu.memory_space<vmem>>, %arg10: memref<1x32x32xbf16, #tpu.memory_space<vmem>>, %arg11: memref<1x1x32xf32, #tpu.memory_space<vmem>>, %arg12: memref<1x32x64xbf16, #tpu.memory_space<vmem>>, %arg13: memref<1x1x64xf32, #tpu.memory_space<vmem>>, %arg14: memref<1x32x32xbf16, #tpu.memory_space<vmem>>, %arg15: memref<1x1x32xf32, #tpu.memory_space<vmem>>, %arg16: memref<1x32x1024xbf16, #tpu.memory_space<vmem>>, %arg17: memref<1x1x1024xf32, #tpu.memory_space<vmem>>, %arg18: memref<1x1024x32xbf16, #tpu.memory_space<vmem>>, %arg19: memref<1x1x32xf32, #tpu.memory_space<vmem>>, %arg20: memref<1x3x1x32xf32, #tpu.memory_space<vmem>>, %arg21: memref<1x3x1x32xf32, #tpu.memory_space<vmem>>, %arg22: memref<8x32xf32, #tpu.memory_space<vmem>>) attributes {dimension_semantics = [#tpu.dimension_semantics<parallel>, #tpu.dimension_semantics<arbitrary>], iteration_bounds = array<i64: 2, 2>, scalar_prefetch = 0 : i64, scratch_operands = 0 : i64, tpu.core_type = #tpu.core_type<tc>, window_params = [{}, {transform_indices = @transform_1, window_bounds = array<i64: 8, 32>}, {transform_indices = @transform_2, window_bounds = array<i64: 1, 32, 32>}, {transform_indices = @transform_3, window_bounds = array<i64: 1, 1, 32>}, {transform_indices = @transform_4, window_bounds = array<i64: 1, 32, 64>}, {transform_indices = @transform_5, window_bounds = array<i64: 1, 1, 64>}, {transform_indices = @transform_6, window_bounds = array<i64: 1, 32, 32>}, {transform_indices = @transform_7, window_bounds = array<i64: 1, 1, 32>}, {transform_indices = @transform_8, window_bounds = array<i64: 1, 32, 32>}, {transform_indices = @transform_9, window_bounds = array<i64: 1, 1, 32>}, {transform_indices = @transform_10, window_bounds = array<i64: 1, 32, 64>}, {transform_indices = @transform_11, window_bounds = array<i64: 1, 1, 64>}, {transform_indices = @transform_12, window_bounds = array<i64: 1, 32, 32>}, {transform_indices = @transform_13, window_bounds = array<i64: 1, 1, 32>}, {transform_indices = @transform_14, window_bounds = array<i64: 1, 32, 1024>}, {transform_indices = @transform_15, window_bounds = array<i64: 1, 1, 1024>}, {transform_indices = @transform_16, window_bounds = array<i64: 1, 1024, 32>}, {transform_indices = @transform_17, window_bounds = array<i64: 1, 1, 32>}, {transform_indices = @transform_18, window_bounds = array<i64: 1, 3, 1, 32>}, {transform_indices = @transform_19, window_bounds = array<i64: 1, 3, 1, 32>}, {transform_indices = @transform_20, window_bounds = array<i64: 8, 32>}]} {
    %c0_i32 = arith.constant 0 : i32
    %0 = arith.cmpi eq, %arg1, %c0_i32 : i32
    %1 = arith.extui %0 : i1 to i32
    %c0_i32_0 = arith.constant 0 : i32
    %2 = arith.cmpi ne, %1, %c0_i32_0 : i32
    scf.if %2 {
      %c8_i32 = arith.constant 8 : i32
      %503 = arith.muli %arg0, %c8_i32 : i32
      "tpu.region"() ({
        %504 = tpu.sem_alloc : memref<!tpu.dma_semaphore, #tpu.memory_space<semaphore_mem>>
        %c0_i32_179 = arith.constant 0 : i32
        %505 = tpu.memref_slice %arg2[%503, %c0_i32_179] : memref<16x32xf32, #tpu.memory_space<any>> -> memref<8x32xf32, #tpu.memory_space<any>>
        tpu.enqueue_dma source(%505 : memref<8x32xf32, #tpu.memory_space<any>>) target(%arg22 : memref<8x32xf32, #tpu.memory_space<vmem>>) target_semaphore(%504 : memref<!tpu.dma_semaphore, #tpu.memory_space<semaphore_mem>>)
        %c0_i32_180 = arith.constant 0 : i32
        %506 = tpu.memref_slice %arg2[%503, %c0_i32_180] : memref<16x32xf32, #tpu.memory_space<any>> -> memref<8x32xf32, #tpu.memory_space<any>>
        tpu.wait_dma2 semaphore(%504 : memref<!tpu.dma_semaphore, #tpu.memory_space<semaphore_mem>>) src(%506 : memref<8x32xf32, #tpu.memory_space<any>>) dst(%arg22 : memref<8x32xf32, #tpu.memory_space<vmem>>)
        tpu.yield
      }) : () -> ()
    } else {
    }
    %c0 = arith.constant 0 : index
    %c0_1 = arith.constant 0 : index
    %3 = vector.load %arg22[%c0, %c0_1] : memref<8x32xf32, #tpu.memory_space<vmem>>, vector<8x32xf32>
    %c0_2 = arith.constant 0 : index
    %c0_3 = arith.constant 0 : index
    %4 = vector.load %arg3[%c0_2, %c0_3] : memref<8x32xbf16, #tpu.memory_space<vmem>>, vector<8x32xbf16>
    %5 = arith.truncf %3 : vector<8x32xf32> to vector<8x32xbf16>
    %c0_4 = arith.constant 0 : index
    %c0_5 = arith.constant 0 : index
    %c0_6 = arith.constant 0 : index
    %6 = vector.load %arg4[%c0_4, %c0_5, %c0_6] : memref<1x32x32xbf16, #tpu.memory_space<vmem>>, vector<1x32x32xbf16>
    %7 = vector.shape_cast %6 : vector<1x32x32xbf16> to vector<32x32xbf16>
    %cst = arith.constant dense<0.000000e+00> : vector<8x32xf32>
    %8 = tpu.matmul %5, %7, %cst {dimension_numbers = #tpu.dot_dimension_numbers<[1], [0], [0], [1], [0, 0, 1, 1], [], []>} : vector<8x32xbf16>, vector<32x32xbf16>, vector<8x32xf32> -> vector<8x32xf32>
    %c0_7 = arith.constant 0 : index
    %c0_8 = arith.constant 0 : index
    %c0_9 = arith.constant 0 : index
    %9 = vector.load %arg5[%c0_7, %c0_8, %c0_9] : memref<1x1x32xf32, #tpu.memory_space<vmem>>, vector<1x1x32xf32>
    %10 = vector.shape_cast %9 : vector<1x1x32xf32> to vector<1x32xf32>
    %11 = vector.broadcast %10 : vector<1x32xf32> to vector<8x32xf32>
    %12 = arith.addf %8, %11 : vector<8x32xf32>
    %13 = arith.truncf %12 : vector<8x32xf32> to vector<8x32xbf16>
    %c0_10 = arith.constant 0 : index
    %c0_11 = arith.constant 0 : index
    %c0_12 = arith.constant 0 : index
    %14 = vector.load %arg6[%c0_10, %c0_11, %c0_12] : memref<1x32x64xbf16, #tpu.memory_space<vmem>>, vector<1x32x64xbf16>
    %15 = vector.shape_cast %14 : vector<1x32x64xbf16> to vector<32x64xbf16>
    %cst_13 = arith.constant dense<0.000000e+00> : vector<8x64xf32>
    %16 = tpu.matmul %5, %15, %cst_13 {dimension_numbers = #tpu.dot_dimension_numbers<[1], [0], [0], [1], [0, 0, 1, 1], [], []>} : vector<8x32xbf16>, vector<32x64xbf16>, vector<8x64xf32> -> vector<8x64xf32>
    %c0_14 = arith.constant 0 : index
    %c0_15 = arith.constant 0 : index
    %c0_16 = arith.constant 0 : index
    %17 = vector.load %arg7[%c0_14, %c0_15, %c0_16] : memref<1x1x64xf32, #tpu.memory_space<vmem>>, vector<1x1x64xf32>
    %18 = vector.shape_cast %17 : vector<1x1x64xf32> to vector<1x64xf32>
    %19 = vector.broadcast %18 : vector<1x64xf32> to vector<8x64xf32>
    %20 = arith.addf %16, %19 : vector<8x64xf32>
    %21 = arith.truncf %20 : vector<8x64xf32> to vector<8x64xbf16>
    %22 = vector.extract_strided_slice %13 {offsets = [0, 0], sizes = [8, 4], strides = [1, 1]} : vector<8x32xbf16> to vector<8x4xbf16>
    %23 = vector.shape_cast %22 : vector<8x4xbf16> to vector<1x8x4xbf16>
    %24 = vector.extract_strided_slice %21 {offsets = [0, 0], sizes = [8, 4], strides = [1, 1]} : vector<8x64xbf16> to vector<8x4xbf16>
    %25 = vector.shape_cast %24 : vector<8x4xbf16> to vector<1x8x4xbf16>
    %26 = vector.extract_strided_slice %21 {offsets = [0, 32], sizes = [8, 4], strides = [1, 1]} : vector<8x64xbf16> to vector<8x4xbf16>
    %27 = vector.shape_cast %26 : vector<8x4xbf16> to vector<1x8x4xbf16>
    "tpu.trace_start"() <{level = 10 : i32, message = "bqd,bkd->bqk"}> : () -> ()
    %cst_17 = arith.constant dense<0.000000e+00> : vector<1x8x8xf32>
    %28 = tpu.matmul %23, %25, %cst_17 {dimension_numbers = #tpu.dot_dimension_numbers<[2], [2], [1], [1], [0, 0, 0, 1, 1, 1], [0], [0]>} : vector<1x8x4xbf16>, vector<1x8x4xbf16>, vector<1x8x8xf32> -> vector<1x8x8xf32>
    "tpu.trace_stop"() : () -> ()
    %cst_18 = arith.constant 5.000000e-01 : f32
    %29 = vector.broadcast %cst_18 : f32 to vector<1x8x8xf32>
    %30 = arith.mulf %28, %29 : vector<1x8x8xf32>
    %cst_19 = arith.constant dense<0xFF800000> : vector<1x8xf32>
    %31 = vector.multi_reduction <maximumf>, %30, %cst_19 [2] : vector<1x8x8xf32> to vector<1x8xf32>
    %32 = vector.shape_cast %31 : vector<1x8xf32> to vector<1x8x1xf32>
    %33 = vector.broadcast %32 : vector<1x8x1xf32> to vector<1x8x8xf32>
    %34 = arith.subf %30, %33 : vector<1x8x8xf32>
    %35 = math.exp %34 : vector<1x8x8xf32>
    %cst_20 = arith.constant dense<0.000000e+00> : vector<1x8xf32>
    %36 = vector.multi_reduction <add>, %35, %cst_20 [2] : vector<1x8x8xf32> to vector<1x8xf32>
    %37 = vector.shape_cast %36 : vector<1x8xf32> to vector<1x8x1xf32>
    %38 = tpu.reciprocal %37 {approx = true} : vector<1x8x1xf32> -> vector<1x8x1xf32>
    %39 = vector.broadcast %38 : vector<1x8x1xf32> to vector<1x8x8xf32>
    %40 = arith.mulf %35, %39 : vector<1x8x8xf32>
    %41 = arith.truncf %40 : vector<1x8x8xf32> to vector<1x8x8xbf16>
    "tpu.trace_start"() <{level = 10 : i32, message = "bqk,bkd->bqd"}> : () -> ()
    %cst_21 = arith.constant dense<0.000000e+00> : vector<1x8x4xf32>
    %42 = tpu.matmul %41, %27, %cst_21 {dimension_numbers = #tpu.dot_dimension_numbers<[2], [1], [1], [2], [0, 0, 0, 1, 1, 2], [0], [0]>} : vector<1x8x8xbf16>, vector<1x8x4xbf16>, vector<1x8x4xf32> -> vector<1x8x4xf32>
    "tpu.trace_stop"() : () -> ()
    %43 = vector.shape_cast %42 : vector<1x8x4xf32> to vector<8x4xf32>
    %44 = vector.extract_strided_slice %13 {offsets = [0, 4], sizes = [8, 4], strides = [1, 1]} : vector<8x32xbf16> to vector<8x4xbf16>
    %45 = vector.shape_cast %44 : vector<8x4xbf16> to vector<1x8x4xbf16>
    %46 = vector.extract_strided_slice %21 {offsets = [0, 4], sizes = [8, 4], strides = [1, 1]} : vector<8x64xbf16> to vector<8x4xbf16>
    %47 = vector.shape_cast %46 : vector<8x4xbf16> to vector<1x8x4xbf16>
    %48 = vector.extract_strided_slice %21 {offsets = [0, 36], sizes = [8, 4], strides = [1, 1]} : vector<8x64xbf16> to vector<8x4xbf16>
    %49 = vector.shape_cast %48 : vector<8x4xbf16> to vector<1x8x4xbf16>
    "tpu.trace_start"() <{level = 10 : i32, message = "bqd,bkd->bqk"}> : () -> ()
    %cst_22 = arith.constant dense<0.000000e+00> : vector<1x8x8xf32>
    %50 = tpu.matmul %45, %47, %cst_22 {dimension_numbers = #tpu.dot_dimension_numbers<[2], [2], [1], [1], [0, 0, 0, 1, 1, 1], [0], [0]>} : vector<1x8x4xbf16>, vector<1x8x4xbf16>, vector<1x8x8xf32> -> vector<1x8x8xf32>
    "tpu.trace_stop"() : () -> ()
    %cst_23 = arith.constant 5.000000e-01 : f32
    %51 = vector.broadcast %cst_23 : f32 to vector<1x8x8xf32>
    %52 = arith.mulf %50, %51 : vector<1x8x8xf32>
    %cst_24 = arith.constant dense<0xFF800000> : vector<1x8xf32>
    %53 = vector.multi_reduction <maximumf>, %52, %cst_24 [2] : vector<1x8x8xf32> to vector<1x8xf32>
    %54 = vector.shape_cast %53 : vector<1x8xf32> to vector<1x8x1xf32>
    %55 = vector.broadcast %54 : vector<1x8x1xf32> to vector<1x8x8xf32>
    %56 = arith.subf %52, %55 : vector<1x8x8xf32>
    %57 = math.exp %56 : vector<1x8x8xf32>
    %cst_25 = arith.constant dense<0.000000e+00> : vector<1x8xf32>
    %58 = vector.multi_reduction <add>, %57, %cst_25 [2] : vector<1x8x8xf32> to vector<1x8xf32>
    %59 = vector.shape_cast %58 : vector<1x8xf32> to vector<1x8x1xf32>
    %60 = tpu.reciprocal %59 {approx = true} : vector<1x8x1xf32> -> vector<1x8x1xf32>
    %61 = vector.broadcast %60 : vector<1x8x1xf32> to vector<1x8x8xf32>
    %62 = arith.mulf %57, %61 : vector<1x8x8xf32>
    %63 = arith.truncf %62 : vector<1x8x8xf32> to vector<1x8x8xbf16>
    "tpu.trace_start"() <{level = 10 : i32, message = "bqk,bkd->bqd"}> : () -> ()
    %cst_26 = arith.constant dense<0.000000e+00> : vector<1x8x4xf32>
    %64 = tpu.matmul %63, %49, %cst_26 {dimension_numbers = #tpu.dot_dimension_numbers<[2], [1], [1], [2], [0, 0, 0, 1, 1, 2], [0], [0]>} : vector<1x8x8xbf16>, vector<1x8x4xbf16>, vector<1x8x4xf32> -> vector<1x8x4xf32>
    "tpu.trace_stop"() : () -> ()
    %65 = vector.shape_cast %64 : vector<1x8x4xf32> to vector<8x4xf32>
    %66 = vector.extract_strided_slice %13 {offsets = [0, 8], sizes = [8, 4], strides = [1, 1]} : vector<8x32xbf16> to vector<8x4xbf16>
    %67 = vector.shape_cast %66 : vector<8x4xbf16> to vector<1x8x4xbf16>
    %68 = vector.extract_strided_slice %21 {offsets = [0, 8], sizes = [8, 4], strides = [1, 1]} : vector<8x64xbf16> to vector<8x4xbf16>
    %69 = vector.shape_cast %68 : vector<8x4xbf16> to vector<1x8x4xbf16>
    %70 = vector.extract_strided_slice %21 {offsets = [0, 40], sizes = [8, 4], strides = [1, 1]} : vector<8x64xbf16> to vector<8x4xbf16>
    %71 = vector.shape_cast %70 : vector<8x4xbf16> to vector<1x8x4xbf16>
    "tpu.trace_start"() <{level = 10 : i32, message = "bqd,bkd->bqk"}> : () -> ()
    %cst_27 = arith.constant dense<0.000000e+00> : vector<1x8x8xf32>
    %72 = tpu.matmul %67, %69, %cst_27 {dimension_numbers = #tpu.dot_dimension_numbers<[2], [2], [1], [1], [0, 0, 0, 1, 1, 1], [0], [0]>} : vector<1x8x4xbf16>, vector<1x8x4xbf16>, vector<1x8x8xf32> -> vector<1x8x8xf32>
    "tpu.trace_stop"() : () -> ()
    %cst_28 = arith.constant 5.000000e-01 : f32
    %73 = vector.broadcast %cst_28 : f32 to vector<1x8x8xf32>
    %74 = arith.mulf %72, %73 : vector<1x8x8xf32>
    %cst_29 = arith.constant dense<0xFF800000> : vector<1x8xf32>
    %75 = vector.multi_reduction <maximumf>, %74, %cst_29 [2] : vector<1x8x8xf32> to vector<1x8xf32>
    %76 = vector.shape_cast %75 : vector<1x8xf32> to vector<1x8x1xf32>
    %77 = vector.broadcast %76 : vector<1x8x1xf32> to vector<1x8x8xf32>
    %78 = arith.subf %74, %77 : vector<1x8x8xf32>
    %79 = math.exp %78 : vector<1x8x8xf32>
    %cst_30 = arith.constant dense<0.000000e+00> : vector<1x8xf32>
    %80 = vector.multi_reduction <add>, %79, %cst_30 [2] : vector<1x8x8xf32> to vector<1x8xf32>
    %81 = vector.shape_cast %80 : vector<1x8xf32> to vector<1x8x1xf32>
    %82 = tpu.reciprocal %81 {approx = true} : vector<1x8x1xf32> -> vector<1x8x1xf32>
    %83 = vector.broadcast %82 : vector<1x8x1xf32> to vector<1x8x8xf32>
    %84 = arith.mulf %79, %83 : vector<1x8x8xf32>
    %85 = arith.truncf %84 : vector<1x8x8xf32> to vector<1x8x8xbf16>
    "tpu.trace_start"() <{level = 10 : i32, message = "bqk,bkd->bqd"}> : () -> ()
    %cst_31 = arith.constant dense<0.000000e+00> : vector<1x8x4xf32>
    %86 = tpu.matmul %85, %71, %cst_31 {dimension_numbers = #tpu.dot_dimension_numbers<[2], [1], [1], [2], [0, 0, 0, 1, 1, 2], [0], [0]>} : vector<1x8x8xbf16>, vector<1x8x4xbf16>, vector<1x8x4xf32> -> vector<1x8x4xf32>
    "tpu.trace_stop"() : () -> ()
    %87 = vector.shape_cast %86 : vector<1x8x4xf32> to vector<8x4xf32>
    %88 = vector.extract_strided_slice %13 {offsets = [0, 12], sizes = [8, 4], strides = [1, 1]} : vector<8x32xbf16> to vector<8x4xbf16>
    %89 = vector.shape_cast %88 : vector<8x4xbf16> to vector<1x8x4xbf16>
    %90 = vector.extract_strided_slice %21 {offsets = [0, 12], sizes = [8, 4], strides = [1, 1]} : vector<8x64xbf16> to vector<8x4xbf16>
    %91 = vector.shape_cast %90 : vector<8x4xbf16> to vector<1x8x4xbf16>
    %92 = vector.extract_strided_slice %21 {offsets = [0, 44], sizes = [8, 4], strides = [1, 1]} : vector<8x64xbf16> to vector<8x4xbf16>
    %93 = vector.shape_cast %92 : vector<8x4xbf16> to vector<1x8x4xbf16>
    "tpu.trace_start"() <{level = 10 : i32, message = "bqd,bkd->bqk"}> : () -> ()
    %cst_32 = arith.constant dense<0.000000e+00> : vector<1x8x8xf32>
    %94 = tpu.matmul %89, %91, %cst_32 {dimension_numbers = #tpu.dot_dimension_numbers<[2], [2], [1], [1], [0, 0, 0, 1, 1, 1], [0], [0]>} : vector<1x8x4xbf16>, vector<1x8x4xbf16>, vector<1x8x8xf32> -> vector<1x8x8xf32>
    "tpu.trace_stop"() : () -> ()
    %cst_33 = arith.constant 5.000000e-01 : f32
    %95 = vector.broadcast %cst_33 : f32 to vector<1x8x8xf32>
    %96 = arith.mulf %94, %95 : vector<1x8x8xf32>
    %cst_34 = arith.constant dense<0xFF800000> : vector<1x8xf32>
    %97 = vector.multi_reduction <maximumf>, %96, %cst_34 [2] : vector<1x8x8xf32> to vector<1x8xf32>
    %98 = vector.shape_cast %97 : vector<1x8xf32> to vector<1x8x1xf32>
    %99 = vector.broadcast %98 : vector<1x8x1xf32> to vector<1x8x8xf32>
    %100 = arith.subf %96, %99 : vector<1x8x8xf32>
    %101 = math.exp %100 : vector<1x8x8xf32>
    %cst_35 = arith.constant dense<0.000000e+00> : vector<1x8xf32>
    %102 = vector.multi_reduction <add>, %101, %cst_35 [2] : vector<1x8x8xf32> to vector<1x8xf32>
    %103 = vector.shape_cast %102 : vector<1x8xf32> to vector<1x8x1xf32>
    %104 = tpu.reciprocal %103 {approx = true} : vector<1x8x1xf32> -> vector<1x8x1xf32>
    %105 = vector.broadcast %104 : vector<1x8x1xf32> to vector<1x8x8xf32>
    %106 = arith.mulf %101, %105 : vector<1x8x8xf32>
    %107 = arith.truncf %106 : vector<1x8x8xf32> to vector<1x8x8xbf16>
    "tpu.trace_start"() <{level = 10 : i32, message = "bqk,bkd->bqd"}> : () -> ()
    %cst_36 = arith.constant dense<0.000000e+00> : vector<1x8x4xf32>
    %108 = tpu.matmul %107, %93, %cst_36 {dimension_numbers = #tpu.dot_dimension_numbers<[2], [1], [1], [2], [0, 0, 0, 1, 1, 2], [0], [0]>} : vector<1x8x8xbf16>, vector<1x8x4xbf16>, vector<1x8x4xf32> -> vector<1x8x4xf32>
    "tpu.trace_stop"() : () -> ()
    %109 = vector.shape_cast %108 : vector<1x8x4xf32> to vector<8x4xf32>
    %110 = vector.extract_strided_slice %13 {offsets = [0, 16], sizes = [8, 4], strides = [1, 1]} : vector<8x32xbf16> to vector<8x4xbf16>
    %111 = vector.shape_cast %110 : vector<8x4xbf16> to vector<1x8x4xbf16>
    %112 = vector.extract_strided_slice %21 {offsets = [0, 16], sizes = [8, 4], strides = [1, 1]} : vector<8x64xbf16> to vector<8x4xbf16>
    %113 = vector.shape_cast %112 : vector<8x4xbf16> to vector<1x8x4xbf16>
    %114 = vector.extract_strided_slice %21 {offsets = [0, 48], sizes = [8, 4], strides = [1, 1]} : vector<8x64xbf16> to vector<8x4xbf16>
    %115 = vector.shape_cast %114 : vector<8x4xbf16> to vector<1x8x4xbf16>
    "tpu.trace_start"() <{level = 10 : i32, message = "bqd,bkd->bqk"}> : () -> ()
    %cst_37 = arith.constant dense<0.000000e+00> : vector<1x8x8xf32>
    %116 = tpu.matmul %111, %113, %cst_37 {dimension_numbers = #tpu.dot_dimension_numbers<[2], [2], [1], [1], [0, 0, 0, 1, 1, 1], [0], [0]>} : vector<1x8x4xbf16>, vector<1x8x4xbf16>, vector<1x8x8xf32> -> vector<1x8x8xf32>
    "tpu.trace_stop"() : () -> ()
    %cst_38 = arith.constant 5.000000e-01 : f32
    %117 = vector.broadcast %cst_38 : f32 to vector<1x8x8xf32>
    %118 = arith.mulf %116, %117 : vector<1x8x8xf32>
    %cst_39 = arith.constant dense<0xFF800000> : vector<1x8xf32>
    %119 = vector.multi_reduction <maximumf>, %118, %cst_39 [2] : vector<1x8x8xf32> to vector<1x8xf32>
    %120 = vector.shape_cast %119 : vector<1x8xf32> to vector<1x8x1xf32>
    %121 = vector.broadcast %120 : vector<1x8x1xf32> to vector<1x8x8xf32>
    %122 = arith.subf %118, %121 : vector<1x8x8xf32>
    %123 = math.exp %122 : vector<1x8x8xf32>
    %cst_40 = arith.constant dense<0.000000e+00> : vector<1x8xf32>
    %124 = vector.multi_reduction <add>, %123, %cst_40 [2] : vector<1x8x8xf32> to vector<1x8xf32>
    %125 = vector.shape_cast %124 : vector<1x8xf32> to vector<1x8x1xf32>
    %126 = tpu.reciprocal %125 {approx = true} : vector<1x8x1xf32> -> vector<1x8x1xf32>
    %127 = vector.broadcast %126 : vector<1x8x1xf32> to vector<1x8x8xf32>
    %128 = arith.mulf %123, %127 : vector<1x8x8xf32>
    %129 = arith.truncf %128 : vector<1x8x8xf32> to vector<1x8x8xbf16>
    "tpu.trace_start"() <{level = 10 : i32, message = "bqk,bkd->bqd"}> : () -> ()
    %cst_41 = arith.constant dense<0.000000e+00> : vector<1x8x4xf32>
    %130 = tpu.matmul %129, %115, %cst_41 {dimension_numbers = #tpu.dot_dimension_numbers<[2], [1], [1], [2], [0, 0, 0, 1, 1, 2], [0], [0]>} : vector<1x8x8xbf16>, vector<1x8x4xbf16>, vector<1x8x4xf32> -> vector<1x8x4xf32>
    "tpu.trace_stop"() : () -> ()
    %131 = vector.shape_cast %130 : vector<1x8x4xf32> to vector<8x4xf32>
    %132 = vector.extract_strided_slice %13 {offsets = [0, 20], sizes = [8, 4], strides = [1, 1]} : vector<8x32xbf16> to vector<8x4xbf16>
    %133 = vector.shape_cast %132 : vector<8x4xbf16> to vector<1x8x4xbf16>
    %134 = vector.extract_strided_slice %21 {offsets = [0, 20], sizes = [8, 4], strides = [1, 1]} : vector<8x64xbf16> to vector<8x4xbf16>
    %135 = vector.shape_cast %134 : vector<8x4xbf16> to vector<1x8x4xbf16>
    %136 = vector.extract_strided_slice %21 {offsets = [0, 52], sizes = [8, 4], strides = [1, 1]} : vector<8x64xbf16> to vector<8x4xbf16>
    %137 = vector.shape_cast %136 : vector<8x4xbf16> to vector<1x8x4xbf16>
    "tpu.trace_start"() <{level = 10 : i32, message = "bqd,bkd->bqk"}> : () -> ()
    %cst_42 = arith.constant dense<0.000000e+00> : vector<1x8x8xf32>
    %138 = tpu.matmul %133, %135, %cst_42 {dimension_numbers = #tpu.dot_dimension_numbers<[2], [2], [1], [1], [0, 0, 0, 1, 1, 1], [0], [0]>} : vector<1x8x4xbf16>, vector<1x8x4xbf16>, vector<1x8x8xf32> -> vector<1x8x8xf32>
    "tpu.trace_stop"() : () -> ()
    %cst_43 = arith.constant 5.000000e-01 : f32
    %139 = vector.broadcast %cst_43 : f32 to vector<1x8x8xf32>
    %140 = arith.mulf %138, %139 : vector<1x8x8xf32>
    %cst_44 = arith.constant dense<0xFF800000> : vector<1x8xf32>
    %141 = vector.multi_reduction <maximumf>, %140, %cst_44 [2] : vector<1x8x8xf32> to vector<1x8xf32>
    %142 = vector.shape_cast %141 : vector<1x8xf32> to vector<1x8x1xf32>
    %143 = vector.broadcast %142 : vector<1x8x1xf32> to vector<1x8x8xf32>
    %144 = arith.subf %140, %143 : vector<1x8x8xf32>
    %145 = math.exp %144 : vector<1x8x8xf32>
    %cst_45 = arith.constant dense<0.000000e+00> : vector<1x8xf32>
    %146 = vector.multi_reduction <add>, %145, %cst_45 [2] : vector<1x8x8xf32> to vector<1x8xf32>
    %147 = vector.shape_cast %146 : vector<1x8xf32> to vector<1x8x1xf32>
    %148 = tpu.reciprocal %147 {approx = true} : vector<1x8x1xf32> -> vector<1x8x1xf32>
    %149 = vector.broadcast %148 : vector<1x8x1xf32> to vector<1x8x8xf32>
    %150 = arith.mulf %145, %149 : vector<1x8x8xf32>
    %151 = arith.truncf %150 : vector<1x8x8xf32> to vector<1x8x8xbf16>
    "tpu.trace_start"() <{level = 10 : i32, message = "bqk,bkd->bqd"}> : () -> ()
    %cst_46 = arith.constant dense<0.000000e+00> : vector<1x8x4xf32>
    %152 = tpu.matmul %151, %137, %cst_46 {dimension_numbers = #tpu.dot_dimension_numbers<[2], [1], [1], [2], [0, 0, 0, 1, 1, 2], [0], [0]>} : vector<1x8x8xbf16>, vector<1x8x4xbf16>, vector<1x8x4xf32> -> vector<1x8x4xf32>
    "tpu.trace_stop"() : () -> ()
    %153 = vector.shape_cast %152 : vector<1x8x4xf32> to vector<8x4xf32>
    %154 = vector.extract_strided_slice %13 {offsets = [0, 24], sizes = [8, 4], strides = [1, 1]} : vector<8x32xbf16> to vector<8x4xbf16>
    %155 = vector.shape_cast %154 : vector<8x4xbf16> to vector<1x8x4xbf16>
    %156 = vector.extract_strided_slice %21 {offsets = [0, 24], sizes = [8, 4], strides = [1, 1]} : vector<8x64xbf16> to vector<8x4xbf16>
    %157 = vector.shape_cast %156 : vector<8x4xbf16> to vector<1x8x4xbf16>
    %158 = vector.extract_strided_slice %21 {offsets = [0, 56], sizes = [8, 4], strides = [1, 1]} : vector<8x64xbf16> to vector<8x4xbf16>
    %159 = vector.shape_cast %158 : vector<8x4xbf16> to vector<1x8x4xbf16>
    "tpu.trace_start"() <{level = 10 : i32, message = "bqd,bkd->bqk"}> : () -> ()
    %cst_47 = arith.constant dense<0.000000e+00> : vector<1x8x8xf32>
    %160 = tpu.matmul %155, %157, %cst_47 {dimension_numbers = #tpu.dot_dimension_numbers<[2], [2], [1], [1], [0, 0, 0, 1, 1, 1], [0], [0]>} : vector<1x8x4xbf16>, vector<1x8x4xbf16>, vector<1x8x8xf32> -> vector<1x8x8xf32>
    "tpu.trace_stop"() : () -> ()
    %cst_48 = arith.constant 5.000000e-01 : f32
    %161 = vector.broadcast %cst_48 : f32 to vector<1x8x8xf32>
    %162 = arith.mulf %160, %161 : vector<1x8x8xf32>
    %cst_49 = arith.constant dense<0xFF800000> : vector<1x8xf32>
    %163 = vector.multi_reduction <maximumf>, %162, %cst_49 [2] : vector<1x8x8xf32> to vector<1x8xf32>
    %164 = vector.shape_cast %163 : vector<1x8xf32> to vector<1x8x1xf32>
    %165 = vector.broadcast %164 : vector<1x8x1xf32> to vector<1x8x8xf32>
    %166 = arith.subf %162, %165 : vector<1x8x8xf32>
    %167 = math.exp %166 : vector<1x8x8xf32>
    %cst_50 = arith.constant dense<0.000000e+00> : vector<1x8xf32>
    %168 = vector.multi_reduction <add>, %167, %cst_50 [2] : vector<1x8x8xf32> to vector<1x8xf32>
    %169 = vector.shape_cast %168 : vector<1x8xf32> to vector<1x8x1xf32>
    %170 = tpu.reciprocal %169 {approx = true} : vector<1x8x1xf32> -> vector<1x8x1xf32>
    %171 = vector.broadcast %170 : vector<1x8x1xf32> to vector<1x8x8xf32>
    %172 = arith.mulf %167, %171 : vector<1x8x8xf32>
    %173 = arith.truncf %172 : vector<1x8x8xf32> to vector<1x8x8xbf16>
    "tpu.trace_start"() <{level = 10 : i32, message = "bqk,bkd->bqd"}> : () -> ()
    %cst_51 = arith.constant dense<0.000000e+00> : vector<1x8x4xf32>
    %174 = tpu.matmul %173, %159, %cst_51 {dimension_numbers = #tpu.dot_dimension_numbers<[2], [1], [1], [2], [0, 0, 0, 1, 1, 2], [0], [0]>} : vector<1x8x8xbf16>, vector<1x8x4xbf16>, vector<1x8x4xf32> -> vector<1x8x4xf32>
    "tpu.trace_stop"() : () -> ()
    %175 = vector.shape_cast %174 : vector<1x8x4xf32> to vector<8x4xf32>
    %176 = vector.extract_strided_slice %13 {offsets = [0, 28], sizes = [8, 4], strides = [1, 1]} : vector<8x32xbf16> to vector<8x4xbf16>
    %177 = vector.shape_cast %176 : vector<8x4xbf16> to vector<1x8x4xbf16>
    %178 = vector.extract_strided_slice %21 {offsets = [0, 28], sizes = [8, 4], strides = [1, 1]} : vector<8x64xbf16> to vector<8x4xbf16>
    %179 = vector.shape_cast %178 : vector<8x4xbf16> to vector<1x8x4xbf16>
    %180 = vector.extract_strided_slice %21 {offsets = [0, 60], sizes = [8, 4], strides = [1, 1]} : vector<8x64xbf16> to vector<8x4xbf16>
    %181 = vector.shape_cast %180 : vector<8x4xbf16> to vector<1x8x4xbf16>
    "tpu.trace_start"() <{level = 10 : i32, message = "bqd,bkd->bqk"}> : () -> ()
    %cst_52 = arith.constant dense<0.000000e+00> : vector<1x8x8xf32>
    %182 = tpu.matmul %177, %179, %cst_52 {dimension_numbers = #tpu.dot_dimension_numbers<[2], [2], [1], [1], [0, 0, 0, 1, 1, 1], [0], [0]>} : vector<1x8x4xbf16>, vector<1x8x4xbf16>, vector<1x8x8xf32> -> vector<1x8x8xf32>
    "tpu.trace_stop"() : () -> ()
    %cst_53 = arith.constant 5.000000e-01 : f32
    %183 = vector.broadcast %cst_53 : f32 to vector<1x8x8xf32>
    %184 = arith.mulf %182, %183 : vector<1x8x8xf32>
    %cst_54 = arith.constant dense<0xFF800000> : vector<1x8xf32>
    %185 = vector.multi_reduction <maximumf>, %184, %cst_54 [2] : vector<1x8x8xf32> to vector<1x8xf32>
    %186 = vector.shape_cast %185 : vector<1x8xf32> to vector<1x8x1xf32>
    %187 = vector.broadcast %186 : vector<1x8x1xf32> to vector<1x8x8xf32>
    %188 = arith.subf %184, %187 : vector<1x8x8xf32>
    %189 = math.exp %188 : vector<1x8x8xf32>
    %cst_55 = arith.constant dense<0.000000e+00> : vector<1x8xf32>
    %190 = vector.multi_reduction <add>, %189, %cst_55 [2] : vector<1x8x8xf32> to vector<1x8xf32>
    %191 = vector.shape_cast %190 : vector<1x8xf32> to vector<1x8x1xf32>
    %192 = tpu.reciprocal %191 {approx = true} : vector<1x8x1xf32> -> vector<1x8x1xf32>
    %193 = vector.broadcast %192 : vector<1x8x1xf32> to vector<1x8x8xf32>
    %194 = arith.mulf %189, %193 : vector<1x8x8xf32>
    %195 = arith.truncf %194 : vector<1x8x8xf32> to vector<1x8x8xbf16>
    "tpu.trace_start"() <{level = 10 : i32, message = "bqk,bkd->bqd"}> : () -> ()
    %cst_56 = arith.constant dense<0.000000e+00> : vector<1x8x4xf32>
    %196 = tpu.matmul %195, %181, %cst_56 {dimension_numbers = #tpu.dot_dimension_numbers<[2], [1], [1], [2], [0, 0, 0, 1, 1, 2], [0], [0]>} : vector<1x8x8xbf16>, vector<1x8x4xbf16>, vector<1x8x4xf32> -> vector<1x8x4xf32>
    "tpu.trace_stop"() : () -> ()
    %197 = vector.shape_cast %196 : vector<1x8x4xf32> to vector<8x4xf32>
    %198 = tpu.concatenate %43, %65, %87, %109, %131, %153, %175, %197 in 1 : vector<8x4xf32>, vector<8x4xf32>, vector<8x4xf32>, vector<8x4xf32>, vector<8x4xf32>, vector<8x4xf32>, vector<8x4xf32>, vector<8x4xf32> -> vector<8x32xf32>
    %199 = arith.truncf %198 : vector<8x32xf32> to vector<8x32xbf16>
    %c0_57 = arith.constant 0 : index
    %c0_58 = arith.constant 0 : index
    %c0_59 = arith.constant 0 : index
    %200 = vector.load %arg8[%c0_57, %c0_58, %c0_59] : memref<1x32x32xbf16, #tpu.memory_space<vmem>>, vector<1x32x32xbf16>
    %201 = vector.shape_cast %200 : vector<1x32x32xbf16> to vector<32x32xbf16>
    %cst_60 = arith.constant dense<0.000000e+00> : vector<8x32xf32>
    %202 = tpu.matmul %199, %201, %cst_60 {dimension_numbers = #tpu.dot_dimension_numbers<[1], [0], [0], [1], [0, 0, 1, 1], [], []>} : vector<8x32xbf16>, vector<32x32xbf16>, vector<8x32xf32> -> vector<8x32xf32>
    %c0_61 = arith.constant 0 : index
    %c0_62 = arith.constant 0 : index
    %c0_63 = arith.constant 0 : index
    %203 = vector.load %arg9[%c0_61, %c0_62, %c0_63] : memref<1x1x32xf32, #tpu.memory_space<vmem>>, vector<1x1x32xf32>
    %204 = vector.shape_cast %203 : vector<1x1x32xf32> to vector<1x32xf32>
    %205 = vector.broadcast %204 : vector<1x32xf32> to vector<8x32xf32>
    %206 = arith.addf %202, %205 : vector<8x32xf32>
    %207 = arith.addf %3, %206 : vector<8x32xf32>
    %cst_64 = arith.constant dense<0.000000e+00> : vector<8xf32>
    %208 = vector.multi_reduction <add>, %207, %cst_64 [1] : vector<8x32xf32> to vector<8xf32>
    %209 = vector.shape_cast %208 : vector<8xf32> to vector<8x1xf32>
    %cst_65 = arith.constant 3.200000e+01 : f32
    %210 = vector.broadcast %cst_65 : f32 to vector<8x1xf32>
    %211 = arith.divf %209, %210 : vector<8x1xf32>
    %212 = vector.broadcast %211 : vector<8x1xf32> to vector<8x32xf32>
    %213 = arith.subf %207, %212 : vector<8x32xf32>
    %214 = arith.mulf %213, %213 : vector<8x32xf32>
    %cst_66 = arith.constant dense<0.000000e+00> : vector<8xf32>
    %215 = vector.multi_reduction <add>, %214, %cst_66 [1] : vector<8x32xf32> to vector<8xf32>
    %216 = vector.shape_cast %215 : vector<8xf32> to vector<8x1xf32>
    %cst_67 = arith.constant 3.200000e+01 : f32
    %217 = vector.broadcast %cst_67 : f32 to vector<8x1xf32>
    %218 = arith.divf %216, %217 : vector<8x1xf32>
    %cst_68 = arith.constant 9.99999974E-6 : f32
    %219 = vector.broadcast %cst_68 : f32 to vector<8x1xf32>
    %220 = arith.addf %218, %219 : vector<8x1xf32>
    %221 = math.rsqrt %220 : vector<8x1xf32>
    %222 = vector.broadcast %221 : vector<8x1xf32> to vector<8x32xf32>
    %223 = arith.mulf %213, %222 : vector<8x32xf32>
    %c0_69 = arith.constant 0 : index
    %c0_70 = arith.constant 0 : index
    %c0_71 = arith.constant 0 : index
    %c0_72 = arith.constant 0 : index
    %224 = vector.load %arg20[%c0_69, %c0_70, %c0_71, %c0_72] : memref<1x3x1x32xf32, #tpu.memory_space<vmem>>, vector<1x1x1x32xf32>
    %225 = vector.shape_cast %224 : vector<1x1x1x32xf32> to vector<1x32xf32>
    %226 = vector.broadcast %225 : vector<1x32xf32> to vector<8x32xf32>
    %227 = arith.mulf %223, %226 : vector<8x32xf32>
    %c0_73 = arith.constant 0 : index
    %c0_74 = arith.constant 0 : index
    %c0_75 = arith.constant 0 : index
    %c0_76 = arith.constant 0 : index
    %228 = vector.load %arg21[%c0_73, %c0_74, %c0_75, %c0_76] : memref<1x3x1x32xf32, #tpu.memory_space<vmem>>, vector<1x1x1x32xf32>
    %229 = vector.shape_cast %228 : vector<1x1x1x32xf32> to vector<1x32xf32>
    %230 = vector.broadcast %229 : vector<1x32xf32> to vector<8x32xf32>
    %231 = arith.addf %227, %230 : vector<8x32xf32>
    %232 = arith.truncf %231 : vector<8x32xf32> to vector<8x32xbf16>
    %c0_77 = arith.constant 0 : index
    %c0_78 = arith.constant 0 : index
    %c0_79 = arith.constant 0 : index
    %233 = vector.load %arg10[%c0_77, %c0_78, %c0_79] : memref<1x32x32xbf16, #tpu.memory_space<vmem>>, vector<1x32x32xbf16>
    %234 = vector.shape_cast %233 : vector<1x32x32xbf16> to vector<32x32xbf16>
    %cst_80 = arith.constant dense<0.000000e+00> : vector<8x32xf32>
    %235 = tpu.matmul %232, %234, %cst_80 {dimension_numbers = #tpu.dot_dimension_numbers<[1], [0], [0], [1], [0, 0, 1, 1], [], []>} : vector<8x32xbf16>, vector<32x32xbf16>, vector<8x32xf32> -> vector<8x32xf32>
    %c0_81 = arith.constant 0 : index
    %c0_82 = arith.constant 0 : index
    %c0_83 = arith.constant 0 : index
    %236 = vector.load %arg11[%c0_81, %c0_82, %c0_83] : memref<1x1x32xf32, #tpu.memory_space<vmem>>, vector<1x1x32xf32>
    %237 = vector.shape_cast %236 : vector<1x1x32xf32> to vector<1x32xf32>
    %238 = vector.broadcast %237 : vector<1x32xf32> to vector<8x32xf32>
    %239 = arith.addf %235, %238 : vector<8x32xf32>
    %240 = arith.truncf %239 : vector<8x32xf32> to vector<8x32xbf16>
    %c0_84 = arith.constant 0 : index
    %c0_85 = arith.constant 0 : index
    %c0_86 = arith.constant 0 : index
    %241 = vector.load %arg12[%c0_84, %c0_85, %c0_86] : memref<1x32x64xbf16, #tpu.memory_space<vmem>>, vector<1x32x64xbf16>
    %242 = vector.shape_cast %241 : vector<1x32x64xbf16> to vector<32x64xbf16>
    %cst_87 = arith.constant dense<0.000000e+00> : vector<8x64xf32>
    %243 = tpu.matmul %4, %242, %cst_87 {dimension_numbers = #tpu.dot_dimension_numbers<[1], [0], [0], [1], [0, 0, 1, 1], [], []>} : vector<8x32xbf16>, vector<32x64xbf16>, vector<8x64xf32> -> vector<8x64xf32>
    %c0_88 = arith.constant 0 : index
    %c0_89 = arith.constant 0 : index
    %c0_90 = arith.constant 0 : index
    %244 = vector.load %arg13[%c0_88, %c0_89, %c0_90] : memref<1x1x64xf32, #tpu.memory_space<vmem>>, vector<1x1x64xf32>
    %245 = vector.shape_cast %244 : vector<1x1x64xf32> to vector<1x64xf32>
    %246 = vector.broadcast %245 : vector<1x64xf32> to vector<8x64xf32>
    %247 = arith.addf %243, %246 : vector<8x64xf32>
    %248 = arith.truncf %247 : vector<8x64xf32> to vector<8x64xbf16>
    %249 = vector.extract_strided_slice %240 {offsets = [0, 0], sizes = [8, 4], strides = [1, 1]} : vector<8x32xbf16> to vector<8x4xbf16>
    %250 = vector.shape_cast %249 : vector<8x4xbf16> to vector<1x8x4xbf16>
    %251 = vector.extract_strided_slice %248 {offsets = [0, 0], sizes = [8, 4], strides = [1, 1]} : vector<8x64xbf16> to vector<8x4xbf16>
    %252 = vector.shape_cast %251 : vector<8x4xbf16> to vector<1x8x4xbf16>
    %253 = vector.extract_strided_slice %248 {offsets = [0, 32], sizes = [8, 4], strides = [1, 1]} : vector<8x64xbf16> to vector<8x4xbf16>
    %254 = vector.shape_cast %253 : vector<8x4xbf16> to vector<1x8x4xbf16>
    "tpu.trace_start"() <{level = 10 : i32, message = "bqd,bkd->bqk"}> : () -> ()
    %cst_91 = arith.constant dense<0.000000e+00> : vector<1x8x8xf32>
    %255 = tpu.matmul %250, %252, %cst_91 {dimension_numbers = #tpu.dot_dimension_numbers<[2], [2], [1], [1], [0, 0, 0, 1, 1, 1], [0], [0]>} : vector<1x8x4xbf16>, vector<1x8x4xbf16>, vector<1x8x8xf32> -> vector<1x8x8xf32>
    "tpu.trace_stop"() : () -> ()
    %cst_92 = arith.constant 5.000000e-01 : f32
    %256 = vector.broadcast %cst_92 : f32 to vector<1x8x8xf32>
    %257 = arith.mulf %255, %256 : vector<1x8x8xf32>
    %cst_93 = arith.constant dense<0xFF800000> : vector<1x8xf32>
    %258 = vector.multi_reduction <maximumf>, %257, %cst_93 [2] : vector<1x8x8xf32> to vector<1x8xf32>
    %259 = vector.shape_cast %258 : vector<1x8xf32> to vector<1x8x1xf32>
    %260 = vector.broadcast %259 : vector<1x8x1xf32> to vector<1x8x8xf32>
    %261 = arith.subf %257, %260 : vector<1x8x8xf32>
    %262 = math.exp %261 : vector<1x8x8xf32>
    %cst_94 = arith.constant dense<0.000000e+00> : vector<1x8xf32>
    %263 = vector.multi_reduction <add>, %262, %cst_94 [2] : vector<1x8x8xf32> to vector<1x8xf32>
    %264 = vector.shape_cast %263 : vector<1x8xf32> to vector<1x8x1xf32>
    %265 = tpu.reciprocal %264 {approx = true} : vector<1x8x1xf32> -> vector<1x8x1xf32>
    %266 = vector.broadcast %265 : vector<1x8x1xf32> to vector<1x8x8xf32>
    %267 = arith.mulf %262, %266 : vector<1x8x8xf32>
    %268 = arith.truncf %267 : vector<1x8x8xf32> to vector<1x8x8xbf16>
    "tpu.trace_start"() <{level = 10 : i32, message = "bqk,bkd->bqd"}> : () -> ()
    %cst_95 = arith.constant dense<0.000000e+00> : vector<1x8x4xf32>
    %269 = tpu.matmul %268, %254, %cst_95 {dimension_numbers = #tpu.dot_dimension_numbers<[2], [1], [1], [2], [0, 0, 0, 1, 1, 2], [0], [0]>} : vector<1x8x8xbf16>, vector<1x8x4xbf16>, vector<1x8x4xf32> -> vector<1x8x4xf32>
    "tpu.trace_stop"() : () -> ()
    %270 = vector.shape_cast %269 : vector<1x8x4xf32> to vector<8x4xf32>
    %271 = vector.extract_strided_slice %240 {offsets = [0, 4], sizes = [8, 4], strides = [1, 1]} : vector<8x32xbf16> to vector<8x4xbf16>
    %272 = vector.shape_cast %271 : vector<8x4xbf16> to vector<1x8x4xbf16>
    %273 = vector.extract_strided_slice %248 {offsets = [0, 4], sizes = [8, 4], strides = [1, 1]} : vector<8x64xbf16> to vector<8x4xbf16>
    %274 = vector.shape_cast %273 : vector<8x4xbf16> to vector<1x8x4xbf16>
    %275 = vector.extract_strided_slice %248 {offsets = [0, 36], sizes = [8, 4], strides = [1, 1]} : vector<8x64xbf16> to vector<8x4xbf16>
    %276 = vector.shape_cast %275 : vector<8x4xbf16> to vector<1x8x4xbf16>
    "tpu.trace_start"() <{level = 10 : i32, message = "bqd,bkd->bqk"}> : () -> ()
    %cst_96 = arith.constant dense<0.000000e+00> : vector<1x8x8xf32>
    %277 = tpu.matmul %272, %274, %cst_96 {dimension_numbers = #tpu.dot_dimension_numbers<[2], [2], [1], [1], [0, 0, 0, 1, 1, 1], [0], [0]>} : vector<1x8x4xbf16>, vector<1x8x4xbf16>, vector<1x8x8xf32> -> vector<1x8x8xf32>
    "tpu.trace_stop"() : () -> ()
    %cst_97 = arith.constant 5.000000e-01 : f32
    %278 = vector.broadcast %cst_97 : f32 to vector<1x8x8xf32>
    %279 = arith.mulf %277, %278 : vector<1x8x8xf32>
    %cst_98 = arith.constant dense<0xFF800000> : vector<1x8xf32>
    %280 = vector.multi_reduction <maximumf>, %279, %cst_98 [2] : vector<1x8x8xf32> to vector<1x8xf32>
    %281 = vector.shape_cast %280 : vector<1x8xf32> to vector<1x8x1xf32>
    %282 = vector.broadcast %281 : vector<1x8x1xf32> to vector<1x8x8xf32>
    %283 = arith.subf %279, %282 : vector<1x8x8xf32>
    %284 = math.exp %283 : vector<1x8x8xf32>
    %cst_99 = arith.constant dense<0.000000e+00> : vector<1x8xf32>
    %285 = vector.multi_reduction <add>, %284, %cst_99 [2] : vector<1x8x8xf32> to vector<1x8xf32>
    %286 = vector.shape_cast %285 : vector<1x8xf32> to vector<1x8x1xf32>
    %287 = tpu.reciprocal %286 {approx = true} : vector<1x8x1xf32> -> vector<1x8x1xf32>
    %288 = vector.broadcast %287 : vector<1x8x1xf32> to vector<1x8x8xf32>
    %289 = arith.mulf %284, %288 : vector<1x8x8xf32>
    %290 = arith.truncf %289 : vector<1x8x8xf32> to vector<1x8x8xbf16>
    "tpu.trace_start"() <{level = 10 : i32, message = "bqk,bkd->bqd"}> : () -> ()
    %cst_100 = arith.constant dense<0.000000e+00> : vector<1x8x4xf32>
    %291 = tpu.matmul %290, %276, %cst_100 {dimension_numbers = #tpu.dot_dimension_numbers<[2], [1], [1], [2], [0, 0, 0, 1, 1, 2], [0], [0]>} : vector<1x8x8xbf16>, vector<1x8x4xbf16>, vector<1x8x4xf32> -> vector<1x8x4xf32>
    "tpu.trace_stop"() : () -> ()
    %292 = vector.shape_cast %291 : vector<1x8x4xf32> to vector<8x4xf32>
    %293 = vector.extract_strided_slice %240 {offsets = [0, 8], sizes = [8, 4], strides = [1, 1]} : vector<8x32xbf16> to vector<8x4xbf16>
    %294 = vector.shape_cast %293 : vector<8x4xbf16> to vector<1x8x4xbf16>
    %295 = vector.extract_strided_slice %248 {offsets = [0, 8], sizes = [8, 4], strides = [1, 1]} : vector<8x64xbf16> to vector<8x4xbf16>
    %296 = vector.shape_cast %295 : vector<8x4xbf16> to vector<1x8x4xbf16>
    %297 = vector.extract_strided_slice %248 {offsets = [0, 40], sizes = [8, 4], strides = [1, 1]} : vector<8x64xbf16> to vector<8x4xbf16>
    %298 = vector.shape_cast %297 : vector<8x4xbf16> to vector<1x8x4xbf16>
    "tpu.trace_start"() <{level = 10 : i32, message = "bqd,bkd->bqk"}> : () -> ()
    %cst_101 = arith.constant dense<0.000000e+00> : vector<1x8x8xf32>
    %299 = tpu.matmul %294, %296, %cst_101 {dimension_numbers = #tpu.dot_dimension_numbers<[2], [2], [1], [1], [0, 0, 0, 1, 1, 1], [0], [0]>} : vector<1x8x4xbf16>, vector<1x8x4xbf16>, vector<1x8x8xf32> -> vector<1x8x8xf32>
    "tpu.trace_stop"() : () -> ()
    %cst_102 = arith.constant 5.000000e-01 : f32
    %300 = vector.broadcast %cst_102 : f32 to vector<1x8x8xf32>
    %301 = arith.mulf %299, %300 : vector<1x8x8xf32>
    %cst_103 = arith.constant dense<0xFF800000> : vector<1x8xf32>
    %302 = vector.multi_reduction <maximumf>, %301, %cst_103 [2] : vector<1x8x8xf32> to vector<1x8xf32>
    %303 = vector.shape_cast %302 : vector<1x8xf32> to vector<1x8x1xf32>
    %304 = vector.broadcast %303 : vector<1x8x1xf32> to vector<1x8x8xf32>
    %305 = arith.subf %301, %304 : vector<1x8x8xf32>
    %306 = math.exp %305 : vector<1x8x8xf32>
    %cst_104 = arith.constant dense<0.000000e+00> : vector<1x8xf32>
    %307 = vector.multi_reduction <add>, %306, %cst_104 [2] : vector<1x8x8xf32> to vector<1x8xf32>
    %308 = vector.shape_cast %307 : vector<1x8xf32> to vector<1x8x1xf32>
    %309 = tpu.reciprocal %308 {approx = true} : vector<1x8x1xf32> -> vector<1x8x1xf32>
    %310 = vector.broadcast %309 : vector<1x8x1xf32> to vector<1x8x8xf32>
    %311 = arith.mulf %306, %310 : vector<1x8x8xf32>
    %312 = arith.truncf %311 : vector<1x8x8xf32> to vector<1x8x8xbf16>
    "tpu.trace_start"() <{level = 10 : i32, message = "bqk,bkd->bqd"}> : () -> ()
    %cst_105 = arith.constant dense<0.000000e+00> : vector<1x8x4xf32>
    %313 = tpu.matmul %312, %298, %cst_105 {dimension_numbers = #tpu.dot_dimension_numbers<[2], [1], [1], [2], [0, 0, 0, 1, 1, 2], [0], [0]>} : vector<1x8x8xbf16>, vector<1x8x4xbf16>, vector<1x8x4xf32> -> vector<1x8x4xf32>
    "tpu.trace_stop"() : () -> ()
    %314 = vector.shape_cast %313 : vector<1x8x4xf32> to vector<8x4xf32>
    %315 = vector.extract_strided_slice %240 {offsets = [0, 12], sizes = [8, 4], strides = [1, 1]} : vector<8x32xbf16> to vector<8x4xbf16>
    %316 = vector.shape_cast %315 : vector<8x4xbf16> to vector<1x8x4xbf16>
    %317 = vector.extract_strided_slice %248 {offsets = [0, 12], sizes = [8, 4], strides = [1, 1]} : vector<8x64xbf16> to vector<8x4xbf16>
    %318 = vector.shape_cast %317 : vector<8x4xbf16> to vector<1x8x4xbf16>
    %319 = vector.extract_strided_slice %248 {offsets = [0, 44], sizes = [8, 4], strides = [1, 1]} : vector<8x64xbf16> to vector<8x4xbf16>
    %320 = vector.shape_cast %319 : vector<8x4xbf16> to vector<1x8x4xbf16>
    "tpu.trace_start"() <{level = 10 : i32, message = "bqd,bkd->bqk"}> : () -> ()
    %cst_106 = arith.constant dense<0.000000e+00> : vector<1x8x8xf32>
    %321 = tpu.matmul %316, %318, %cst_106 {dimension_numbers = #tpu.dot_dimension_numbers<[2], [2], [1], [1], [0, 0, 0, 1, 1, 1], [0], [0]>} : vector<1x8x4xbf16>, vector<1x8x4xbf16>, vector<1x8x8xf32> -> vector<1x8x8xf32>
    "tpu.trace_stop"() : () -> ()
    %cst_107 = arith.constant 5.000000e-01 : f32
    %322 = vector.broadcast %cst_107 : f32 to vector<1x8x8xf32>
    %323 = arith.mulf %321, %322 : vector<1x8x8xf32>
    %cst_108 = arith.constant dense<0xFF800000> : vector<1x8xf32>
    %324 = vector.multi_reduction <maximumf>, %323, %cst_108 [2] : vector<1x8x8xf32> to vector<1x8xf32>
    %325 = vector.shape_cast %324 : vector<1x8xf32> to vector<1x8x1xf32>
    %326 = vector.broadcast %325 : vector<1x8x1xf32> to vector<1x8x8xf32>
    %327 = arith.subf %323, %326 : vector<1x8x8xf32>
    %328 = math.exp %327 : vector<1x8x8xf32>
    %cst_109 = arith.constant dense<0.000000e+00> : vector<1x8xf32>
    %329 = vector.multi_reduction <add>, %328, %cst_109 [2] : vector<1x8x8xf32> to vector<1x8xf32>
    %330 = vector.shape_cast %329 : vector<1x8xf32> to vector<1x8x1xf32>
    %331 = tpu.reciprocal %330 {approx = true} : vector<1x8x1xf32> -> vector<1x8x1xf32>
    %332 = vector.broadcast %331 : vector<1x8x1xf32> to vector<1x8x8xf32>
    %333 = arith.mulf %328, %332 : vector<1x8x8xf32>
    %334 = arith.truncf %333 : vector<1x8x8xf32> to vector<1x8x8xbf16>
    "tpu.trace_start"() <{level = 10 : i32, message = "bqk,bkd->bqd"}> : () -> ()
    %cst_110 = arith.constant dense<0.000000e+00> : vector<1x8x4xf32>
    %335 = tpu.matmul %334, %320, %cst_110 {dimension_numbers = #tpu.dot_dimension_numbers<[2], [1], [1], [2], [0, 0, 0, 1, 1, 2], [0], [0]>} : vector<1x8x8xbf16>, vector<1x8x4xbf16>, vector<1x8x4xf32> -> vector<1x8x4xf32>
    "tpu.trace_stop"() : () -> ()
    %336 = vector.shape_cast %335 : vector<1x8x4xf32> to vector<8x4xf32>
    %337 = vector.extract_strided_slice %240 {offsets = [0, 16], sizes = [8, 4], strides = [1, 1]} : vector<8x32xbf16> to vector<8x4xbf16>
    %338 = vector.shape_cast %337 : vector<8x4xbf16> to vector<1x8x4xbf16>
    %339 = vector.extract_strided_slice %248 {offsets = [0, 16], sizes = [8, 4], strides = [1, 1]} : vector<8x64xbf16> to vector<8x4xbf16>
    %340 = vector.shape_cast %339 : vector<8x4xbf16> to vector<1x8x4xbf16>
    %341 = vector.extract_strided_slice %248 {offsets = [0, 48], sizes = [8, 4], strides = [1, 1]} : vector<8x64xbf16> to vector<8x4xbf16>
    %342 = vector.shape_cast %341 : vector<8x4xbf16> to vector<1x8x4xbf16>
    "tpu.trace_start"() <{level = 10 : i32, message = "bqd,bkd->bqk"}> : () -> ()
    %cst_111 = arith.constant dense<0.000000e+00> : vector<1x8x8xf32>
    %343 = tpu.matmul %338, %340, %cst_111 {dimension_numbers = #tpu.dot_dimension_numbers<[2], [2], [1], [1], [0, 0, 0, 1, 1, 1], [0], [0]>} : vector<1x8x4xbf16>, vector<1x8x4xbf16>, vector<1x8x8xf32> -> vector<1x8x8xf32>
    "tpu.trace_stop"() : () -> ()
    %cst_112 = arith.constant 5.000000e-01 : f32
    %344 = vector.broadcast %cst_112 : f32 to vector<1x8x8xf32>
    %345 = arith.mulf %343, %344 : vector<1x8x8xf32>
    %cst_113 = arith.constant dense<0xFF800000> : vector<1x8xf32>
    %346 = vector.multi_reduction <maximumf>, %345, %cst_113 [2] : vector<1x8x8xf32> to vector<1x8xf32>
    %347 = vector.shape_cast %346 : vector<1x8xf32> to vector<1x8x1xf32>
    %348 = vector.broadcast %347 : vector<1x8x1xf32> to vector<1x8x8xf32>
    %349 = arith.subf %345, %348 : vector<1x8x8xf32>
    %350 = math.exp %349 : vector<1x8x8xf32>
    %cst_114 = arith.constant dense<0.000000e+00> : vector<1x8xf32>
    %351 = vector.multi_reduction <add>, %350, %cst_114 [2] : vector<1x8x8xf32> to vector<1x8xf32>
    %352 = vector.shape_cast %351 : vector<1x8xf32> to vector<1x8x1xf32>
    %353 = tpu.reciprocal %352 {approx = true} : vector<1x8x1xf32> -> vector<1x8x1xf32>
    %354 = vector.broadcast %353 : vector<1x8x1xf32> to vector<1x8x8xf32>
    %355 = arith.mulf %350, %354 : vector<1x8x8xf32>
    %356 = arith.truncf %355 : vector<1x8x8xf32> to vector<1x8x8xbf16>
    "tpu.trace_start"() <{level = 10 : i32, message = "bqk,bkd->bqd"}> : () -> ()
    %cst_115 = arith.constant dense<0.000000e+00> : vector<1x8x4xf32>
    %357 = tpu.matmul %356, %342, %cst_115 {dimension_numbers = #tpu.dot_dimension_numbers<[2], [1], [1], [2], [0, 0, 0, 1, 1, 2], [0], [0]>} : vector<1x8x8xbf16>, vector<1x8x4xbf16>, vector<1x8x4xf32> -> vector<1x8x4xf32>
    "tpu.trace_stop"() : () -> ()
    %358 = vector.shape_cast %357 : vector<1x8x4xf32> to vector<8x4xf32>
    %359 = vector.extract_strided_slice %240 {offsets = [0, 20], sizes = [8, 4], strides = [1, 1]} : vector<8x32xbf16> to vector<8x4xbf16>
    %360 = vector.shape_cast %359 : vector<8x4xbf16> to vector<1x8x4xbf16>
    %361 = vector.extract_strided_slice %248 {offsets = [0, 20], sizes = [8, 4], strides = [1, 1]} : vector<8x64xbf16> to vector<8x4xbf16>
    %362 = vector.shape_cast %361 : vector<8x4xbf16> to vector<1x8x4xbf16>
    %363 = vector.extract_strided_slice %248 {offsets = [0, 52], sizes = [8, 4], strides = [1, 1]} : vector<8x64xbf16> to vector<8x4xbf16>
    %364 = vector.shape_cast %363 : vector<8x4xbf16> to vector<1x8x4xbf16>
    "tpu.trace_start"() <{level = 10 : i32, message = "bqd,bkd->bqk"}> : () -> ()
    %cst_116 = arith.constant dense<0.000000e+00> : vector<1x8x8xf32>
    %365 = tpu.matmul %360, %362, %cst_116 {dimension_numbers = #tpu.dot_dimension_numbers<[2], [2], [1], [1], [0, 0, 0, 1, 1, 1], [0], [0]>} : vector<1x8x4xbf16>, vector<1x8x4xbf16>, vector<1x8x8xf32> -> vector<1x8x8xf32>
    "tpu.trace_stop"() : () -> ()
    %cst_117 = arith.constant 5.000000e-01 : f32
    %366 = vector.broadcast %cst_117 : f32 to vector<1x8x8xf32>
    %367 = arith.mulf %365, %366 : vector<1x8x8xf32>
    %cst_118 = arith.constant dense<0xFF800000> : vector<1x8xf32>
    %368 = vector.multi_reduction <maximumf>, %367, %cst_118 [2] : vector<1x8x8xf32> to vector<1x8xf32>
    %369 = vector.shape_cast %368 : vector<1x8xf32> to vector<1x8x1xf32>
    %370 = vector.broadcast %369 : vector<1x8x1xf32> to vector<1x8x8xf32>
    %371 = arith.subf %367, %370 : vector<1x8x8xf32>
    %372 = math.exp %371 : vector<1x8x8xf32>
    %cst_119 = arith.constant dense<0.000000e+00> : vector<1x8xf32>
    %373 = vector.multi_reduction <add>, %372, %cst_119 [2] : vector<1x8x8xf32> to vector<1x8xf32>
    %374 = vector.shape_cast %373 : vector<1x8xf32> to vector<1x8x1xf32>
    %375 = tpu.reciprocal %374 {approx = true} : vector<1x8x1xf32> -> vector<1x8x1xf32>
    %376 = vector.broadcast %375 : vector<1x8x1xf32> to vector<1x8x8xf32>
    %377 = arith.mulf %372, %376 : vector<1x8x8xf32>
    %378 = arith.truncf %377 : vector<1x8x8xf32> to vector<1x8x8xbf16>
    "tpu.trace_start"() <{level = 10 : i32, message = "bqk,bkd->bqd"}> : () -> ()
    %cst_120 = arith.constant dense<0.000000e+00> : vector<1x8x4xf32>
    %379 = tpu.matmul %378, %364, %cst_120 {dimension_numbers = #tpu.dot_dimension_numbers<[2], [1], [1], [2], [0, 0, 0, 1, 1, 2], [0], [0]>} : vector<1x8x8xbf16>, vector<1x8x4xbf16>, vector<1x8x4xf32> -> vector<1x8x4xf32>
    "tpu.trace_stop"() : () -> ()
    %380 = vector.shape_cast %379 : vector<1x8x4xf32> to vector<8x4xf32>
    %381 = vector.extract_strided_slice %240 {offsets = [0, 24], sizes = [8, 4], strides = [1, 1]} : vector<8x32xbf16> to vector<8x4xbf16>
    %382 = vector.shape_cast %381 : vector<8x4xbf16> to vector<1x8x4xbf16>
    %383 = vector.extract_strided_slice %248 {offsets = [0, 24], sizes = [8, 4], strides = [1, 1]} : vector<8x64xbf16> to vector<8x4xbf16>
    %384 = vector.shape_cast %383 : vector<8x4xbf16> to vector<1x8x4xbf16>
    %385 = vector.extract_strided_slice %248 {offsets = [0, 56], sizes = [8, 4], strides = [1, 1]} : vector<8x64xbf16> to vector<8x4xbf16>
    %386 = vector.shape_cast %385 : vector<8x4xbf16> to vector<1x8x4xbf16>
    "tpu.trace_start"() <{level = 10 : i32, message = "bqd,bkd->bqk"}> : () -> ()
    %cst_121 = arith.constant dense<0.000000e+00> : vector<1x8x8xf32>
    %387 = tpu.matmul %382, %384, %cst_121 {dimension_numbers = #tpu.dot_dimension_numbers<[2], [2], [1], [1], [0, 0, 0, 1, 1, 1], [0], [0]>} : vector<1x8x4xbf16>, vector<1x8x4xbf16>, vector<1x8x8xf32> -> vector<1x8x8xf32>
    "tpu.trace_stop"() : () -> ()
    %cst_122 = arith.constant 5.000000e-01 : f32
    %388 = vector.broadcast %cst_122 : f32 to vector<1x8x8xf32>
    %389 = arith.mulf %387, %388 : vector<1x8x8xf32>
    %cst_123 = arith.constant dense<0xFF800000> : vector<1x8xf32>
    %390 = vector.multi_reduction <maximumf>, %389, %cst_123 [2] : vector<1x8x8xf32> to vector<1x8xf32>
    %391 = vector.shape_cast %390 : vector<1x8xf32> to vector<1x8x1xf32>
    %392 = vector.broadcast %391 : vector<1x8x1xf32> to vector<1x8x8xf32>
    %393 = arith.subf %389, %392 : vector<1x8x8xf32>
    %394 = math.exp %393 : vector<1x8x8xf32>
    %cst_124 = arith.constant dense<0.000000e+00> : vector<1x8xf32>
    %395 = vector.multi_reduction <add>, %394, %cst_124 [2] : vector<1x8x8xf32> to vector<1x8xf32>
    %396 = vector.shape_cast %395 : vector<1x8xf32> to vector<1x8x1xf32>
    %397 = tpu.reciprocal %396 {approx = true} : vector<1x8x1xf32> -> vector<1x8x1xf32>
    %398 = vector.broadcast %397 : vector<1x8x1xf32> to vector<1x8x8xf32>
    %399 = arith.mulf %394, %398 : vector<1x8x8xf32>
    %400 = arith.truncf %399 : vector<1x8x8xf32> to vector<1x8x8xbf16>
    "tpu.trace_start"() <{level = 10 : i32, message = "bqk,bkd->bqd"}> : () -> ()
    %cst_125 = arith.constant dense<0.000000e+00> : vector<1x8x4xf32>
    %401 = tpu.matmul %400, %386, %cst_125 {dimension_numbers = #tpu.dot_dimension_numbers<[2], [1], [1], [2], [0, 0, 0, 1, 1, 2], [0], [0]>} : vector<1x8x8xbf16>, vector<1x8x4xbf16>, vector<1x8x4xf32> -> vector<1x8x4xf32>
    "tpu.trace_stop"() : () -> ()
    %402 = vector.shape_cast %401 : vector<1x8x4xf32> to vector<8x4xf32>
    %403 = vector.extract_strided_slice %240 {offsets = [0, 28], sizes = [8, 4], strides = [1, 1]} : vector<8x32xbf16> to vector<8x4xbf16>
    %404 = vector.shape_cast %403 : vector<8x4xbf16> to vector<1x8x4xbf16>
    %405 = vector.extract_strided_slice %248 {offsets = [0, 28], sizes = [8, 4], strides = [1, 1]} : vector<8x64xbf16> to vector<8x4xbf16>
    %406 = vector.shape_cast %405 : vector<8x4xbf16> to vector<1x8x4xbf16>
    %407 = vector.extract_strided_slice %248 {offsets = [0, 60], sizes = [8, 4], strides = [1, 1]} : vector<8x64xbf16> to vector<8x4xbf16>
    %408 = vector.shape_cast %407 : vector<8x4xbf16> to vector<1x8x4xbf16>
    "tpu.trace_start"() <{level = 10 : i32, message = "bqd,bkd->bqk"}> : () -> ()
    %cst_126 = arith.constant dense<0.000000e+00> : vector<1x8x8xf32>
    %409 = tpu.matmul %404, %406, %cst_126 {dimension_numbers = #tpu.dot_dimension_numbers<[2], [2], [1], [1], [0, 0, 0, 1, 1, 1], [0], [0]>} : vector<1x8x4xbf16>, vector<1x8x4xbf16>, vector<1x8x8xf32> -> vector<1x8x8xf32>
    "tpu.trace_stop"() : () -> ()
    %cst_127 = arith.constant 5.000000e-01 : f32
    %410 = vector.broadcast %cst_127 : f32 to vector<1x8x8xf32>
    %411 = arith.mulf %409, %410 : vector<1x8x8xf32>
    %cst_128 = arith.constant dense<0xFF800000> : vector<1x8xf32>
    %412 = vector.multi_reduction <maximumf>, %411, %cst_128 [2] : vector<1x8x8xf32> to vector<1x8xf32>
    %413 = vector.shape_cast %412 : vector<1x8xf32> to vector<1x8x1xf32>
    %414 = vector.broadcast %413 : vector<1x8x1xf32> to vector<1x8x8xf32>
    %415 = arith.subf %411, %414 : vector<1x8x8xf32>
    %416 = math.exp %415 : vector<1x8x8xf32>
    %cst_129 = arith.constant dense<0.000000e+00> : vector<1x8xf32>
    %417 = vector.multi_reduction <add>, %416, %cst_129 [2] : vector<1x8x8xf32> to vector<1x8xf32>
    %418 = vector.shape_cast %417 : vector<1x8xf32> to vector<1x8x1xf32>
    %419 = tpu.reciprocal %418 {approx = true} : vector<1x8x1xf32> -> vector<1x8x1xf32>
    %420 = vector.broadcast %419 : vector<1x8x1xf32> to vector<1x8x8xf32>
    %421 = arith.mulf %416, %420 : vector<1x8x8xf32>
    %422 = arith.truncf %421 : vector<1x8x8xf32> to vector<1x8x8xbf16>
    "tpu.trace_start"() <{level = 10 : i32, message = "bqk,bkd->bqd"}> : () -> ()
    %cst_130 = arith.constant dense<0.000000e+00> : vector<1x8x4xf32>
    %423 = tpu.matmul %422, %408, %cst_130 {dimension_numbers = #tpu.dot_dimension_numbers<[2], [1], [1], [2], [0, 0, 0, 1, 1, 2], [0], [0]>} : vector<1x8x8xbf16>, vector<1x8x4xbf16>, vector<1x8x4xf32> -> vector<1x8x4xf32>
    "tpu.trace_stop"() : () -> ()
    %424 = vector.shape_cast %423 : vector<1x8x4xf32> to vector<8x4xf32>
    %425 = tpu.concatenate %270, %292, %314, %336, %358, %380, %402, %424 in 1 : vector<8x4xf32>, vector<8x4xf32>, vector<8x4xf32>, vector<8x4xf32>, vector<8x4xf32>, vector<8x4xf32>, vector<8x4xf32>, vector<8x4xf32> -> vector<8x32xf32>
    %426 = arith.truncf %425 : vector<8x32xf32> to vector<8x32xbf16>
    %c0_131 = arith.constant 0 : index
    %c0_132 = arith.constant 0 : index
    %c0_133 = arith.constant 0 : index
    %427 = vector.load %arg14[%c0_131, %c0_132, %c0_133] : memref<1x32x32xbf16, #tpu.memory_space<vmem>>, vector<1x32x32xbf16>
    %428 = vector.shape_cast %427 : vector<1x32x32xbf16> to vector<32x32xbf16>
    %cst_134 = arith.constant dense<0.000000e+00> : vector<8x32xf32>
    %429 = tpu.matmul %426, %428, %cst_134 {dimension_numbers = #tpu.dot_dimension_numbers<[1], [0], [0], [1], [0, 0, 1, 1], [], []>} : vector<8x32xbf16>, vector<32x32xbf16>, vector<8x32xf32> -> vector<8x32xf32>
    %c0_135 = arith.constant 0 : index
    %c0_136 = arith.constant 0 : index
    %c0_137 = arith.constant 0 : index
    %430 = vector.load %arg15[%c0_135, %c0_136, %c0_137] : memref<1x1x32xf32, #tpu.memory_space<vmem>>, vector<1x1x32xf32>
    %431 = vector.shape_cast %430 : vector<1x1x32xf32> to vector<1x32xf32>
    %432 = vector.broadcast %431 : vector<1x32xf32> to vector<8x32xf32>
    %433 = arith.addf %429, %432 : vector<8x32xf32>
    %434 = arith.addf %231, %433 : vector<8x32xf32>
    %cst_138 = arith.constant dense<0.000000e+00> : vector<8xf32>
    %435 = vector.multi_reduction <add>, %434, %cst_138 [1] : vector<8x32xf32> to vector<8xf32>
    %436 = vector.shape_cast %435 : vector<8xf32> to vector<8x1xf32>
    %cst_139 = arith.constant 3.200000e+01 : f32
    %437 = vector.broadcast %cst_139 : f32 to vector<8x1xf32>
    %438 = arith.divf %436, %437 : vector<8x1xf32>
    %439 = vector.broadcast %438 : vector<8x1xf32> to vector<8x32xf32>
    %440 = arith.subf %434, %439 : vector<8x32xf32>
    %441 = arith.mulf %440, %440 : vector<8x32xf32>
    %cst_140 = arith.constant dense<0.000000e+00> : vector<8xf32>
    %442 = vector.multi_reduction <add>, %441, %cst_140 [1] : vector<8x32xf32> to vector<8xf32>
    %443 = vector.shape_cast %442 : vector<8xf32> to vector<8x1xf32>
    %cst_141 = arith.constant 3.200000e+01 : f32
    %444 = vector.broadcast %cst_141 : f32 to vector<8x1xf32>
    %445 = arith.divf %443, %444 : vector<8x1xf32>
    %cst_142 = arith.constant 9.99999974E-6 : f32
    %446 = vector.broadcast %cst_142 : f32 to vector<8x1xf32>
    %447 = arith.addf %445, %446 : vector<8x1xf32>
    %448 = math.rsqrt %447 : vector<8x1xf32>
    %449 = vector.broadcast %448 : vector<8x1xf32> to vector<8x32xf32>
    %450 = arith.mulf %440, %449 : vector<8x32xf32>
    %c0_143 = arith.constant 0 : index
    %c1 = arith.constant 1 : index
    %c0_144 = arith.constant 0 : index
    %c0_145 = arith.constant 0 : index
    %451 = vector.load %arg20[%c0_143, %c1, %c0_144, %c0_145] : memref<1x3x1x32xf32, #tpu.memory_space<vmem>>, vector<1x1x1x32xf32>
    %452 = vector.shape_cast %451 : vector<1x1x1x32xf32> to vector<1x32xf32>
    %453 = vector.broadcast %452 : vector<1x32xf32> to vector<8x32xf32>
    %454 = arith.mulf %450, %453 : vector<8x32xf32>
    %c0_146 = arith.constant 0 : index
    %c1_147 = arith.constant 1 : index
    %c0_148 = arith.constant 0 : index
    %c0_149 = arith.constant 0 : index
    %455 = vector.load %arg21[%c0_146, %c1_147, %c0_148, %c0_149] : memref<1x3x1x32xf32, #tpu.memory_space<vmem>>, vector<1x1x1x32xf32>
    %456 = vector.shape_cast %455 : vector<1x1x1x32xf32> to vector<1x32xf32>
    %457 = vector.broadcast %456 : vector<1x32xf32> to vector<8x32xf32>
    %458 = arith.addf %454, %457 : vector<8x32xf32>
    %459 = arith.truncf %458 : vector<8x32xf32> to vector<8x32xbf16>
    %c0_150 = arith.constant 0 : index
    %c0_151 = arith.constant 0 : index
    %c0_152 = arith.constant 0 : index
    %460 = vector.load %arg16[%c0_150, %c0_151, %c0_152] : memref<1x32x1024xbf16, #tpu.memory_space<vmem>>, vector<1x32x1024xbf16>
    %461 = vector.shape_cast %460 : vector<1x32x1024xbf16> to vector<32x1024xbf16>
    %cst_153 = arith.constant dense<0.000000e+00> : vector<8x1024xf32>
    %462 = tpu.matmul %459, %461, %cst_153 {dimension_numbers = #tpu.dot_dimension_numbers<[1], [0], [0], [1], [0, 0, 1, 1], [], []>} : vector<8x32xbf16>, vector<32x1024xbf16>, vector<8x1024xf32> -> vector<8x1024xf32>
    %c0_154 = arith.constant 0 : index
    %c0_155 = arith.constant 0 : index
    %c0_156 = arith.constant 0 : index
    %463 = vector.load %arg17[%c0_154, %c0_155, %c0_156] : memref<1x1x1024xf32, #tpu.memory_space<vmem>>, vector<1x1x1024xf32>
    %464 = vector.shape_cast %463 : vector<1x1x1024xf32> to vector<1x1024xf32>
    %465 = vector.broadcast %464 : vector<1x1024xf32> to vector<8x1024xf32>
    %466 = arith.addf %462, %465 : vector<8x1024xf32>
    %cst_157 = arith.constant 0.000000e+00 : f32
    %467 = vector.broadcast %cst_157 : f32 to vector<8x1024xf32>
    %468 = arith.maximumf %466, %467 : vector<8x1024xf32>
    %469 = arith.truncf %468 : vector<8x1024xf32> to vector<8x1024xbf16>
    %c0_158 = arith.constant 0 : index
    %c0_159 = arith.constant 0 : index
    %c0_160 = arith.constant 0 : index
    %470 = vector.load %arg18[%c0_158, %c0_159, %c0_160] : memref<1x1024x32xbf16, #tpu.memory_space<vmem>>, vector<1x1024x32xbf16>
    %471 = vector.shape_cast %470 : vector<1x1024x32xbf16> to vector<1024x32xbf16>
    %cst_161 = arith.constant dense<0.000000e+00> : vector<8x32xf32>
    %472 = tpu.matmul %469, %471, %cst_161 {dimension_numbers = #tpu.dot_dimension_numbers<[1], [0], [0], [1], [0, 0, 1, 1], [], []>} : vector<8x1024xbf16>, vector<1024x32xbf16>, vector<8x32xf32> -> vector<8x32xf32>
    %c0_162 = arith.constant 0 : index
    %c0_163 = arith.constant 0 : index
    %c0_164 = arith.constant 0 : index
    %473 = vector.load %arg19[%c0_162, %c0_163, %c0_164] : memref<1x1x32xf32, #tpu.memory_space<vmem>>, vector<1x1x32xf32>
    %474 = vector.shape_cast %473 : vector<1x1x32xf32> to vector<1x32xf32>
    %475 = vector.broadcast %474 : vector<1x32xf32> to vector<8x32xf32>
    %476 = arith.addf %472, %475 : vector<8x32xf32>
    %477 = arith.addf %458, %476 : vector<8x32xf32>
    %cst_165 = arith.constant dense<0.000000e+00> : vector<8xf32>
    %478 = vector.multi_reduction <add>, %477, %cst_165 [1] : vector<8x32xf32> to vector<8xf32>
    %479 = vector.shape_cast %478 : vector<8xf32> to vector<8x1xf32>
    %cst_166 = arith.constant 3.200000e+01 : f32
    %480 = vector.broadcast %cst_166 : f32 to vector<8x1xf32>
    %481 = arith.divf %479, %480 : vector<8x1xf32>
    %482 = vector.broadcast %481 : vector<8x1xf32> to vector<8x32xf32>
    %483 = arith.subf %477, %482 : vector<8x32xf32>
    %484 = arith.mulf %483, %483 : vector<8x32xf32>
    %cst_167 = arith.constant dense<0.000000e+00> : vector<8xf32>
    %485 = vector.multi_reduction <add>, %484, %cst_167 [1] : vector<8x32xf32> to vector<8xf32>
    %486 = vector.shape_cast %485 : vector<8xf32> to vector<8x1xf32>
    %cst_168 = arith.constant 3.200000e+01 : f32
    %487 = vector.broadcast %cst_168 : f32 to vector<8x1xf32>
    %488 = arith.divf %486, %487 : vector<8x1xf32>
    %cst_169 = arith.constant 9.99999974E-6 : f32
    %489 = vector.broadcast %cst_169 : f32 to vector<8x1xf32>
    %490 = arith.addf %488, %489 : vector<8x1xf32>
    %491 = math.rsqrt %490 : vector<8x1xf32>
    %492 = vector.broadcast %491 : vector<8x1xf32> to vector<8x32xf32>
    %493 = arith.mulf %483, %492 : vector<8x32xf32>
    %c0_170 = arith.constant 0 : index
    %c2 = arith.constant 2 : index
    %c0_171 = arith.constant 0 : index
    %c0_172 = arith.constant 0 : index
    %494 = vector.load %arg20[%c0_170, %c2, %c0_171, %c0_172] : memref<1x3x1x32xf32, #tpu.memory_space<vmem>>, vector<1x1x1x32xf32>
    %495 = vector.shape_cast %494 : vector<1x1x1x32xf32> to vector<1x32xf32>
    %496 = vector.broadcast %495 : vector<1x32xf32> to vector<8x32xf32>
    %497 = arith.mulf %493, %496 : vector<8x32xf32>
    %c0_173 = arith.constant 0 : index
    %c2_174 = arith.constant 2 : index
    %c0_175 = arith.constant 0 : index
    %c0_176 = arith.constant 0 : index
    %498 = vector.load %arg21[%c0_173, %c2_174, %c0_175, %c0_176] : memref<1x3x1x32xf32, #tpu.memory_space<vmem>>, vector<1x1x1x32xf32>
    %499 = vector.shape_cast %498 : vector<1x1x1x32xf32> to vector<1x32xf32>
    %500 = vector.broadcast %499 : vector<1x32xf32> to vector<8x32xf32>
    %501 = arith.addf %497, %500 : vector<8x32xf32>
    %c0_177 = arith.constant 0 : index
    %c0_178 = arith.constant 0 : index
    %502 = vector.load %arg22[%c0_177, %c0_178] : memref<8x32xf32, #tpu.memory_space<vmem>>, vector<8x32xf32>
    tpu.vector_store %arg22[%c0_177, %c0_178], %501 {strides = array<i32>} : memref<8x32xf32, #tpu.memory_space<vmem>>, vector<8x32xf32>,
    return
  }
  func.func @transform_1(%arg0: i32, %arg1: i32) -> (i32, i32) {
    %c0_i32 = arith.constant 0 : i32
    %c0_i32_0 = arith.constant 0 : i32
    return %arg0, %c0_i32 : i32, i32
  }
  func.func @transform_2(%arg0: i32, %arg1: i32) -> (i32, i32, i32) {
    %c0_i32 = arith.constant 0 : i32
    %c0_i32_0 = arith.constant 0 : i32
    %c0_i32_1 = arith.constant 0 : i32
    return %arg1, %c0_i32, %c0_i32_0 : i32, i32, i32
  }
  func.func @transform_3(%arg0: i32, %arg1: i32) -> (i32, i32, i32) {
    %c0_i32 = arith.constant 0 : i32
    %c0_i32_0 = arith.constant 0 : i32
    %c0_i32_1 = arith.constant 0 : i32
    return %arg1, %c0_i32, %c0_i32_0 : i32, i32, i32
  }
  func.func @transform_4(%arg0: i32, %arg1: i32) -> (i32, i32, i32) {
    %c0_i32 = arith.constant 0 : i32
    %c0_i32_0 = arith.constant 0 : i32
    %c0_i32_1 = arith.constant 0 : i32
    return %arg1, %c0_i32, %c0_i32_0 : i32, i32, i32
  }
  func.func @transform_5(%arg0: i32, %arg1: i32) -> (i32, i32, i32) {
    %c0_i32 = arith.constant 0 : i32
    %c0_i32_0 = arith.constant 0 : i32
    %c0_i32_1 = arith.constant 0 : i32
    return %arg1, %c0_i32, %c0_i32_0 : i32, i32, i32
  }
  func.func @transform_6(%arg0: i32, %arg1: i32) -> (i32, i32, i32) {
    %c0_i32 = arith.constant 0 : i32
    %c0_i32_0 = arith.constant 0 : i32
    %c0_i32_1 = arith.constant 0 : i32
    return %arg1, %c0_i32, %c0_i32_0 : i32, i32, i32
  }
  func.func @transform_7(%arg0: i32, %arg1: i32) -> (i32, i32, i32) {
    %c0_i32 = arith.constant 0 : i32
    %c0_i32_0 = arith.constant 0 : i32
    %c0_i32_1 = arith.constant 0 : i32
    return %arg1, %c0_i32, %c0_i32_0 : i32, i32, i32
  }
  func.func @transform_8(%arg0: i32, %arg1: i32) -> (i32, i32, i32) {
    %c0_i32 = arith.constant 0 : i32
    %c0_i32_0 = arith.constant 0 : i32
    %c0_i32_1 = arith.constant 0 : i32
    return %arg1, %c0_i32, %c0_i32_0 : i32, i32, i32
  }
  func.func @transform_9(%arg0: i32, %arg1: i32) -> (i32, i32, i32) {
    %c0_i32 = arith.constant 0 : i32
    %c0_i32_0 = arith.constant 0 : i32
    %c0_i32_1 = arith.constant 0 : i32
    return %arg1, %c0_i32, %c0_i32_0 : i32, i32, i32
  }
  func.func @transform_10(%arg0: i32, %arg1: i32) -> (i32, i32, i32) {
    %c0_i32 = arith.constant 0 : i32
    %c0_i32_0 = arith.constant 0 : i32
    %c0_i32_1 = arith.constant 0 : i32
    return %arg1, %c0_i32, %c0_i32_0 : i32, i32, i32
  }
  func.func @transform_11(%arg0: i32, %arg1: i32) -> (i32, i32, i32) {
    %c0_i32 = arith.constant 0 : i32
    %c0_i32_0 = arith.constant 0 : i32
    %c0_i32_1 = arith.constant 0 : i32
    return %arg1, %c0_i32, %c0_i32_0 : i32, i32, i32
  }
  func.func @transform_12(%arg0: i32, %arg1: i32) -> (i32, i32, i32) {
    %c0_i32 = arith.constant 0 : i32
    %c0_i32_0 = arith.constant 0 : i32
    %c0_i32_1 = arith.constant 0 : i32
    return %arg1, %c0_i32, %c0_i32_0 : i32, i32, i32
  }
  func.func @transform_13(%arg0: i32, %arg1: i32) -> (i32, i32, i32) {
    %c0_i32 = arith.constant 0 : i32
    %c0_i32_0 = arith.constant 0 : i32
    %c0_i32_1 = arith.constant 0 : i32
    return %arg1, %c0_i32, %c0_i32_0 : i32, i32, i32
  }
  func.func @transform_14(%arg0: i32, %arg1: i32) -> (i32, i32, i32) {
    %c0_i32 = arith.constant 0 : i32
    %c0_i32_0 = arith.constant 0 : i32
    %c0_i32_1 = arith.constant 0 : i32
    return %arg1, %c0_i32, %c0_i32_0 : i32, i32, i32
  }
  func.func @transform_15(%arg0: i32, %arg1: i32) -> (i32, i32, i32) {
    %c0_i32 = arith.constant 0 : i32
    %c0_i32_0 = arith.constant 0 : i32
    %c0_i32_1 = arith.constant 0 : i32
    return %arg1, %c0_i32, %c0_i32_0 : i32, i32, i32
  }
  func.func @transform_16(%arg0: i32, %arg1: i32) -> (i32, i32, i32) {
    %c0_i32 = arith.constant 0 : i32
    %c0_i32_0 = arith.constant 0 : i32
    %c0_i32_1 = arith.constant 0 : i32
    return %arg1, %c0_i32, %c0_i32_0 : i32, i32, i32
  }
  func.func @transform_17(%arg0: i32, %arg1: i32) -> (i32, i32, i32) {
    %c0_i32 = arith.constant 0 : i32
    %c0_i32_0 = arith.constant 0 : i32
    %c0_i32_1 = arith.constant 0 : i32
    return %arg1, %c0_i32, %c0_i32_0 : i32, i32, i32
  }
  func.func @transform_18(%arg0: i32, %arg1: i32) -> (i32, i32, i32, i32) {
    %c0_i32 = arith.constant 0 : i32
    %c0_i32_0 = arith.constant 0 : i32
    %c0_i32_1 = arith.constant 0 : i32
    %c0_i32_2 = arith.constant 0 : i32
    return %arg1, %c0_i32, %c0_i32_0, %c0_i32_1 : i32, i32, i32, i32
  }
  func.func @transform_19(%arg0: i32, %arg1: i32) -> (i32, i32, i32, i32) {
    %c0_i32 = arith.constant 0 : i32
    %c0_i32_0 = arith.constant 0 : i32
    %c0_i32_1 = arith.constant 0 : i32
    %c0_i32_2 = arith.constant 0 : i32
    return %arg1, %c0_i32, %c0_i32_0, %c0_i32_1 : i32, i32, i32, i32
  }
  func.func @transform_20(%arg0: i32, %arg1: i32) -> (i32, i32) {
    %c0_i32 = arith.constant 0 : i32
    %c0_i32_0 = arith.constant 0 : i32
    return %arg0, %c0_i32 : i32, i32
  }
}

</mosaic_0001>

<bundles_post_ra>
// kernel: _lambda_.3
= control target key start
LH: loop header
LB: loop body
LE: loop exit
PB: predicated region body
PF: predicated region fallthrough
CT: control target
= control target key end

     0   :  { %vm80_vm0 = vcmask 261120   ;;  %s299_s1 = inlined_call_operand.vmem [shape: bf16[32,512], index: 1, kind: input, shape index: {}]   ;;  %s300_s0 = inlined_call_operand.vmem [shape: bf16[16,32], index: 0, kind: input, shape index: {}]   ;;  %s301_s2 = inlined_call_operand.vmem [shape: f32[1,512], index: 2, kind: input, shape index: {}]   ;;  %s302_s3 = inlined_call_operand.vmem [shape: f32[16,512], index: 3, kind: output, shape index: {}]  }
   0x1   :  { %v174_v0 = vld [vmem:[%s299_s1 + $0x20] sm:$0xf]  ;;  %v199_v1 = vld [vmem:[%s299_s1 + $0x2c] sm:$0xf0]  ;;  %v197_v2 = vld [vmem:[%s299_s1 + $0x24] sm:$0xf] }
   0x2   :  { %v175_v3 = vor.u32 %v199_v1, %v174_v0  ;;  %v176_v4 = vld [vmem:[%s299_s1 + $0x30] sm:$0xf0]  ;;  %v182_v5 = vld [vmem:[%s299_s1 + $0x28] sm:$0xf]  ;;  %v200_v6 = vld [vmem:[%s299_s1 + $0x34] sm:$0xf0] }
   0x3   :  { %v179_v7 = vor.u32 %v197_v2, %v176_v4  ;;  %v183_v8 = vor.u32 %v200_v6, %v182_v5  ;;  %v198_v9 = vld [vmem:[%s299_s1 + $0x2c] sm:$0xf]  ;;  %v184_v10 = vld [vmem:[%s299_s1 + $0x38] sm:$0xf0]  ;;  %v158_v11 = vld [vmem:[%s299_s1] sm:$0xf] }
   0x4   :  { %90 = vmatpush.bf16.msra.mxu0 %v175_v3  ;;  %v187_v12 = vor.u32 %v198_v9, %v184_v10  ;;  %v195_v13 = vld [vmem:[%s299_s1 + $0xc] sm:$0xf0]  ;;  %v193_v14 = vld [vmem:[%s299_s1 + $0x4] sm:$0xf]  ;;  %v160_v15 = vld [vmem:[%s299_s1 + $0x10] sm:$0xf0] }
   0x5   :  { %104 = vmatpush.bf16.msra.mxu1 %v179_v7  ;;  %118 = vmatpush.bf16.msra.mxu2 %v183_v8  ;;  %v159_v16 = vor.u32 %v195_v13, %v158_v11  ;;  %v163_v17 = vor.u32 %v193_v14, %v160_v15  ;;  %v166_v18 = vld [vmem:[%s299_s1 + $0x8] sm:$0xf]  ;;  %v196_v19 = vld [vmem:[%s299_s1 + $0x14] sm:$0xf0]  ;;  %v194_v20 = vld [vmem:[%s299_s1 + $0xc] sm:$0xf] }
   0x6   :  { %132 = vmatpush.bf16.msra.mxu3 %v187_v12  ;;  %v167_v21 = vor.u32 %v196_v19, %v166_v18  ;;  %v168_v22 = vld [vmem:[%s299_s1 + $0x18] sm:$0xf0]  ;;  %v192_v24 = vld [vmem:[%s300_s0] sm:$0xff] }
   0x7   :  { %v171_v23 = vor.u32 %v194_v20, %v168_v22  ;;  %v25_v25 = vld [vmem:[%s301_s2] sm:$0xf] }
   0x8   :  { %91 = vmatpush.bf16.msra.mxu0 %v159_v16  ;;  %v27_v26 = vperm.slane %v25_v25, 0  ;;  %v28_v27 = vperm.slane %v25_v25, 1  ;;  %v29_v32 = vperm.slane %v25_v25, 2  ;;  %v30_v33 = vperm.slane %v25_v25, 3 }
   0x9   :  { %105 = vmatpush.bf16.msra.mxu1 %v163_v17  ;;  %119 = vmatpush.bf16.msra.mxu2 %v167_v21 }
   0xa   :  { %133 = vmatpush.bf16.msra.mxu3 %v171_v23 }
   0xb   :  { %188 = vmatmul.msk.bf16.vlgmr.msra.gmra.mxu0 %vm80_vm0, %v192_v24 }
   0xc   :  { %189 = vmatmul.msk.bf16.vlgmr.msra.gmra.mxu1 %vm80_vm0, %v192_v24  ;;  %190 = vmatmul.msk.bf16.vlgmr.msra.gmra.mxu2 %vm80_vm0, %v192_v24 }
   0xd   :  { %191 = vmatmul.msk.bf16.vlgmr.msra.gmra.mxu3 %vm80_vm0, %v192_v24 }
  0x88   :  { %v93_v28 = vpop.f32.mrf.mxu0 }
  0x89   :  { %v94_v29 = vadd.f32 %v93_v28, %v27_v26  ;;  %v107_v30 = vpop.f32.mrf.mxu1 }
  0x8a   :  { %v108_v31 = vadd.f32 %v107_v30, %v28_v27 }
  0x8b   :  { %140 = vst [vmem:[%s302_s3] sm:$0xff] %v94_v29 }
  0x8c   :  { %141 = vst [vmem:[%s302_s3 + $0x8] sm:$0xff] %v108_v31 }
  0x8f   :  { %v121_v34 = vpop.f32.mrf.mxu2 }
  0x90   :  { %v122_v35 = vadd.f32 %v121_v34, %v29_v32  ;;  %v135_v36 = vpop.f32.mrf.mxu3  ;;  %v95_v37 = vpop.f32.mrf.mxu0 }
  0x91   :  { %v136_v38 = vadd.f32 %v135_v36, %v30_v33  ;;  %v96_v39 = vadd.f32 %v95_v37, %v27_v26  ;;  %v109_v40 = vpop.f32.mrf.mxu1 }
  0x92   :  { %142 = vst [vmem:[%s302_s3 + $0x10] sm:$0xff] %v122_v35  ;;  %v110_v41 = vadd.f32 %v109_v40, %v28_v27 }
  0x93   :  { %143 = vst [vmem:[%s302_s3 + $0x18] sm:$0xff] %v136_v38 }
  0x94   :  { %144 = vst [vmem:[%s302_s3 + $0x20] sm:$0xff] %v96_v39 }
  0x95   :  { %145 = vst [vmem:[%s302_s3 + $0x28] sm:$0xff] %v110_v41 }
  0x97   :  { %v123_v42 = vpop.f32.mrf.mxu2 }
  0x98   :  { %v124_v43 = vadd.f32 %v123_v42, %v29_v32  ;;  %v137_v44 = vpop.f32.mrf.mxu3 }
  0x99   :  { %v138_v45 = vadd.f32 %v137_v44, %v30_v33 }
  0x9a   :  { %146 = vst [vmem:[%s302_s3 + $0x30] sm:$0xff] %v124_v43 }
  0x9b   :  { %147 = vst [vmem:[%s302_s3 + $0x38] sm:$0xff] %v138_v45 }

// kernel: _lambda_.2
= control target key start
LH: loop header
LB: loop body
LE: loop exit
PB: predicated region body
PF: predicated region fallthrough
CT: control target
= control target key end

     0   :  { %s5328_s0 = inlined_call_operand.vmem [shape: f32[16,32], index: 0, kind: input, shape index: {}]   ;;  %s5329_s1 = inlined_call_operand.vmem [shape: bf16[16,32], index: 1, kind: input, shape index: {}]   ;;  %s5330_s2 = inlined_call_operand.hbm [shape: bf16[2,32,32], index: 2, kind: input, shape index: {}]   ;;  %s5331_s3 = inlined_call_operand.hbm [shape: f32[2,1,32], index: 3, kind: input, shape index: {}]   ;;  %s5332_s4 = inlined_call_operand.vmem [shape: bf16[2,32,64], index: 4, kind: input, shape index: {}]   ;;  %s5333_s5 = inlined_call_operand.vmem [shape: f32[2,1,64], index: 5, kind: input, shape index: {}]   ;;  %s5334_s6 = inlined_call_operand.vmem [shape: bf16[2,32,32], index: 6, kind: input, shape index: {}]   ;;  %s5335_s7 = inlined_call_operand.vmem [shape: f32[2,1,32], index: 7, kind: input, shape index: {}]   ;;  %s5336_s8 = inlined_call_operand.vmem [shape: bf16[2,32,32], index: 8, kind: input, shape index: {}]   ;;  %s5337_s9 = inlined_call_operand.vmem [shape: f32[2,1,32], index: 9, kind: input, shape index: {}]   ;;  %s5338_s10 = inlined_call_operand.vmem [shape: bf16[2,32,64], index: 10, kind: input, shape index: {}]   ;;  %s5339_s11 = inlined_call_operand.vmem [shape: f32[2,1,64], index: 11, kind: input, shape index: {}]   ;;  %s5340_s12 = inlined_call_operand.vmem [shape: bf16[2,32,32], index: 12, kind: input, shape index: {}]   ;;  %s5341_s13 = inlined_call_operand.vmem [shape: f32[2,1,32], index: 13, kind: input, shape index: {}]   ;;  %s5342_s14 = inlined_call_operand.hbm [shape: bf16[2,32,1024], index: 14, kind: input, shape index: {}]   ;;  %s5343_s15 = inlined_call_operand.vmem [shape: f32[2,1,1024], index: 15, kind: input, shape index: {}]   ;;  %s5344_s16 = inlined_call_operand.hbm [shape: bf16[2,1024,32], index: 16, kind: input, shape index: {}]   ;;  %s5345_s17 = inlined_call_operand.vmem [shape: f32[2,1,32], index: 17, kind: input, shape index: {}]   ;;  %s5346_s18 = inlined_call_operand.vmem [shape: f32[2,3,1,32], index: 18, kind: input, shape index: {}]   ;;  %s5347_s19 = inlined_call_operand.vmem [shape: f32[2,3,1,32], index: 19, kind: input, shape index: {}]   ;;  %s5348_s20 = inlined_call_operand.vmem [shape: f32[16,32], index: 20, kind: output, shape index: {}]  }
   0x1   :  { %5365 = sst [smem:[#allocation28_spill]] %s5328_s0 }
   0x2   :  { %5366 = sst [smem:[#allocation29_spill]] %s5329_s1 }
   0x3   :  { %5367 = sst [smem:[#allocation30_spill]] %s5330_s2 }
   0x4   :  { %5368 = sst [smem:[#allocation31_spill]] %s5331_s3 }
   0x5   :  { %5369 = sst [smem:[#allocation32_spill]] %s5332_s4 }
   0x6   :  { %5370 = sst [smem:[#allocation33_spill]] %s5334_s6 }
   0x7   :  { %5371 = sst [smem:[#allocation34_spill]] %s5335_s7 }
   0x8   :  { %5372 = sst [smem:[#allocation35_spill]] %s5336_s8 }
   0x9   :  { %5373 = sst [smem:[#allocation36_spill]] %s5337_s9 }
   0xa   :  { %5374 = sst [smem:[#allocation37_spill]] %s5338_s10 }
   0xb   :  { %5375 = sst [smem:[#allocation38_spill]] %s5339_s11 }
   0xc   :  { %5376 = sst [smem:[#allocation39_spill]] %s5340_s12 }
   0xd   :  { %5377 = sst [smem:[#allocation40_spill]] %s5341_s13 }
   0xe   :  { %5378 = sst [smem:[#allocation41_spill]] %s5342_s14 }
   0xf   :  { %5379 = sst [smem:[#allocation42_spill]] %s5343_s15 }
  0x10   :  { %5380 = sst [smem:[#allocation43_spill]] %s5344_s16 }
  0x11   :  { %5381 = sst [smem:[#allocation44_spill]] %s5345_s17 }
  0x12   :  { %5382 = sst [smem:[#allocation45_spill]] %s5346_s18 }
  0x13   :  { %5383 = sst [smem:[#allocation46_spill]] %s5347_s19 }
  0x14   :  { %5384 = sst [smem:[#allocation47_spill]] %s5348_s20 }
  0x15   :  { %25 = vsyncpa [#allocation3], 0 }
  0x16   :  { %27 = vsyncpa [#allocation3 + $0x1], 0 }
  0x17   :  { %28 = vsyncpa [#allocation5], 0 }
  0x18   :  { %30 = vsyncpa [#allocation5 + $0x1], 0 }
  0x19   :  { %31 = vsyncpa [#allocation8], 0 }
  0x1a   :  { %33 = vsyncpa [#allocation8 + $0x1], 0  ;;  %s4622_s1 = smov 0   ;;  %s4624_s22 = smov 0  }
  0x1b   :  { %s4626_s23 = smov 0   ;;  %s4628_s24 = smov 0  }
  0x1c   :  { %s4630_s2 = smov 0   ;;  %s4632_s25 = smov 0  }
  0x1d   :  { %s4634_s3 = smov 0   ;;  %s4636_s26 = smov 0  }
  0x1e LB: > { %5385 = sst [smem:[#allocation15_spill]] %s4464_s22  ;;  %s5351_s27 = sadd.s32 4294967295, %s4488_s26   ;;  %s4488_s26 = sphi %s4636_s26, %s39_s26   ;;  %s4484_s3 = sphi %s4634_s3, %s5450_s3   ;;  %s4480_s25 = sphi %s4632_s25, %s5449_s25   ;;  %s4476_s2 = sphi %s4630_s2, %s5448_s2   ;;  %s4472_s24 = sphi %s4628_s24, %s5447_s24   ;;  %s4468_s23 = sphi %s4626_s23, %s5446_s23   ;;  %s4464_s22 = sphi %s4624_s22, %s5445_s22   ;;  %s4460_s1 = sphi %s4622_s1, %s5444_s1  }
  0x1f   : > { %5386 = sst [smem:[#allocation16_spill]] %s4468_s23  ;;  %s48_s28 = sadd.s32 1, %s4480_s25 }
  0x20   : > { %5387 = sst [smem:[#allocation17_spill]] %s4480_s25  ;;  %p49_p0 = scmp.ge.s32.totalorder %s48_s28, 2 }
  0x21   : > { %5388 = sst [smem:[#allocation18_spill]] %s4484_s3  ;;  %s51_s4 = sadd.s32 1, %s4484_s3 }
  0x22   : > { %5389 = sst [smem:[#allocation19_spill]] %s4488_s26  ;;  %s84_s29 = sadd.s32 1, %s4468_s23 }
  0x23   : > { %p91_p1 = scmp.ne.s32.totalorder %s4468_s23, %s4464_s22  ;;  %s5452_s28 = smov (%p49_p0, %s48_s28), 0 }
  0x24   : > { %5390 = sst [smem:[#allocation20_spill]] %s5452_s28  ;;  %s5454_s4 = smov (!%p49_p0, %s51_s4), %s4484_s3 }
  0x25   : > { %s81_s30 = ssub.s32 %s4480_s25, %s5452_s28  ;;  %p92_p2 = scmp.eq.s32.totalorder %s4488_s26, 0 }
  0x26   : > { %p53_p3 = scmp.ge.s32.totalorder %s5454_s4, 2  ;;  %p82_p4 = scmp.eq.s32.totalorder %s81_s30, 0 }
  0x27   : > { %p93_p5 = por %p92_p2, %p91_p1  ;;  %p97_p6 = scmp.ne.s32.totalorder %s4464_s22, %s4460_s1 }
  0x28   : > { %s5456_s4 = smov (%p53_p3, %s5454_s4), 0  ;;  %p98_p7 = scmp.eq.s32.totalorder %s5351_s27, 0 }
  0x29   : > { %5391 = sst [smem:[#allocation21_spill]] %s5456_s4  ;;  %p4115_p8 = scmp.lt.s32.totalorder %s4488_s26, 4 }
  0x2a   : > { %s4676_s0 = scalar_select %p82_p4, %s4468_s23, %s84_s29  }
  0x2b   : > { %s4682_s21 = sand.u32 1, %s4468_s23   ;;  %p4684_p9 = por %p98_p7, %p97_p6 }
  0x2c   : > { %5392 = sst [smem:[#allocation22_spill]] %s4676_s0  ;;  %s618_s30 = sand.u32 1, %s4488_s26  }
  0x2d   : > { %p4689_p10 = pnand %p4115_p8, %p93_p5  ;;  %s5395_s3 = sld [smem:[#allocation31_spill]] }
  0x2e   : > { %s621_s23 = scalar_lea.vmem [#allocation4], %s4682_s21  ;;  %p3554_p11 = scmp.ge.s32.totalorder %s4488_s26, 1 }
  0x2f   : > { %s628_s19 = sshll.u32 %s621_s23, 4  ;;  %s4699_s18 = scalar_lea.sflag [#allocation5], %s618_s30  ;;  %s629_s19 = int_to_ptr.vmem [resolvable:$true] %s628_s19 }
  0x30   : > { %p774_p12 = scmp.lt.s32.totalorder %s4488_s26, 5  ;;  %s5397_s23 = sld [smem:[#allocation30_spill]] }
  0x31   : > { %s4490_s12 = smov 64   ;;  %s4491_s11 = smov 4  }
  0x32   : > { %p4705_p13 = pnand %p3554_p11, %p774_p12  ;;  %s3994_s10 = sshll.u32 %s4480_s25, 7 }
  0x33   : > { %s624_s27 = scalar_lea.hbm %s5395_s3, %s4480_s25  ;;  %s3545_s3 = sshll.u32 %s4682_s21, 4 }
  0x34   : > { %s626_s0 = sshll.u32 %s624_s27, 4  ;;  %s3993_s27 = sshll.u32 %s4480_s25, 4  ;;  %s627_s0 = int_to_ptr.hbm [resolvable:$true] %s626_s0 }
  0x35   : > { %4108 = dma.hbm_to_vmem [thread:$0]  (!%p4689_p10), %s627_s0, 16, %s629_s19, %s4699_s18  }
  0x36   : > { %s605_s15 = scalar_lea.hbm %s5397_s23, %s3993_s27  ;;  %s600_s17 = scalar_lea.vmem [#allocation2], %s3545_s3 }
  0x37   : > { %s608_s13 = sshll.u32 %s600_s17, 4  ;;  %s606_s30 = sshll.u32 %s605_s15, 4  ;;  %s609_s13 = int_to_ptr.vmem [resolvable:$true] %s608_s13  ;;  %s607_s30 = int_to_ptr.hbm [resolvable:$true] %s606_s30 }
  0x38   : > { %s3548_s19 = sshll.u32 %s4682_s21, 7  ;;  %s597_s0 = scalar_lea.sflag [#allocation3], %s4682_s21 }
  0x39   : > { %4105 = dma.hbm_to_vmem [thread:$0]  (!%p4689_p10), %s607_s30, 256, %s609_s13, %s597_s0, %s4490_s12, %s4490_s12, %s4491_s11  }
  0x3a   : > { %s5398_s14 = sld [smem:[#allocation41_spill]]  ;;  %s709_s3 = scalar_lea.vmem [#allocation6], %s3548_s19 }
  0x3b   : > { %s717_s15 = sshll.u32 %s709_s3, 4  ;;  %s4492_s27 = smov 512   ;;  %s718_s15 = int_to_ptr.vmem [resolvable:$true] %s717_s15 }
  0x3c   : > { %s4493_s29 = smov 32   ;;  %s3551_s23 = sshll.u32 %s4682_s21, 9 }
  0x3d   : > { %s3995_s7 = sshll.u32 %s4480_s25, 9  ;;  %s5399_s16 = sld [smem:[#allocation43_spill]] }
  0x3e   : > { %s738_s8 = scalar_lea.vmem [#allocation7], %s3551_s23 }
  0x3f   : > { %s746_s9 = sshll.u32 %s738_s8, 4  ;;  %s747_s9 = int_to_ptr.vmem [resolvable:$true] %s746_s9 }
  0x40   : > { %s714_s20 = scalar_lea.hbm %s5398_s14, %s3994_s10  ;;  %s735_s10 = scalar_lea.sflag [#allocation8], %s4682_s21 }
  0x41   : > { %s715_s17 = sshll.u32 %s714_s20, 4  ;;  %778 = sbr.rel (%p4705_p13) target bundleno = 3774 (0xebe), region = 96  ;;  %s716_s17 = int_to_ptr.hbm [resolvable:$true] %s715_s17 }
  0x42   : > { %4111 = dma.hbm_to_vmem [thread:$0]  (!%p4689_p10), %s716_s17, 2048, %s718_s15, %s4699_s18, %s4492_s27, %s4492_s27, %s4493_s29  }
  0x43   : > { %s743_s30 = scalar_lea.hbm %s5399_s16, %s3995_s7 }
  0x44   : > { %s744_s0 = sshll.u32 %s743_s30, 4  ;;  %s745_s0 = int_to_ptr.hbm [resolvable:$true] %s744_s0 }
  0x45   : > { %4114 = dma.hbm_to_vmem [thread:$0]  (!%p4689_p10), %s745_s0, 8192, %s747_s9, %s735_s10, %s4490_s12, %s4490_s12, %s4491_s11  }
  0x46   : > { %s4736_s18 = sand.u32 1, %s4464_s22  }
  0x47   : > { %s3555_s19 = sshll.u32 %s4736_s18, 4  ;;  %s781_s6 = scalar_lea.sflag [#allocation3], %s4736_s18 }
  0x48   : > { %s4740_s7 = scalar_lea.vmem [#allocation2], %s3555_s19 }
  0x49   : > { %4445 = dma.done.wait (%p4684_p9), %s781_s6, 256  }
  0x4a   : > { %4447 = vsyncadd (%p4684_p9), %s781_s6, 4294967040  ;;  %s5400_s11 = sadd.s32 4294967295, %s4488_s26  }
  0x4b   : > { %s790_s12 = sand.u32 1, %s5400_s11  }
  0x4c   : > { %s791_s21 = scalar_lea.sflag [#allocation5], %s790_s12 }
  0x4d   : > { %4449 = dma.done.wait (%p4684_p9), %s791_s21, 2064  }
  0x4e   : > { %4451 = vsyncadd (%p4684_p9), %s791_s21, 4294965232  ;;  %s3556_s4 = sshll.u32 %s4736_s18, 7  ;;  %s3557_s20 = sshll.u32 %s4736_s18, 9 }
  0x4f   : > { %s4755_s3 = scalar_lea.vmem [#allocation6], %s3556_s4  ;;  %s810_s15 = scalar_lea.sflag [#allocation8], %s4736_s18 }
  0x50   : > { %5401 = sst [smem:[#allocation23_spill]] %s4755_s3  ;;  %s4758_s17 = scalar_lea.vmem [#allocation7], %s3557_s20 }
  0x51   : > { %5402 = sst [smem:[#allocation24_spill]] %s4758_s17 }
  0x52   : > { %4453 = dma.done.wait (%p4684_p9), %s810_s15, 8192  }
  0x53   : > { %4455 = vsyncadd (%p4684_p9), %s810_s15, 4294959104  ;;  %p941_p0 = scmp.lt.s32.totalorder %s4476_s2, 1  ;;  %p945_p1 = scmp.lt.s32.totalorder %s4472_s24, 1 }
  0x54   : > { %s5403_s0 = sld [smem:[#allocation29_spill]]  ;;  %p3571_p2 = scmp.ne.s32.totalorder %s4472_s24, 0 }
  0x55   : > { %s942_s27 = scalar_select %p941_p0, %s4476_s2, 1 }
  0x56   : > { %s4768_s29 = scalar_select %p945_p1, %s4472_s24, 1 }
  0x57   : > { %s3558_s23 = sshll.u32 %s942_s27, 2  ;;  %s3570_s28 = sshll.u32 %s942_s27, 3 }
  0x58   : > { %s3996_s9 = sshll.u32 %s4768_s29, 4  ;;  %s5405_s6 = sld [smem:[#allocation32_spill]] }
  0x59   : > { %s5406_s1 = sld [smem:[#allocation33_spill]]  ;;  %s3569_s10 = sshll.u32 %s4768_s29, 3 }
  0x5a   : > { %s4773_s8 = scalar_lea.vmem %s5403_s0, %s3558_s23  ;;  %s5408_s25 = sld [smem:[#allocation35_spill]] }
  0x5b   : > { %5404 = sst [smem:[#allocation25_spill]] %s4773_s8 }
  0x5c   : > { %s5411_s4 = sld [smem:[#allocation37_spill]] }
  0x5d   : > { %s5413_s15 = sld [smem:[#allocation38_spill]] }
  0x5e   : > { %s4779_s11 = scalar_lea.vmem %s5405_s6, %s3996_s9  ;;  %s5414_s30 = sld [smem:[#allocation39_spill]] }
  0x5f   : > { %s4788_s27 = scalar_lea.vmem %s5406_s1, %s3996_s9  ;;  %s5417_s8 = sld [smem:[#allocation42_spill]] }
  0x60   : > { %s4797_s22 = scalar_lea.vmem %s5408_s25, %s3996_s9  ;;  %s4093_s1 = smul.u32 3, %s4768_s29 }
  0x61   : > { %5409 = sst [smem:[#allocation26_spill]] %s4797_s22 }
  0x62   : > { %s4806_s17 = scalar_lea.vmem %s5411_s4, %s3996_s9  ;;  %s5418_s14 = sld [smem:[#allocation47_spill]] }
  0x63   : > { %5412 = sst [smem:[#allocation27_spill]] %s4806_s17  ;;  %s976_s3 = scalar_lea.vmem %s5413_s15, %s4768_s29 }
  0x64   : > { %s4815_s23 = scalar_lea.vmem %s5414_s30, %s3996_s9  ;;  %s5419_s16 = sld [smem:[#allocation45_spill]] }
  0x65   : > { %s4829_s17 = scalar_lea.vmem %s5417_s8, %s3569_s10  ;;  %s5420_s19 = sld [smem:[#allocation46_spill]] }
  0x66   : > { %s3572_s8 = sshll.u32 (!%p3571_p2), %s4476_s2, 3 }
  0x67   : > { %1008 = sbr.rel (%p3571_p2) target bundleno = 120 (0x78), region = 116 }
  0x68   : > { %s4835_s9 = scalar_lea.vmem %s5418_s14, %s3570_s28 }
  0x6a   : > { %s4840_s25 = scalar_lea.vmem %s5419_s16, %s4093_s1 }
  0x6b   : > { %s4845_s26 = scalar_lea.vmem %s5420_s19, %s4093_s1 }
  0x6c   : > { %s5421_s4 = sld [smem:[#allocation28_spill]] }
  0x72   : > { %s1010_s28 = scalar_lea.vmem %s5421_s4, %s3572_s8 }
  0x73   : > { %v1037_v0 = vld [vmem:[%s1010_s28] sm:$0xff] }
  0x74   : > { %1038 = vst [vmem:[%s4835_s9] sm:$0xff] %v1037_v0 }
  0x75   : > { %1044 = vsyncadd [#allocation9], 128 }
  0x76   : > { %4456 = dma.done.wait [#allocation9], 128 }
  0x77   : > { %4457 = vsyncadd [#allocation9], 4294967168 }
  0x78 PF: > { %v4002_v1 = vld [vmem:[%s4740_s7 + $0x8] sm:$0xff]  ;;  %v4001_v3 = vld [vmem:[%s4740_s7] sm:$0xff]  ;;  %vm1071_vm0 = vcmask 261120   ;;  %s5422_s22 = scalar_lea.vmem [#allocation4], %s4736_s18  ;;  %s5423_s7 = scalar_lea.vmem %s5333_s5, %s4768_s29  ;;  %vm1123_vm1 = vcmask 31744   ;;  %vm1165_vm2 = vcmask 1043456  }
  0x79   : > { %v4004_v2 = vld [vmem:[%s4779_s11 + $0x8] sm:$0xff]  ;;  %v4003_v4 = vld [vmem:[%s4779_s11] sm:$0xff]  ;;  %1081 = vmatpush.bf16.msra.mxu0 %v4002_v1  ;;  %s4494_s18 = smov 96   ;;  %s4495_s11 = smov 124   ;;  %vm1144_vm3 = vcmask 64512   ;;  %vm1614_vm4 = vcmask 97280  }
  0x7a   : > { %1115 = vmatpush.bf16.msra.mxu1 %v4004_v2  ;;  %v4207_v7 = vld [vmem:[%s5422_s22] ss:$0 sm:$0xff]  ;;  %s4496_s21 = smov 120   ;;  %s4497_s1 = smov 116   ;;  %vm1616_vm5 = vcmask 130048   ;;  %vm1618_vm6 = vcmask 162816  }
  0x7b   : > { %v4858_v5 = vld [vmem:[%s4835_s9] sm:$0xff]  ;;  %s4498_s20 = smov 112   ;;  %s4499_s15 = smov 108   ;;  %vm1620_vm7 = vcmask 195584   ;;  %vm1622_vm8 = vcmask 228352  }
  0x7c   : > { %v1050_v6 = vpack.c.bf16 %v4858_v5, %v4858_v5  ;;  %v4208_v8 = vld [vmem:[%s5423_s7] ss:$0 sm:$0xff]  ;;  %s4500_s14 = smov 100   ;;  %s4501_s13 = smov 104  }
  0x7d   : > { %1082 = vmatpush.bf16.msra.mxu0 %v4001_v3  ;;  %s4502_s30 = smov 92   ;;  %s4503_s16 = smov 84  }
  0x7e   : > { %1116 = vmatpush.bf16.msra.mxu1 %v4003_v4  ;;  %s4504_s0 = smov 80   ;;  %s4505_s19 = smov 88  }
  0x7f   : > { %s4506_s8 = smov 76   ;;  %s4507_s10 = smov 68  }
  0x80   : > { %3581 = vmatmul.msk.bf16.vlgmr.msra.gmra.mxu0 %vm1071_vm0, %v1050_v6  ;;  %s4508_s6 = smov 72   ;;  %s4509_s4 = smov 8  }
  0x81   : > { %3590 = vmatmul.msk.bf16.vlgmr.msra.gmra.mxu1 %vm1071_vm0, %v1050_v6  ;;  %s5363_s28 = smov 16   ;;  %s4511_s22 = smov 4  }
  0x82   : > { %s5364_s24 = smov 12   ;;  %s5362_s2 = smov 20  }
  0x83   : > { %s5360_s7 = smov 28   ;;  %s5361_s12 = smov 24  }
  0xfd   : > { %v1084_v9 = vpop.f32.mrf.mxu0 }
  0xfe   : > { %v1118_v10 = vpop.f32.mrf.mxu1  ;;  %v1085_v11 = vadd.f32 %v4207_v7, %v1084_v9 }
  0xff   : > { %v1119_v12 = vadd.f32 %v4208_v8, %v1118_v10 }
 0x100   : > { %v1088_v13 = vpack.c.bf16 %v1085_v11, %v1085_v11 }
 0x101   : > { %v1122_v14 = vpack.c.bf16 %v1119_v12, %v1119_v12 }
 0x102   : > { %v1183_v15 = vunpack.c.l.b16 %v1088_v13 }
 0x103   : > { %v1158_v16 = vunpack.c.l.b16 %v1122_v14  ;;  %v1128_v17 = vsel %vm1123_vm1, %v1122_v14, 0 }
 0x104   : > { %1137 = vmatpush.bf16.xpose.msra.mxu2 %v1128_v17  ;;  %v4872_v18 = vpack.c.b16 %v1183_v15, %v1183_v15 }
 0x105   : > { %v4874_v19 = vpack.c.b16 %v1158_v16, %v1158_v16  ;;  %v1086_v20 = vpop.f32.mrf.mxu0 }
 0x106   : > { %v1120_v21 = vpop.f32.mrf.mxu1  ;;  %1185 = vrot.lane.b32.xlu2 %v4872_v18, %s4495_s11 }
 0x107   : > { %1160 = vrot.lane.b32.xlu1 %v4874_v19, %s4494_s18 }
 0x10b   : > { %3591 = vmatmul.msk.bf16.vlgmr.msra.gmra.mxu2 %vm1123_vm1, %v1088_v13 }
 0x10e   : > { %1244 = vrot.lane.b32.xlu2 %v4874_v19, %s4496_s21 }
 0x10f   : > { %1187 = vrot.lane.b32.xlu1 %v4874_v19, %s4495_s11 }
 0x116   : > { %1299 = vrot.lane.b32.xlu2 %v4872_v18, %s4497_s1 }
 0x117   : > { %1242 = vrot.lane.b32.xlu1 %v4872_v18, %s4496_s21 }
 0x11e   : > { %1415 = vrot.lane.b32.xlu2 %v4874_v19, %s4499_s15 }
 0x11f   : > { %1358 = vrot.lane.b32.xlu1 %v4874_v19, %s4498_s20 }
 0x126   : > { %1413 = vrot.lane.b32.xlu2 %v4872_v18, %s4499_s15 }
 0x127   : > { %1356 = vrot.lane.b32.xlu1 %v4872_v18, %s4498_s20 }
 0x12e   : > { %1470 = vrot.lane.b32.xlu2 %v4872_v18, %s4501_s13 }
 0x12f   : > { %1529 = vrot.lane.b32.xlu1 %v4874_v19, %s4500_s14 }
 0x160   : > { %v4901_v22 = vpop.permute.xlu2 %1185 }
 0x168   : > { %v1245_v23 = vpop.permute.xlu2 %1244 }
 0x169   : > { %v1250_v24 = vsel %vm1123_vm1, %v1245_v23, 0 }
 0x16a   : > { %1259 = vmatpush.bf16.xpose.msrb.mxu1 %v1250_v24 }
 0x170   : > { %v1300_v50 = vpop.permute.xlu2 %1299 }
 0x178   : > { %v1416_v51 = vpop.permute.xlu2 %1415 }
 0x179   : > { %v1161_v25 = vpop.permute.xlu1 %1160  ;;  %v1421_v2 = vsel %vm1123_vm1, %v1416_v51, 0 }
 0x17a   : > { %v1167_v26 = vsel %vm1165_vm2, %v1161_v25, 0 }
 0x17b   : > { %1176 = vmatpush.bf16.msra.mxu3 %v1167_v26 }
 0x180   : > { %v1414_v52 = vpop.permute.xlu2 %1413 }
 0x181   : > { %v1188_v27 = vpop.permute.xlu1 %1187 }
 0x182   : > { %v1193_v28 = vsel %vm1123_vm1, %v1188_v27, 0 }
 0x183   : > { %1202 = vmatpush.bf16.xpose.msrb.mxu3 %v1193_v28 }
 0x188   : > { %v1471_v53 = vpop.permute.xlu2 %1470 }
 0x189   : > { %v1243_v29 = vpop.permute.xlu1 %1242 }
 0x18a   : > { %3595 = vmatmul.msk.bf16.vlgmr.msrb.gmra.mxu1 %vm1123_vm1, %v1243_v29 }
 0x18e   : > { %v1139_v30 = vpop.f32.mrf.mxu2 }
 0x18f   : > { %v1143_v31 = vmul.f32 0.5, %v1139_v30 }
 0x191   : > { %v1359_v32 = vpop.permute.xlu1 %1358  ;;  %v1145_v33 = vsel %vm1144_vm3, %v1143_v31, -inf }
 0x192   : > { %v1364_v34 = vsel %vm1123_vm1, %v1359_v32, 0  ;;  %1146 = vmax.xlane.f32.xlu0 %v1145_v33 }
 0x193   : > { %1373 = vmatpush.bf16.xpose.msra.mxu1 %v1364_v34 }
 0x196   : > { %v1141_v35 = vpop.f32.mrf.mxu2 }
 0x199   : > { %v1357_v36 = vpop.permute.xlu1 %1356 }
 0x19a   : > { %3599 = vmatmul.msk.bf16.vlgmr.msra.gmra.mxu1 %vm1123_vm1, %v1357_v36 }
 0x1a1   : > { %v1530_v4 = vpop.permute.xlu1 %1529 }
 0x1a2   : > { %v1535_v6 = vsel %vm1123_vm1, %v1530_v4, 0 }
 0x205   : > { %v1147_v37 = vpop.xlane.xlu0 %1146 }
 0x206   : > { %v1148_v38 = vsub.f32 %v1143_v31, %v1147_v37 }
 0x207   : > { %v1261_v39 = vpop.f32.mrf.mxu1 }
 0x208   : > { %v1149_v40 = vmul.f32 1.442695, %v1148_v38  ;;  %v1265_v41 = vmul.f32 0.5, %v1261_v39 }
 0x20a   : > { %4220 = vpow2.f32 %v1149_v40  ;;  %v1266_v42 = vsel %vm1144_vm3, %v1265_v41, -inf }
 0x20b   : > { %1267 = vmax.xlane.f32.xlu2 %v1266_v42 }
 0x20f   : > { %v1263_v43 = vpop.f32.mrf.mxu1 }
 0x210   : > { %v4221_v44 = vpop.eup %4220 }
 0x211   : > { %v1151_v45 = vsel %vm1144_vm3, %v4221_v44, 0.0 }
 0x212   : > { %1152 = vadd.xlane.f32.xlu0 %v1151_v45 }
 0x217   : > { %v1375_v46 = vpop.f32.mrf.mxu1 }
 0x218   : > { %v4912_v47 = vmul.f32 0.5, %v1375_v46 }
 0x21a   : > { %v1380_v48 = vsel %vm1144_vm3, %v4912_v47, -inf }
 0x21b   : > { %1381 = vmax.xlane.f32.xlu2 %v1380_v48 }
 0x21f   : > { %v1377_v49 = vpop.f32.mrf.mxu1 }
 0x226   : > { %1301 = vrot.lane.b32.xlu0 %v4874_v19, %s4497_s1 }
 0x22e   : > { %1472 = vrot.lane.b32.xlu0 %v4874_v19, %s4501_s13 }
 0x236   : > { %1527 = vrot.lane.b32.xlu0 %v4872_v18, %s4500_s14 }
 0x27e   : > { %v1268_v54 = vpop.xlane.xlu2 %1267 }
 0x27f   : > { %v1269_v55 = vsub.f32 %v1265_v41, %v1268_v54 }
 0x281   : > { %v1270_v56 = vmul.f32 1.442695, %v1269_v55 }
 0x283   : > { %4222 = vpow2.f32 %v1270_v56 }
 0x285   : > { %v1153_v57 = vpop.xlane.xlu0 %1152 }
 0x286   : > { %4224 = vrcp.f32 %v1153_v57 }
 0x289   : > { %v4922_v58 = vpop.eup %4222 }
 0x28a   : > { %v1272_v59 = vsel %vm1144_vm3, %v4922_v58, 0.0 }
 0x28b   : > { %1273 = vadd.xlane.f32.xlu2 %v1272_v59 }
 0x28c   : > { %v4225_v60 = vpop.eup %4224 }
 0x28d   : > { %v1155_v61 = vmul.f32 %v4225_v60, %v4221_v44 }
 0x28e   : > { %v1382_v31 = vpop.xlane.xlu2 %1381 }
 0x28f   : > { %v1156_v62 = vpack.c.bf16 %v1155_v61, %v1155_v61  ;;  %v1383_v32 = vsub.f32 %v4912_v47, %v1382_v31 }
 0x291   : > { %3592 = vmatmul.msk.bf16.vlgmr.msra.gmra.mxu3 %vm1144_vm3, %v1156_v62  ;;  %v1384_v33 = vmul.f32 1.442695, %v1383_v32 }
 0x293   : > { %4226 = vpow2.f32 %v1384_v33 }
 0x298   : > { %v1302_v63 = vpop.permute.xlu0 %1301 }
 0x299   : > { %v1307_v0 = vsel %vm1123_vm1, %v1302_v63, 0  ;;  %v4227_v34 = vpop.eup %4226 }
 0x29a   : > { %1316 = vmatpush.bf16.xpose.msra.mxu3 %v1307_v0  ;;  %v1386_v35 = vsel %vm1144_vm3, %v4227_v34, 0.0 }
 0x2a0   : > { %v1473_v1 = vpop.permute.xlu0 %1472 }
 0x2a1   : > { %v1478_v3 = vsel %vm1123_vm1, %v1473_v1, 0  ;;  %3593 = vmatmul.msk.bf16.vlgmr.msrb.gmra.mxu3 %vm1123_vm1, %v4901_v22 }
 0x2a2   : > { %1430 = vmatpush.bf16.xpose.msrb.mxu3 %v1421_v2  ;;  %1487 = vmatpush.bf16.xpose.msrb.mxu1 %v1478_v3 }
 0x2a8   : > { %v1528_v7 = vpop.permute.xlu0 %1527 }
 0x2a9   : > { %3603 = vmatmul.msk.bf16.vlgmr.msrb.gmra.mxu1 %vm1123_vm1, %v1471_v53 }
 0x2b1   : > { %3597 = vmatmul.msk.bf16.vlgmr.msra.gmra.mxu3 %vm1123_vm1, %v1300_v50 }
 0x2b2   : > { %1544 = vmatpush.bf16.xpose.msra.mxu3 %v1535_v6 }
 0x2c1   : > { %3601 = vmatmul.msk.bf16.vlgmr.msrb.gmra.mxu3 %vm1123_vm1, %v1414_v52 }
 0x2d1   : > { %3605 = vmatmul.msk.bf16.vlgmr.msra.gmra.mxu3 %vm1123_vm1, %v1528_v7 }
 0x2fe   : > { %v1274_v52 = vpop.xlane.xlu2 %1273 }
 0x314   : > { %v4937_v8 = vpop.f32.mrf.mxu3 }
 0x31c   : > { %v1180_v9 = vpop.f32.mrf.mxu3 }
 0x324   : > { %v1204_v10 = vpop.f32.mrf.mxu3 }
 0x325   : > { %v1208_v11 = vmul.f32 0.5, %v1204_v10 }
 0x326   : > { %v1489_v12 = vpop.f32.mrf.mxu1 }
 0x327   : > { %v4939_v13 = vmul.f32 0.5, %v1489_v12  ;;  %v1209_v14 = vsel %vm1144_vm3, %v1208_v11, -inf }
 0x328   : > { %1210 = vmax.xlane.f32.xlu1 %v1209_v14 }
 0x329   : > { %v1494_v15 = vsel %vm1144_vm3, %v4939_v13, -inf }
 0x32a   : > { %1495 = vmax.xlane.f32.xlu0 %v1494_v15 }
 0x32c   : > { %v1206_v16 = vpop.f32.mrf.mxu3 }
 0x32e   : > { %v1491_v17 = vpop.f32.mrf.mxu1 }
 0x334   : > { %v1318_v18 = vpop.f32.mrf.mxu3 }
 0x335   : > { %v1322_v20 = vmul.f32 0.5, %v1318_v18 }
 0x337   : > { %v1323_v21 = vsel %vm1144_vm3, %v1322_v20, -inf }
 0x338   : > { %1324 = vmax.xlane.f32.xlu0 %v1323_v21 }
 0x33c   : > { %v1320_v22 = vpop.f32.mrf.mxu3 }
 0x344   : > { %v1432_v23 = vpop.f32.mrf.mxu3 }
 0x345   : > { %v1436_v24 = vmul.f32 0.5, %v1432_v23 }
 0x347   : > { %v1437_v25 = vsel %vm1144_vm3, %v1436_v24, -inf }
 0x348   : > { %1438 = vmax.xlane.f32.xlu1 %v1437_v25 }
 0x34c   : > { %v1434_v26 = vpop.f32.mrf.mxu3  ;;  %1221 = vrot.lane.b32.xlu0 %v4874_v19, %s4502_s30 }
 0x354   : > { %v1546_v27 = vpop.f32.mrf.mxu3 }
 0x355   : > { %v1550_v28 = vmul.f32 0.5, %v1546_v27 }
 0x357   : > { %v1551_v29 = vsel %vm1144_vm3, %v1550_v28, -inf }
 0x358   : > { %1552 = vmax.xlane.f32.xlu2 %v1551_v29 }
 0x35c   : > { %v1548_v30 = vpop.f32.mrf.mxu3 }
 0x361   : > { %1335 = vrot.lane.b32.xlu1 %v4874_v19, %s4503_s16 }
 0x369   : > { %1392 = vrot.lane.b32.xlu1 %v4874_v19, %s4504_s0 }
 0x370   : > { %1278 = vrot.lane.b32.xlu2 %v4874_v19, %s4505_s19 }
 0x376   : > { %1387 = vadd.xlane.f32.xlu0 %v1386_v35 }
 0x39b   : > { %v1211_v36 = vpop.xlane.xlu1 %1210 }
 0x39c   : > { %v1212_v37 = vsub.f32 %v1208_v11, %v1211_v36 }
 0x39d   : > { %v1496_v39 = vpop.xlane.xlu0 %1495 }
 0x39e   : > { %v1213_v38 = vmul.f32 1.442695, %v1212_v37 }
 0x3a0   : > { %4228 = vpow2.f32 %v1213_v38 }
 0x3a6   : > { %v4957_v40 = vpop.eup %4228 }
 0x3a7   : > { %v1215_v41 = vsel %vm1144_vm3, %v4957_v40, 0.0 }
 0x3a8   : > { %1216 = vadd.xlane.f32.xlu1 %v1215_v41 }
 0x3ab   : > { %v1325_v42 = vpop.xlane.xlu0 %1324 }
 0x3ac   : > { %v1326_v43 = vsub.f32 %v1322_v20, %v1325_v42 }
 0x3ae   : > { %v1327_v44 = vmul.f32 1.442695, %v1326_v43 }
 0x3b0   : > { %4230 = vpow2.f32 %v1327_v44 }
 0x3b6   : > { %v4231_v45 = vpop.eup %4230 }
 0x3b7   : > { %v1329_v46 = vsel %vm1144_vm3, %v4231_v45, 0.0 }
 0x3b8   : > { %1330 = vadd.xlane.f32.xlu1 %v1329_v46 }
 0x3bb   : > { %v1439_v47 = vpop.xlane.xlu1 %1438 }
 0x3bc   : > { %v1440_v48 = vsub.f32 %v1436_v24, %v1439_v47 }
 0x3be   : > { %v1441_v49 = vmul.f32 1.442695, %v1440_v48  ;;  %v1222_v50 = vpop.permute.xlu0 %1221 }
 0x3bf   : > { %v1227_v51 = vsel %vm1165_vm2, %v1222_v50, 0 }
 0x3c0   : > { %4232 = vpow2.f32 %v1441_v49  ;;  %1236 = vmatpush.bf16.msrb.mxu0 %v1227_v51 }
 0x3c1   : > { %4234 = vrcp.f32 %v1274_v52 }
 0x3c6   : > { %v4233_v53 = vpop.eup %4232 }
 0x3c7   : > { %v1443_v54 = vsel %vm1144_vm3, %v4233_v53, 0.0  ;;  %v4235_v59 = vpop.eup %4234 }
 0x3c8   : > { %1444 = vadd.xlane.f32.xlu2 %v1443_v54  ;;  %v1276_v60 = vmul.f32 %v4235_v59, %v4922_v58  ;;  %v1497_v58 = vsub.f32 %v4939_v13, %v1496_v39 }
 0x3ca   : > { %v1277_v2 = vpack.c.bf16 %v1276_v60, %v1276_v60  ;;  %v1498_v9 = vmul.f32 1.442695, %v1497_v58 }
 0x3cb   : > { %v1553_v55 = vpop.xlane.xlu2 %1552 }
 0x3cc   : > { %v1554_v56 = vsub.f32 %v1550_v28, %v1553_v55  ;;  %v4006_v55 = vld [vmem:[%s4788_s27 + $0x8] sm:$0xff] }
 0x3cd   : > { %1654 = vmatpush.bf16.msra.mxu1 %v4006_v55 }
 0x3ce   : > { %v1555_v57 = vmul.f32 1.442695, %v1554_v56  ;;  %v4005_v56 = vld [vmem:[%s4788_s27] sm:$0xff]  ;;  %s5430_s27 = sld [smem:[#allocation36_spill]] }
 0x3d0   : > { %4236 = vpow2.f32 %v1555_v57 }
 0x3d1   : > { %1449 = vrot.lane.b32.xlu1 %v4874_v19, %s4506_s8  ;;  %1655 = vmatpush.bf16.msra.mxu1 %v4005_v56 }
 0x3d3   : > { %v1336_v61 = vpop.permute.xlu1 %1335  ;;  %v1279_v62 = vpop.permute.xlu2 %1278 }
 0x3d4   : > { %v1341_v63 = vsel %vm1165_vm2, %v1336_v61, 0  ;;  %v1284_v0 = vsel %vm1165_vm2, %v1279_v62, 0 }
 0x3d5   : > { %1293 = vmatpush.bf16.msrb.mxu2 %v1284_v0  ;;  %1350 = vmatpush.bf16.msra.mxu0 %v1341_v63 }
 0x3d6   : > { %v4237_v1 = vpop.eup %4236 }
 0x3d7   : > { %v1557_v3 = vsel %vm1144_vm3, %v4237_v1, 0.0 }
 0x3d8   : > { %1558 = vadd.xlane.f32.xlu0 %v1557_v3  ;;  %3596 = vmatmul.msk.bf16.vlgmr.msrb.gmra.mxu2 %vm1144_vm3, %v1277_v2 }
 0x3db   : > { %v1393_v4 = vpop.permute.xlu1 %1392 }
 0x3dc   : > { %v1398_v6 = vsel %vm1165_vm2, %v1393_v4, 0 }
 0x3dd   : > { %1407 = vmatpush.bf16.msra.mxu2 %v1398_v6 }
 0x3e0   : > { %1563 = vrot.lane.b32.xlu2 %v4874_v19, %s4507_s10 }
 0x3e9   : > { %v1388_v7 = vpop.xlane.xlu0 %1387 }
 0x3ea   : > { %4238 = vrcp.f32 %v1388_v7 }
 0x3eb   : > { %4240 = vpow2.f32 %v1498_v9 }
 0x3ec   : > { %1506 = vrot.lane.b32.xlu0 %v4874_v19, %s4508_s6 }
 0x3f0   : > { %v4239_v10 = vpop.eup %4238 }
 0x3f1   : > { %v1390_v11 = vmul.f32 %v4239_v10, %v4227_v34  ;;  %v4241_v14 = vpop.eup %4240 }
 0x3f2   : > { %v1500_v15 = vsel %vm1144_vm3, %v4241_v14, 0.0 }
 0x3f3   : > { %v1391_v12 = vpack.c.bf16 %v1390_v11, %v1390_v11 }
 0x3f5   : > { %3600 = vmatmul.msk.bf16.vlgmr.msra.gmra.mxu2 %vm1144_vm3, %v1391_v12 }
 0x3fb   : > { %1501 = vadd.xlane.f32.xlu1 %v1500_v15 }
 0x41b   : > { %v1217_v16 = vpop.xlane.xlu1 %1216 }
 0x41c   : > { %4242 = vrcp.f32 %v1217_v16  ;;  %v4516_v16 = vmov 32.0  }
 0x422   : > { %v4243_v13 = vpop.eup %4242 }
 0x423   : > { %v1219_v17 = vmul.f32 %v4243_v13, %v4957_v40 }
 0x425   : > { %v1220_v18 = vpack.c.bf16 %v1219_v17, %v1219_v17 }
 0x427   : > { %3594 = vmatmul.msk.bf16.vlgmr.msrb.gmra.mxu0 %vm1144_vm3, %v1220_v18 }
 0x42b   : > { %v1331_v19 = vpop.xlane.xlu1 %1330 }
 0x42c   : > { %4244 = vrcp.f32 %v1331_v19 }
 0x432   : > { %v4245_v20 = vpop.eup %4244 }
 0x433   : > { %v1333_v21 = vmul.f32 %v4245_v20, %v4231_v45 }
 0x435   : > { %v1334_v22 = vpack.c.bf16 %v1333_v21, %v1333_v21 }
 0x437   : > { %3598 = vmatmul.msk.bf16.vlgmr.msra.gmra.mxu0 %vm1144_vm3, %v1334_v22 }
 0x43b   : > { %v1445_v23 = vpop.xlane.xlu2 %1444 }
 0x43c   : > { %4246 = vrcp.f32 %v1445_v23 }
 0x442   : > { %v4247_v24 = vpop.eup %4246 }
 0x443   : > { %v1447_v25 = vmul.f32 %v4247_v24, %v4233_v53  ;;  %v1564_v26 = vpop.permute.xlu2 %1563  ;;  %v1450_v27 = vpop.permute.xlu1 %1449 }
 0x444   : > { %v1569_v28 = vsel %vm1165_vm2, %v1564_v26, 0  ;;  %v1455_v29 = vsel %vm1165_vm2, %v1450_v27, 0 }
 0x445   : > { %v1448_v30 = vpack.c.bf16 %v1447_v25, %v1447_v25  ;;  %1464 = vmatpush.bf16.msrb.mxu0 %v1455_v29 }
 0x448   : > { %3602 = vmatmul.msk.bf16.vlgmr.msrb.gmra.mxu0 %vm1144_vm3, %v1448_v30 }
 0x449   : > { %1578 = vmatpush.bf16.msra.mxu0 %v1569_v28 }
 0x44b   : > { %v1559_v31 = vpop.xlane.xlu0 %1558 }
 0x44c   : > { %4248 = vrcp.f32 %v1559_v31 }
 0x452   : > { %v4249_v32 = vpop.eup %4248 }
 0x453   : > { %v1561_v33 = vmul.f32 %v4249_v32, %v4237_v1 }
 0x455   : > { %v1562_v34 = vpack.c.bf16 %v1561_v33, %v1561_v33 }
 0x458   : > { %3606 = vmatmul.msk.bf16.vlgmr.msra.gmra.mxu0 %vm1144_vm3, %v1562_v34 }
 0x45b   : > { %v1295_v35 = vpop.f32.mrf.mxu2 }
 0x45c   : > { %1589 = vrot.lane.b32.xlu1 %v1295_v35, %s4509_s4 }
 0x45e   : > { %v1507_v36 = vpop.permute.xlu0 %1506 }
 0x45f   : > { %v1512_v37 = vsel %vm1165_vm2, %v1507_v36, 0 }
 0x460   : > { %1521 = vmatpush.bf16.msrb.mxu2 %v1512_v37 }
 0x463   : > { %v1297_v38 = vpop.f32.mrf.mxu2 }
 0x46e   : > { %v1502_v39 = vpop.xlane.xlu1 %1501 }
 0x46f   : > { %4250 = vrcp.f32 %v1502_v39 }
 0x470   : > { %4252 = vrcp.f32 %v4516_v16 }
 0x475   : > { %v4251_v40 = vpop.eup %4250 }
 0x476   : > { %v1504_v41 = vmul.f32 %v4251_v40, %v4241_v14  ;;  %v4253_v13 = vpop.eup %4252  ;;  %v4210_v40 = vld [vmem:[%s4840_s25] ss:$0 sm:$0xff] }
 0x477   : > { %v1666_v17 = vmul.f32 32.0, %v4253_v13  ;;  %vm1670_vm9 = vweird.f32 %v4253_v13 }
 0x478   : > { %v1505_v42 = vpack.c.bf16 %v1504_v41, %v1504_v41  ;;  %v1409_v43 = vpop.f32.mrf.mxu2 }
 0x479   : > { %1597 = vrot.lane.b32.xlu2 %v1409_v43, %s5363_s28  ;;  %s5426_s28 = sld [smem:[#allocation27_spill]]  ;;  %v1667_v18 = vsub.f32 1.0, %v1666_v17 }
 0x47a   : > { %3604 = vmatmul.msk.bf16.vlgmr.msrb.gmra.mxu2 %vm1144_vm3, %v1505_v42  ;;  %v4211_v42 = vld [vmem:[%s4845_s26] ss:$0 sm:$0xff] }
 0x47b   : > { %v1668_v19 = vmul.f32 %v4253_v13, %v1667_v18 }
 0x47d   : > { %v1669_v20 = vadd.f32 %v4253_v13, %v1668_v19 }
 0x47f   : > { %v5013_v21 = vsel %vm1670_vm9, %v4253_v13, %v1669_v20  ;;  %v4010_v26 = vld [vmem:[%s5426_s28 + $0x8] sm:$0xff]  ;;  %v4009_v27 = vld [vmem:[%s5426_s28] sm:$0xff] }
 0x480   : > { %v1411_v44 = vpop.f32.mrf.mxu2  ;;  %1768 = vmatpush.bf16.msrb.mxu3 %v4010_v26 }
 0x484   : > { %1769 = vmatpush.bf16.msrb.mxu3 %v4009_v27 }
 0x4a4   : > { %v1238_v45 = vpop.f32.mrf.mxu0 }
 0x4a5   : > { %1585 = vrot.lane.b32.xlu0 %v1238_v45, %s4511_s22 }
 0x4ac   : > { %v1240_v46 = vpop.f32.mrf.mxu0 }
 0x4b4   : > { %v1352_v47 = vpop.f32.mrf.mxu0 }
 0x4b5   : > { %1593 = vrot.lane.b32.xlu0 %v1352_v47, %s5364_s24  ;;  %s5427_s24 = sld [smem:[#allocation25_spill]]  ;;  %v4212_v47 = vld [vmem:[%s976_s3] ss:$0 sm:$0xff] }
 0x4bb   : > { %v1049_v28 = vld [vmem:[%s5427_s24] sm:$0xf] }
 0x4bc   : > { %v1354_v48 = vpop.f32.mrf.mxu0  ;;  %3633 = vmatmul.msk.bf16.vlgmr.msrb.gmra.mxu3 %vm1071_vm0, %v1049_v28 }
 0x4c5   : > { %v1466_v49 = vpop.f32.mrf.mxu0 }
 0x4c6   : > { %1601 = vrot.lane.b32.xlu0 %v1466_v49, %s5362_s2 }
 0x4cd   : > { %v1468_v50 = vpop.f32.mrf.mxu0 }
 0x4ce   : > { %v1590_v63 = vpop.permute.xlu1 %1589 }
 0x4d3   : > { %v1598_v60 = vpop.permute.xlu2 %1597 }
 0x4d5   : > { %v1580_v51 = vpop.f32.mrf.mxu0 }
 0x4d6   : > { %1609 = vrot.lane.b32.xlu0 %v1580_v51, %s5360_s7  ;;  %s5428_s7 = sld [smem:[#allocation26_spill]] }
 0x4dc   : > { %v4008_v29 = vld [vmem:[%s5428_s7 + $0x8] sm:$0xff]  ;;  %v4007_v30 = vld [vmem:[%s5428_s7] sm:$0xff]  ;;  %s5431_s7 = scalar_lea.vmem %s5430_s27, %s4768_s29 }
 0x4dd   : > { %v1582_v52 = vpop.f32.mrf.mxu0  ;;  %1731 = vmatpush.bf16.msra.mxu2 %v4008_v29  ;;  %v4213_v55 = vld [vmem:[%s5431_s7] ss:$0 sm:$0xff] }
 0x4e1   : > { %1732 = vmatpush.bf16.msra.mxu2 %v4007_v30 }
 0x4fd   : > { %v1523_v53 = vpop.f32.mrf.mxu2 }
 0x4fe   : > { %1605 = vrot.lane.b32.xlu2 %v1523_v53, %s5361_s12  ;;  %s5424_s12 = sld [smem:[#allocation34_spill]] }
 0x504   : > { %s5425_s2 = scalar_lea.vmem %s5424_s12, %s4768_s29 }
 0x505   : > { %v1525_v54 = vpop.f32.mrf.mxu2  ;;  %v4209_v9 = vld [vmem:[%s5425_s2] ss:$0 sm:$0xff] }
 0x517   : > { %v1586_v57 = vpop.permute.xlu0 %1585 }
 0x518   : > { %v1612_v61 = vsel %vm1123_vm1, %v4937_v8, %v1586_v57 }
 0x519   : > { %v1613_v0 = vsel %vm1144_vm3, %v1612_v61, %v1590_v63 }
 0x527   : > { %v1594_v59 = vpop.permute.xlu0 %1593 }
 0x528   : > { %v1615_v1 = vsel %vm1614_vm4, %v1613_v0, %v1594_v59 }
 0x529   : > { %v1617_v2 = vsel %vm1616_vm5, %v1615_v1, %v1598_v60 }
 0x538   : > { %v1602_v62 = vpop.permute.xlu0 %1601 }
 0x539   : > { %v1619_v3 = vsel %vm1618_vm6, %v1617_v2, %v1602_v62 }
 0x53f   : > { %v1771_v48 = vpop.f32.mrf.mxu3 }
 0x540   : > { %v1772_v49 = vadd.f32 %v4212_v47, %v1771_v48 }
 0x542   : > { %v1775_v50 = vpack.c.bf16 %v1772_v49, %v1772_v49 }
 0x544   : > { %v1780_v51 = vsel %vm1123_vm1, %v1775_v50, 0  ;;  %v1809_v52 = vunpack.c.l.b16 %v1775_v50 }
 0x545   : > { %1789 = vmatpush.bf16.xpose.msrb.mxu0 %v1780_v51 }
 0x546   : > { %v5037_v53 = vpack.c.b16 %v1809_v52, %v1809_v52 }
 0x547   : > { %v1773_v54 = vpop.f32.mrf.mxu3 }
 0x548   : > { %v1610_v6 = vpop.permute.xlu0 %1609  ;;  %1837 = vrot.lane.b32.xlu0 %v5037_v53, %s4495_s11 }
 0x550   : > { %1951 = vrot.lane.b32.xlu0 %v5037_v53, %s4497_s1 }
 0x558   : > { %v1606_v4 = vpop.permute.xlu2 %1605 }
 0x559   : > { %v1621_v8 = vsel %vm1620_vm7, %v1619_v3, %v1606_v4 }
 0x55a   : > { %v1623_v58 = vsel %vm1622_vm8, %v1621_v8, %v1610_v6 }
 0x55b   : > { %v1624_v7 = vpack.c.bf16 %v1623_v58, %v1623_v58 }
 0x55d   : > { %3615 = vmatmul.msk.bf16.vlgmr.msra.gmra.mxu1 %vm1071_vm0, %v1624_v7 }
 0x5ba   : > { %v1838_v63 = vpop.permute.xlu0 %1837 }
 0x5bb   : > { %v1843_v0 = vsel %vm1123_vm1, %v1838_v63, 0 }
 0x5bc   : > { %1852 = vmatpush.bf16.xpose.msrb.mxu2 %v1843_v0 }
 0x5c2   : > { %v1952_v1 = vpop.permute.xlu0 %1951 }
 0x5c3   : > { %v1957_v2 = vsel %vm1123_vm1, %v1952_v1, 0 }
 0x5da   : > { %v1657_v10 = vpop.f32.mrf.mxu1 }
 0x5db   : > { %v1658_v11 = vadd.f32 %v4209_v9, %v1657_v10 }
 0x5dd   : > { %v1661_v12 = vadd.f32 %v1658_v11, %v4858_v5 }
 0x5df   : > { %v1662_v14 = vsel %vm1071_vm0, %v1661_v12, 0.0 }
 0x5e0   : > { %1663 = vadd.xlane.f32.xlu2 %v1662_v14 }
 0x5e2   : > { %v1659_v15 = vpop.f32.mrf.mxu1 }
 0x5f8   : > { %2065 = vrot.lane.b32.xlu2 %v5037_v53, %s4499_s15 }
 0x653   : > { %v1664_v5 = vpop.xlane.xlu2 %1663 }
 0x654   : > { %v1672_v22 = vmul.f32 %v5013_v21, %v1664_v5 }
 0x656   : > { %v1673_v23 = vsub.f32 %v1661_v12, %v1672_v22 }
 0x658   : > { %v1674_v24 = vmul.f32 %v1673_v23, %v1673_v23 }
 0x65a   : > { %v1675_v25 = vsel %vm1071_vm0, %v1674_v24, 0.0 }
 0x65b   : > { %1676 = vadd.xlane.f32.xlu1 %v1675_v25  ;;  %v2066_v3 = vpop.permute.xlu2 %2065 }
 0x65c   : > { %v2071_v8 = vsel %vm1123_vm1, %v2066_v3, 0 }
 0x6ce   : > { %v1677_v31 = vpop.xlane.xlu1 %1676 }
 0x6cf   : > { %v1678_v32 = vmul.f32 %v1677_v31, %v5013_v21 }
 0x6d1   : > { %v1679_v33 = vadd.f32 1e-05, %v1678_v32 }
 0x6d3   : > { %4254 = vrsqrt.f32 %v1679_v33  ;;  %vm1686_vm11 = vweird.f32 %v1679_v33 }
 0x6d9   : > { %v4255_v34 = vpop.eup %4254 }
 0x6da   : > { %v1681_v35 = vmul.f32 %v4255_v34, %v1679_v33  ;;  %vm1687_vm10 = vweird.f32 %v4255_v34 }
 0x6db   : > { %vm1688_vm12 = vmor %vm1686_vm11, %vm1687_vm10 }
 0x6dc   : > { %v1682_v36 = vmul.f32 %v4255_v34, %v1681_v35 }
 0x6de   : > { %v1683_v37 = vmul.f32 0.5, %v1682_v36 }
 0x6e0   : > { %v1684_v38 = vsub.f32 1.5, %v1683_v37 }
 0x6e2   : > { %v1685_v39 = vmul.f32 %v4255_v34, %v1684_v38 }
 0x6e4   : > { %v1689_v41 = vsel %vm1688_vm12, %v4255_v34, %v1685_v39 }
 0x6e5   : > { %v1690_v43 = vmul.f32 %v1689_v41, %v1673_v23 }
 0x6e7   : > { %v1695_v44 = vmul.f32 %v4210_v40, %v1690_v43 }
 0x6e9   : > { %v5026_v45 = vadd.f32 %v4211_v42, %v1695_v44 }
 0x6eb   : > { %v1701_v46 = vpack.c.bf16 %v5026_v45, %v5026_v45 }
 0x6ed   : > { %3624 = vmatmul.msk.bf16.vlgmr.msra.gmra.mxu2 %vm1071_vm0, %v1701_v46 }
 0x6ee   : > { %1966 = vmatpush.bf16.xpose.msra.mxu2 %v1957_v2 }
 0x770   : > { %v1734_v56 = vpop.f32.mrf.mxu2 }
 0x771   : > { %v1735_v57 = vadd.f32 %v4213_v55, %v1734_v56 }
 0x773   : > { %v1738_v59 = vpack.c.bf16 %v1735_v57, %v1735_v57 }
 0x775   : > { %v1833_v60 = vunpack.c.l.b16 %v1738_v59  ;;  %3634 = vmatmul.msk.bf16.vlgmr.msrb.gmra.mxu0 %vm1123_vm1, %v1738_v59 }
 0x777   : > { %v1834_v61 = vpack.c.b16 %v1833_v60, %v1833_v60 }
 0x778   : > { %v1736_v62 = vpop.f32.mrf.mxu2 }
 0x779   : > { %2006 = vrot.lane.b32.xlu2 %v1834_v61, %s4498_s20  ;;  %2063 = vrot.lane.b32.xlu1 %v1834_v61, %s4499_s15 }
 0x77a   : > { %1835 = vrot.lane.b32.xlu0 %v1834_v61, %s4495_s11  ;;  %s5433_s11 = smov 16  }
 0x781   : > { %2120 = vrot.lane.b32.xlu2 %v1834_v61, %s4501_s13  ;;  %2122 = vrot.lane.b32.xlu1 %v5037_v53, %s4501_s13  ;;  %s5438_s13 = sld [smem:[#allocation40_spill]] }
 0x782   : > { %1894 = vrot.lane.b32.xlu0 %v5037_v53, %s4496_s21 }
 0x789   : > { %1871 = vrot.lane.b32.xlu1 %v5037_v53, %s4502_s30  ;;  %s5439_s30 = scalar_lea.vmem %s5438_s13, %s4768_s29 }
 0x78a   : > { %1949 = vrot.lane.b32.xlu0 %v1834_v61, %s4497_s1  ;;  %s5435_s1 = smov 24  }
 0x792   : > { %1892 = vrot.lane.b32.xlu0 %v1834_v61, %s4496_s21  ;;  %s5434_s21 = smov 20  }
 0x79a   : > { %2008 = vrot.lane.b32.xlu0 %v5037_v53, %s4498_s20  ;;  %s5436_s20 = smov 28  }
 0x7a2   : > { %2179 = vrot.lane.b32.xlu0 %v5037_v53, %s4500_s14 }
 0x7aa   : > { %2177 = vrot.lane.b32.xlu0 %v1834_v61, %s4500_s14 }
 0x7d3   : > { %v2007_v5 = vpop.permute.xlu2 %2006 }
 0x7db   : > { %v2121_v25 = vpop.permute.xlu2 %2120 }
 0x7eb   : > { %v2064_v4 = vpop.permute.xlu1 %2063 }
 0x7ec   : > { %v1836_v6 = vpop.permute.xlu0 %1835 }
 0x7ed   : > { %3636 = vmatmul.msk.bf16.vlgmr.msrb.gmra.mxu2 %vm1123_vm1, %v1836_v6 }
 0x7ee   : > { %2080 = vmatpush.bf16.xpose.msrb.mxu2 %v2071_v8 }
 0x7f2   : > { %v1791_v58 = vpop.f32.mrf.mxu0 }
 0x7f3   : > { %v1795_v7 = vmul.f32 0.5, %v1791_v58  ;;  %v2123_v9 = vpop.permute.xlu1 %2122 }
 0x7f4   : > { %v1895_v10 = vpop.permute.xlu0 %1894  ;;  %v2128_v20 = vsel %vm1123_vm1, %v2123_v9, 0 }
 0x7f5   : > { %v1900_v11 = vsel %vm1123_vm1, %v1895_v10, 0  ;;  %v1796_v12 = vsel %vm1144_vm3, %v1795_v7, -inf }
 0x7f6   : > { %1909 = vmatpush.bf16.xpose.msra.mxu0 %v1900_v11  ;;  %1797 = vmax.xlane.f32.xlu1 %v1796_v12 }
 0x7fa   : > { %v1793_v14 = vpop.f32.mrf.mxu0 }
 0x7fb   : > { %v1872_v15 = vpop.permute.xlu1 %1871 }
 0x7fc   : > { %v1877_v16 = vsel %vm1165_vm2, %v1872_v15, 0  ;;  %v1950_v13 = vpop.permute.xlu0 %1949 }
 0x7fd   : > { %3640 = vmatmul.msk.bf16.vlgmr.msra.gmra.mxu2 %vm1123_vm1, %v1950_v13  ;;  %1886 = vmatpush.bf16.msra.mxu3 %v1877_v16 }
 0x804   : > { %v1893_v17 = vpop.permute.xlu0 %1892 }
 0x805   : > { %3638 = vmatmul.msk.bf16.vlgmr.msra.gmra.mxu0 %vm1123_vm1, %v1893_v17 }
 0x80c   : > { %v2009_v18 = vpop.permute.xlu0 %2008 }
 0x80d   : > { %v2014_v19 = vsel %vm1123_vm1, %v2009_v18, 0  ;;  %3644 = vmatmul.msk.bf16.vlgmr.msrb.gmra.mxu2 %vm1123_vm1, %v2064_v4 }
 0x80e   : > { %2023 = vmatpush.bf16.xpose.msrb.mxu0 %v2014_v19 }
 0x814   : > { %v2180_v22 = vpop.permute.xlu0 %2179 }
 0x815   : > { %v2185_v23 = vsel %vm1123_vm1, %v2180_v22, 0  ;;  %3642 = vmatmul.msk.bf16.vlgmr.msrb.gmra.mxu0 %vm1123_vm1, %v2007_v5 }
 0x816   : > { %2137 = vmatpush.bf16.xpose.msra.mxu0 %v2128_v20  ;;  %2194 = vmatpush.bf16.xpose.msra.mxu2 %v2185_v23 }
 0x81c   : > { %v2178_v24 = vpop.permute.xlu0 %2177 }
 0x81d   : > { %3648 = vmatmul.msk.bf16.vlgmr.msra.gmra.mxu2 %vm1123_vm1, %v2178_v24 }
 0x825   : > { %3646 = vmatmul.msk.bf16.vlgmr.msra.gmra.mxu0 %vm1123_vm1, %v2121_v25 }
 0x869   : > { %v1798_v29 = vpop.xlane.xlu1 %1797 }
 0x86a   : > { %v1799_v32 = vsub.f32 %v1795_v7, %v1798_v29 }
 0x86c   : > { %v1800_v34 = vmul.f32 1.442695, %v1799_v32 }
 0x86e   : > { %4256 = vpow2.f32 %v1800_v34 }
 0x870   : > { %v1854_v26 = vpop.f32.mrf.mxu2 }
 0x871   : > { %v1858_v36 = vmul.f32 0.5, %v1854_v26 }
 0x873   : > { %v1859_v38 = vsel %vm1144_vm3, %v1858_v36, -inf }
 0x874   : > { %v4257_v41 = vpop.eup %4256 }
 0x875   : > { %v1802_v46 = vsel %vm1144_vm3, %v4257_v41, 0.0 }
 0x878   : > { %v1856_v27 = vpop.f32.mrf.mxu2 }
 0x880   : > { %v1968_v28 = vpop.f32.mrf.mxu2 }
 0x881   : > { %v1972_v49 = vmul.f32 0.5, %v1968_v28 }
 0x882   : > { %v1911_v30 = vpop.f32.mrf.mxu0 }
 0x883   : > { %v1915_v31 = vmul.f32 0.5, %v1911_v30  ;;  %v1973_v51 = vsel %vm1144_vm3, %v1972_v49, -inf }
 0x885   : > { %v1916_v33 = vsel %vm1144_vm3, %v1915_v31, -inf }
 0x886   : > { %1917 = vmax.xlane.f32.xlu0 %v1916_v33 }
 0x888   : > { %v1970_v35 = vpop.f32.mrf.mxu2 }
 0x88a   : > { %v1913_v37 = vpop.f32.mrf.mxu0 }
 0x88e   : > { %1860 = vmax.xlane.f32.xlu0 %v1859_v38 }
 0x890   : > { %v2082_v39 = vpop.f32.mrf.mxu2 }
 0x891   : > { %v2086_v40 = vmul.f32 0.5, %v2082_v39 }
 0x892   : > { %v2025_v42 = vpop.f32.mrf.mxu0 }
 0x893   : > { %v5086_v43 = vmul.f32 0.5, %v2025_v42  ;;  %v2087_v44 = vsel %vm1144_vm3, %v2086_v40, -inf }
 0x894   : > { %2088 = vmax.xlane.f32.xlu1 %v2087_v44 }
 0x895   : > { %v2030_v47 = vsel %vm1144_vm3, %v5086_v43, -inf }
 0x896   : > { %1803 = vadd.xlane.f32.xlu0 %v1802_v46  ;;  %2031 = vmax.xlane.f32.xlu2 %v2030_v47 }
 0x898   : > { %v2084_v48 = vpop.f32.mrf.mxu2 }
 0x89a   : > { %v2027_v50 = vpop.f32.mrf.mxu0 }
 0x89e   : > { %1974 = vmax.xlane.f32.xlu2 %v1973_v51 }
 0x8a0   : > { %v2196_v52 = vpop.f32.mrf.mxu2 }
 0x8a1   : > { %v5097_v57 = vmul.f32 0.5, %v2196_v52 }
 0x8a2   : > { %v2139_v54 = vpop.f32.mrf.mxu0 }
 0x8a3   : > { %v2201_v59 = vsel %vm1144_vm3, %v5097_v57, -inf  ;;  %v2143_v60 = vmul.f32 0.5, %v2139_v54 }
 0x8a5   : > { %v2144_v61 = vsel %vm1144_vm3, %v2143_v60, -inf }
 0x8a8   : > { %v2198_v55 = vpop.f32.mrf.mxu2 }
 0x8aa   : > { %1985 = vrot.lane.b32.xlu0 %v5037_v53, %s4503_s16  ;;  %v2141_v56 = vpop.f32.mrf.mxu0  ;;  %s5440_s16 = sld [smem:[#allocation24_spill]] }
 0x8b6   : > { %1811 = vrot.lane.b32.xlu2 %v5037_v53, %s4494_s18  ;;  %s5432_s18 = smov 12  }
 0x8d4   : > { %2202 = vmax.xlane.f32.xlu0 %v2201_v59 }
 0x8df   : > { %2145 = vmax.xlane.f32.xlu2 %v2144_v61 }
 0x8f9   : > { %v1918_v62 = vpop.xlane.xlu0 %1917 }
 0x8fa   : > { %v1919_v63 = vsub.f32 %v1915_v31, %v1918_v62 }
 0x8fc   : > { %v1920_v0 = vmul.f32 1.442695, %v1919_v63 }
 0x8fe   : > { %4258 = vpow2.f32 %v1920_v0 }
 0x901   : > { %v1861_v1 = vpop.xlane.xlu0 %1860 }
 0x902   : > { %v1862_v2 = vsub.f32 %v1858_v36, %v1861_v1 }
 0x904   : > { %v5102_v3 = vpop.eup %4258  ;;  %v1863_v4 = vmul.f32 1.442695, %v1862_v2 }
 0x905   : > { %v1922_v6 = vsel %vm1144_vm3, %v5102_v3, 0.0 }
 0x906   : > { %4260 = vpow2.f32 %v1863_v4  ;;  %1923 = vadd.xlane.f32.xlu0 %v1922_v6 }
 0x907   : > { %v2089_v8 = vpop.xlane.xlu1 %2088 }
 0x908   : > { %v2090_v58 = vsub.f32 %v2086_v40, %v2089_v8 }
 0x909   : > { %v2032_v7 = vpop.xlane.xlu2 %2031  ;;  %v1804_v11 = vpop.xlane.xlu0 %1803 }
 0x90a   : > { %v2091_v9 = vmul.f32 1.442695, %v2090_v58  ;;  %v2033_v25 = vsub.f32 %v5086_v43, %v2032_v7 }
 0x90c   : > { %v4261_v10 = vpop.eup %4260  ;;  %4262 = vpow2.f32 %v2091_v9  ;;  %v2034_v27 = vmul.f32 1.442695, %v2033_v25 }
 0x90d   : > { %v1865_v12 = vsel %vm1144_vm3, %v4261_v10, 0.0  ;;  %4264 = vrcp.f32 %v1804_v11 }
 0x90e   : > { %1866 = vadd.xlane.f32.xlu1 %v1865_v12 }
 0x911   : > { %v1975_v14 = vpop.xlane.xlu2 %1974 }
 0x912   : > { %v5107_v15 = vpop.eup %4262  ;;  %v1976_v23 = vsub.f32 %v1972_v49, %v1975_v14 }
 0x913   : > { %v2093_v16 = vsel %vm1144_vm3, %v5107_v15, 0.0  ;;  %v4265_v13 = vpop.eup %4264 }
 0x914   : > { %2094 = vadd.xlane.f32.xlu2 %v2093_v16  ;;  %v1806_v17 = vmul.f32 %v4265_v13, %v4257_v41  ;;  %v1977_v24 = vmul.f32 1.442695, %v1976_v23 }
 0x916   : > { %v1807_v20 = vpack.c.bf16 %v1806_v17, %v1806_v17  ;;  %4266 = vpow2.f32 %v1977_v24 }
 0x917   : > { %4268 = vpow2.f32 %v2034_v27 }
 0x919   : > { %v1812_v18 = vpop.permute.xlu2 %1811 }
 0x91a   : > { %v1817_v19 = vsel %vm1165_vm2, %v1812_v18, 0  ;;  %2099 = vrot.lane.b32.xlu0 %v5037_v53, %s4506_s8 }
 0x91b   : > { %1826 = vmatpush.bf16.msrb.mxu1 %v1817_v19 }
 0x91c   : > { %v1986_v5 = vpop.permute.xlu0 %1985  ;;  %v4267_v26 = vpop.eup %4266 }
 0x91d   : > { %v1991_v22 = vsel %vm1165_vm2, %v1986_v5, 0  ;;  %v1979_v28 = vsel %vm1144_vm3, %v4267_v26, 0.0  ;;  %v4269_v29 = vpop.eup %4268 }
 0x91e   : > { %3635 = vmatmul.msk.bf16.vlgmr.msrb.gmra.mxu1 %vm1144_vm3, %v1807_v20  ;;  %2000 = vmatpush.bf16.msrb.mxu3 %v1991_v22  ;;  %v2036_v30 = vsel %vm1144_vm3, %v4269_v29, 0.0 }
 0x927   : > { %1928 = vrot.lane.b32.xlu1 %v5037_v53, %s4505_s19  ;;  %s5441_s19 = sld [smem:[#allocation44_spill]] }
 0x92d   : > { %s5442_s8 = scalar_lea.vmem %s5441_s19, %s4768_s29 }
 0x944   : > { %1980 = vadd.xlane.f32.xlu0 %v1979_v28 }
 0x947   : > { %v2203_v36 = vpop.xlane.xlu0 %2202 }
 0x948   : > { %v2204_v37 = vsub.f32 %v5097_v57, %v2203_v36 }
 0x94a   : > { %v2205_v38 = vmul.f32 1.442695, %v2204_v37 }
 0x951   : > { %2037 = vadd.xlane.f32.xlu1 %v2036_v30 }
 0x952   : > { %v2146_v31 = vpop.xlane.xlu2 %2145 }
 0x953   : > { %v2147_v32 = vsub.f32 %v2143_v60, %v2146_v31 }
 0x955   : > { %v2148_v33 = vmul.f32 1.442695, %v2147_v32 }
 0x957   : > { %4270 = vpow2.f32 %v2148_v33  ;;  %v4012_v33 = vld [vmem:[%s4815_s23 + $0x8] sm:$0xff] }
 0x958   : > { %2042 = vrot.lane.b32.xlu0 %v5037_v53, %s4504_s0  ;;  %4272 = vpow2.f32 %v2205_v38  ;;  %2299 = vmatpush.bf16.msrb.mxu0 %v4012_v33 }
 0x95d   : > { %v4271_v34 = vpop.eup %4270 }
 0x95e   : > { %v2150_v35 = vsel %vm1144_vm3, %v4271_v34, 0.0  ;;  %v4273_v39 = vpop.eup %4272 }
 0x95f   : > { %2151 = vadd.xlane.f32.xlu2 %v2150_v35  ;;  %v2207_v41 = vsel %vm1144_vm3, %v4273_v39, 0.0 }
 0x96a   : > { %2156 = vrot.lane.b32.xlu1 %v5037_v53, %s4508_s6 }
 0x977   : > { %2213 = vrot.lane.b32.xlu2 %v5037_v53, %s4507_s10 }
 0x979   : > { %v1924_v42 = vpop.xlane.xlu0 %1923 }
 0x981   : > { %v1867_v40 = vpop.xlane.xlu1 %1866 }
 0x982   : > { %4274 = vrcp.f32 %v1867_v40  ;;  %2208 = vadd.xlane.f32.xlu0 %v2207_v41 }
 0x983   : > { %4276 = vrcp.f32 %v1924_v42 }
 0x987   : > { %v2095_v60 = vpop.xlane.xlu2 %2094 }
 0x988   : > { %v4275_v43 = vpop.eup %4274 }
 0x989   : > { %v1869_v44 = vmul.f32 %v4275_v43, %v4261_v10  ;;  %v4277_v49 = vpop.eup %4276 }
 0x98a   : > { %v1926_v53 = vmul.f32 %v4277_v49, %v5102_v3 }
 0x98b   : > { %v1870_v46 = vpack.c.bf16 %v1869_v44, %v1869_v44 }
 0x98c   : > { %v2100_v47 = vpop.permute.xlu0 %2099  ;;  %v1927_v54 = vpack.c.bf16 %v1926_v53, %v1926_v53 }
 0x98d   : > { %v2105_v48 = vsel %vm1165_vm2, %v2100_v47, 0  ;;  %3637 = vmatmul.msk.bf16.vlgmr.msra.gmra.mxu3 %vm1144_vm3, %v1870_v46 }
 0x98e   : > { %2114 = vmatpush.bf16.msra.mxu3 %v2105_v48 }
 0x999   : > { %v1929_v50 = vpop.permute.xlu1 %1928 }
 0x99a   : > { %v1934_v51 = vsel %vm1165_vm2, %v1929_v50, 0  ;;  %v4214_v50 = vld [vmem:[%s5439_s30] ss:$0 sm:$0xff] }
 0x99b   : > { %v5134_v52 = vpop.f32.mrf.mxu1  ;;  %1943 = vmatpush.bf16.msra.mxu1 %v1934_v51 }
 0x99e   : > { %3639 = vmatmul.msk.bf16.vlgmr.msra.gmra.mxu1 %vm1144_vm3, %v1927_v54 }
 0x9a3   : > { %v1830_v55 = vpop.f32.mrf.mxu1 }
 0x9b7   : > { %v1981_v56 = vpop.xlane.xlu0 %1980 }
 0x9b8   : > { %4278 = vrcp.f32 %v1981_v56 }
 0x9b9   : > { %4280 = vrcp.f32 %v2095_v60 }
 0x9be   : > { %v4279_v57 = vpop.eup %4278 }
 0x9bf   : > { %v1983_v59 = vmul.f32 %v4279_v57, %v4267_v26  ;;  %v4281_v63 = vpop.eup %4280 }
 0x9c0   : > { %v2097_v4 = vmul.f32 %v4281_v63, %v5107_v15 }
 0x9c1   : > { %v1984_v61 = vpack.c.bf16 %v1983_v59, %v1983_v59 }
 0x9c2   : > { %v2098_v8 = vpack.c.bf16 %v2097_v4, %v2097_v4 }
 0x9c3   : > { %3641 = vmatmul.msk.bf16.vlgmr.msrb.gmra.mxu3 %vm1144_vm3, %v1984_v61 }
 0x9c4   : > { %v2038_v62 = vpop.xlane.xlu1 %2037 }
 0x9c5   : > { %4282 = vrcp.f32 %v2038_v62 }
 0x9ca   : > { %v2043_v0 = vpop.permute.xlu0 %2042 }
 0x9cb   : > { %v4283_v1 = vpop.eup %4282  ;;  %v2048_v2 = vsel %vm1165_vm2, %v2043_v0, 0 }
 0x9cc   : > { %v2040_v3 = vmul.f32 %v4283_v1, %v4269_v29  ;;  %2057 = vmatpush.bf16.msrb.mxu1 %v2048_v2 }
 0x9ce   : > { %v2041_v6 = vpack.c.bf16 %v2040_v3, %v2040_v3 }
 0x9d0   : > { %3643 = vmatmul.msk.bf16.vlgmr.msrb.gmra.mxu1 %vm1144_vm3, %v2041_v6 }
 0x9d2   : > { %v2152_v58 = vpop.xlane.xlu2 %2151 }
 0x9d3   : > { %4284 = vrcp.f32 %v2152_v58  ;;  %3645 = vmatmul.msk.bf16.vlgmr.msra.gmra.mxu3 %vm1144_vm3, %v2098_v8 }
 0x9d9   : > { %v4285_v7 = vpop.eup %4284 }
 0x9da   : > { %v2214_v9 = vpop.permute.xlu2 %2213  ;;  %v2154_v10 = vmul.f32 %v4285_v7, %v4271_v34  ;;  %v4011_v34 = vld [vmem:[%s4815_s23] sm:$0xff]  ;;  %s5437_s23 = sld [smem:[#allocation23_spill]] }
 0x9db   : > { %v2219_v11 = vsel %vm1165_vm2, %v2214_v9, 0  ;;  %2300 = vmatpush.bf16.msrb.mxu0 %v4011_v34 }
 0x9dc   : > { %v2157_v12 = vpop.permute.xlu1 %2156  ;;  %2228 = vmatpush.bf16.msrb.mxu3 %v2219_v11  ;;  %v2155_v16 = vpack.c.bf16 %v2154_v10, %v2154_v10 }
 0x9dd   : > { %v2162_v14 = vsel %vm1165_vm2, %v2157_v12, 0 }
 0x9de   : > { %2171 = vmatpush.bf16.msra.mxu1 %v2162_v14 }
 0x9e0   : > { %v3697_v63 = vld [vmem:[%s5437_s23 + $0x60] sm:$0xf0]  ;;  %v3703_v0 = vld [vmem:[%s5437_s23 + $0x48] sm:$0xf]  ;;  %v3695_v3 = vld [vmem:[%s5437_s23 + $0x40] sm:$0xf] }
 0x9e1   : > { %3647 = vmatmul.msk.bf16.vlgmr.msra.gmra.mxu1 %vm1144_vm3, %v2155_v16  ;;  %v4026_v2 = vld [vmem:[%s5437_s23 + $0x64] sm:$0xf0]  ;;  %v4025_v4 = vld [vmem:[%s5437_s23 + $0x5c] sm:$0xf0]  ;;  %v4022_v58 = vld [vmem:[%s5437_s23 + $0x4c] sm:$0xf] }
 0x9e2   : > { %v3704_v6 = vor.u32 %v4026_v2, %v3703_v0  ;;  %v3696_v8 = vor.u32 %v4025_v4, %v3695_v3  ;;  %v3705_v7 = vld [vmem:[%s5437_s23 + $0x68] sm:$0xf0]  ;;  %v4013_v10 = vld [vmem:[%s5437_s23 + $0x4] sm:$0xf]  ;;  %v3663_v12 = vld [vmem:[%s5437_s23] sm:$0xf] }
 0x9e3   : > { %v3708_v9 = vor.u32 %v4022_v58, %v3705_v7  ;;  %v3665_v11 = vld [vmem:[%s5437_s23 + $0x20] sm:$0xf0]  ;;  %v4017_v16 = vld [vmem:[%s5437_s23 + $0x1c] sm:$0xf0]  ;;  %v4024_v33 = vld [vmem:[%s5437_s23 + $0x5c] sm:$0xf] }
 0x9e4   : > { %2491 = vmatpush.bf16.msra.mxu3 %v3704_v6  ;;  %2465 = vmatpush.bf16.msrb.mxu1 %v3696_v8  ;;  %v3668_v14 = vor.u32 %v4013_v10, %v3665_v11  ;;  %v3721_v34 = vld [vmem:[%s5437_s23 + $0x78] sm:$0xf0]  ;;  %v4059_v4 = vld [vmem:[%s5440_s16 + $0xf0] sm:$0xff]  ;;  %v4034_v58 = vld [vmem:[%s5440_s16 + $0x28] sm:$0xff] }
 0x9e5   : > { %2504 = vmatpush.bf16.msra.mxu0 %v3708_v9  ;;  %v4036_v0 = vld [vmem:[%s5440_s16 + $0x38] sm:$0xff]  ;;  %v4043_v6 = vld [vmem:[%s5440_s16 + $0x70] sm:$0xff]  ;;  %v4058_v7 = vld [vmem:[%s5440_s16 + $0xe8] sm:$0xff] }
 0x9e6   : > { %v4044_v2 = vld [vmem:[%s5440_s16 + $0x78] sm:$0xff]  ;;  %v4051_v8 = vld [vmem:[%s5440_s16 + $0xb0] sm:$0xff]  ;;  %v4042_v9 = vld [vmem:[%s5440_s16 + $0x68] sm:$0xff] }
 0x9e7   : > { %v4052_v3 = vld [vmem:[%s5440_s16 + $0xb8] sm:$0xff]  ;;  %v4050_v10 = vld [vmem:[%s5440_s16 + $0xa8] sm:$0xff]  ;;  %v4033_v11 = vld [vmem:[%s5440_s16 + $0x20] sm:$0xff] }
 0x9f5   : > { %v2209_v15 = vpop.xlane.xlu0 %2208 }
 0x9f6   : > { %4286 = vrcp.f32 %v2209_v15  ;;  %v3671_v15 = vld [vmem:[%s5437_s23 + $0x8] sm:$0xf] }
 0x9fc   : > { %v4287_v13 = vpop.eup %4286 }
 0x9fd   : > { %v2211_v17 = vmul.f32 %v4287_v13, %v4273_v39  ;;  %v4018_v13 = vld [vmem:[%s5437_s23 + $0x24] sm:$0xf0] }
 0x9ff   : > { %v2212_v18 = vpack.c.bf16 %v2211_v17, %v2211_v17  ;;  %v3664_v17 = vor.u32 %v4017_v16, %v3663_v12  ;;  %v4057_v12 = vld [vmem:[%s5440_s16 + $0xe0] sm:$0xff] }
 0xa00   : > { %v4049_v16 = vld [vmem:[%s5440_s16 + $0xa0] sm:$0xff] }
 0xa01   : > { %3649 = vmatmul.msk.bf16.vlgmr.msrb.gmra.mxu3 %vm1144_vm3, %v2212_v18  ;;  %v3672_v18 = vor.u32 %v4018_v13, %v3671_v15  ;;  %2466 = vmatpush.bf16.msrb.mxu1 %v3664_v17  ;;  %v4032_v15 = vld [vmem:[%s5440_s16 + $0x18] sm:$0xff] }
 0xa02   : > { %v4056_v13 = vld [vmem:[%s5440_s16 + $0xd8] sm:$0xff] }
 0xa03   : > { %2492 = vmatpush.bf16.msra.mxu3 %v3672_v18  ;;  %v4040_v17 = vld [vmem:[%s5440_s16 + $0x58] sm:$0xff] }
 0xa04   : > { %v4048_v18 = vld [vmem:[%s5440_s16 + $0x98] sm:$0xff] }
 0xa10   : > { %v1888_v19 = vpop.f32.mrf.mxu3 }
 0xa11   : > { %2235 = vrot.lane.b32.xlu2 %v1888_v19, %s4511_s22  ;;  %v4014_v19 = vld [vmem:[%s5437_s23 + $0xc] sm:$0xf] }
 0xa18   : > { %v1890_v20 = vpop.f32.mrf.mxu3 }
 0xa19   : > { %v3673_v20 = vld [vmem:[%s5437_s23 + $0x28] sm:$0xf0] }
 0xa1b   : > { %v1945_v5 = vpop.f32.mrf.mxu1 }
 0xa1c   : > { %2239 = vrot.lane.b32.xlu1 %v1945_v5, %s4509_s4  ;;  %v3676_v5 = vor.u32 %v4014_v19, %v3673_v20  ;;  %v4031_v19 = vld [vmem:[%s5440_s16 + $0x10] sm:$0xff] }
 0xa1d   : > { %v4055_v20 = vld [vmem:[%s5440_s16 + $0xd0] sm:$0xff] }
 0xa1e   : > { %2505 = vmatpush.bf16.msra.mxu0 %v3676_v5  ;;  %v4039_v5 = vld [vmem:[%s5440_s16 + $0x50] sm:$0xff] }
 0xa23   : > { %v1947_v22 = vpop.f32.mrf.mxu1 }
 0xa46   : > { %v2002_v23 = vpop.f32.mrf.mxu3 }
 0xa47   : > { %2243 = vrot.lane.b32.xlu0 %v2002_v23, %s5432_s18  ;;  %v4023_v23 = vld [vmem:[%s5437_s23 + $0x54] sm:$0xf] }
 0xa4d   : > { %v2059_v24 = vpop.f32.mrf.mxu1 }
 0xa4e   : > { %v2004_v25 = vpop.f32.mrf.mxu3  ;;  %2247 = vrot.lane.b32.xlu2 %v2059_v24, %s5433_s11  ;;  %v3713_v24 = vld [vmem:[%s5437_s23 + $0x70] sm:$0xf0] }
 0xa4f   : > { %v3719_v25 = vld [vmem:[%s5437_s23 + $0x58] sm:$0xf] }
 0xa55   : > { %v2061_v26 = vpop.f32.mrf.mxu1 }
 0xa56   : > { %v2116_v27 = vpop.f32.mrf.mxu3 }
 0xa57   : > { %2251 = vrot.lane.b32.xlu1 %v2116_v27, %s5434_s21  ;;  %v3716_v27 = vor.u32 %v4023_v23, %v3713_v24  ;;  %v4030_v23 = vld [vmem:[%s5440_s16 + $0x8] sm:$0xff] }
 0xa58   : > { %v4054_v24 = vld [vmem:[%s5440_s16 + $0xc8] sm:$0xff] }
 0xa5e   : > { %v2118_v28 = vpop.f32.mrf.mxu3  ;;  %v2173_v29 = vpop.f32.mrf.mxu1 }
 0xa5f   : > { %2255 = vrot.lane.b32.xlu2 %v2173_v29, %s5435_s1  ;;  %v4028_v28 = vld [vmem:[%s5437_s23 + $0x74] sm:$0xf0]  ;;  %v3711_v29 = vld [vmem:[%s5437_s23 + $0x50] sm:$0xf] }
 0xa66   : > { %v2175_v30 = vpop.f32.mrf.mxu1 }
 0xa67   : > { %v4027_v30 = vld [vmem:[%s5437_s23 + $0x6c] sm:$0xf0] }
 0xa6b   : > { %v2236_v35 = vpop.permute.xlu2 %2235 }
 0xa6c   : > { %v2262_v38 = vsel %vm1123_vm1, %v5134_v52, %v2236_v35  ;;  %v4015_v35 = vld [vmem:[%s5437_s23 + $0x14] sm:$0xf] }
 0xa84   : > { %v2230_v31 = vpop.f32.mrf.mxu3 }
 0xa85   : > { %2259 = vrot.lane.b32.xlu1 %v2230_v31, %s5436_s20  ;;  %v3720_v31 = vor.u32 %v4028_v28, %v3719_v25  ;;  %v4038_v25 = vld [vmem:[%s5440_s16 + $0x48] sm:$0xff]  ;;  %v4053_v28 = vld [vmem:[%s5440_s16 + $0xc0] sm:$0xff] }
 0xa87   : > { %2543 = vmatpush.bf16.msrb.mxu3 %v3720_v31  ;;  %v4037_v31 = vld [vmem:[%s5440_s16 + $0x40] sm:$0xff] }
 0xa8c   : > { %v2232_v32 = vpop.f32.mrf.mxu3 }
 0xa8d   : > { %v3712_v32 = vor.u32 %v4027_v30, %v3711_v29  ;;  %v4068_v29 = vld [vmem:[%s5440_s16 + $0x138] sm:$0xff] }
 0xa8e   : > { %v2240_v36 = vpop.permute.xlu1 %2239  ;;  %v4092_v30 = vld [vmem:[%s5440_s16 + $0x1f8] sm:$0xff] }
 0xa8f   : > { %v2263_v40 = vsel %vm1144_vm3, %v2262_v38, %v2240_v36  ;;  %v3681_v38 = vld [vmem:[%s5437_s23 + $0x30] sm:$0xf0]  ;;  %2517 = vmatpush.bf16.msra.mxu1 %v3712_v32  ;;  %v4045_v32 = vld [vmem:[%s5440_s16 + $0x80] sm:$0xff] }
 0xaa8   : > { %v2248_v39 = vpop.permute.xlu2 %2247 }
 0xab9   : > { %v2244_v37 = vpop.permute.xlu0 %2243  ;;  %v2256_v46 = vpop.permute.xlu2 %2255 }
 0xaba   : > { %v2264_v42 = vsel %vm1614_vm4, %v2263_v40, %v2244_v37  ;;  %v3724_v37 = vor.u32 %v4024_v33, %v3721_v34  ;;  %v3684_v40 = vor.u32 %v4015_v35, %v3681_v38  ;;  %v4076_v33 = vld [vmem:[%s5440_s16 + $0x178] sm:$0xff]  ;;  %v4067_v35 = vld [vmem:[%s5440_s16 + $0x130] sm:$0xff]  ;;  %v4090_v38 = vld [vmem:[%s5440_s16 + $0x1e8] sm:$0xff] }
 0xabb   : > { %v2265_v43 = vsel %vm1616_vm5, %v2264_v42, %v2248_v39  ;;  %v3679_v39 = vld [vmem:[%s5437_s23 + $0x10] sm:$0xf]  ;;  %v3687_v42 = vld [vmem:[%s5437_s23 + $0x18] sm:$0xf] }
 0xabc   : > { %v4084_v34 = vld [vmem:[%s5440_s16 + $0x1b8] sm:$0xff] }
 0xac9   : > { %v2252_v41 = vpop.permute.xlu1 %2251 }
 0xaca   : > { %v2266_v44 = vsel %vm1618_vm6, %v2265_v43, %v2252_v41  ;;  %v4019_v41 = vld [vmem:[%s5437_s23 + $0x2c] sm:$0xf0]  ;;  %v4020_v43 = vld [vmem:[%s5437_s23 + $0x34] sm:$0xf0] }
 0xacb   : > { %v2267_v48 = vsel %vm1620_vm7, %v2266_v44, %v2256_v46  ;;  %v3680_v44 = vor.u32 %v4019_v41, %v3679_v39  ;;  %v3688_v46 = vor.u32 %v4020_v43, %v3687_v42  ;;  %v4075_v39 = vld [vmem:[%s5440_s16 + $0x170] sm:$0xff]  ;;  %v4065_v41 = vld [vmem:[%s5440_s16 + $0x120] sm:$0xff]  ;;  %v4074_v43 = vld [vmem:[%s5440_s16 + $0x168] sm:$0xff] }
 0xacc   : > { %v4089_v42 = vld [vmem:[%s5440_s16 + $0x1e0] sm:$0xff] }
 0xacd   : > { %2518 = vmatpush.bf16.msra.mxu1 %v3680_v44  ;;  %2544 = vmatpush.bf16.msrb.mxu3 %v3688_v46  ;;  %v4082_v44 = vld [vmem:[%s5440_s16 + $0x1a8] sm:$0xff]  ;;  %v4064_v46 = vld [vmem:[%s5440_s16 + $0x118] sm:$0xff] }
 0xaf7   : > { %v2260_v47 = vpop.permute.xlu1 %2259 }
 0xaf8   : > { %v2268_v49 = vsel %vm1622_vm8, %v2267_v48, %v2260_v47  ;;  %v4016_v47 = vld [vmem:[%s5437_s23 + $0x1c] sm:$0xf] }
 0xaf9   : > { %v2269_v53 = vpack.c.bf16 %v2268_v49, %v2268_v49  ;;  %v3689_v48 = vld [vmem:[%s5437_s23 + $0x38] sm:$0xf0] }
 0xafa   : > { %v3692_v49 = vor.u32 %v4016_v47, %v3689_v48  ;;  %v4088_v47 = vld [vmem:[%s5440_s16 + $0x1d8] sm:$0xff]  ;;  %v4073_v48 = vld [vmem:[%s5440_s16 + $0x160] sm:$0xff] }
 0xafb   : > { %3658 = vmatmul.msk.bf16.vlgmr.msrb.gmra.mxu0 %vm1071_vm0, %v2269_v53 }
 0xafc   : > { %2556 = vmatpush.bf16.msrb.mxu0 %v3724_v37  ;;  %v4066_v37 = vld [vmem:[%s5440_s16 + $0x128] sm:$0xff] }
 0xb00   : > { %2557 = vmatpush.bf16.msrb.mxu0 %v3692_v49  ;;  %v4081_v49 = vld [vmem:[%s5440_s16 + $0x1a0] sm:$0xff] }
 0xb78   : > { %v2302_v51 = vpop.f32.mrf.mxu0 }
 0xb79   : > { %v2303_v52 = vadd.f32 %v4214_v50, %v2302_v51 }
 0xb7b   : > { %v2306_v54 = vadd.f32 %v2303_v52, %v5026_v45  ;;  %v4021_v45 = vld [vmem:[%s5437_s23 + $0x44] sm:$0xf] }
 0xb7c   : > { %v3700_v1 = vor.u32 %v4021_v45, %v3697_v63 }
 0xb7d   : > { %v2307_v55 = vsel %vm1071_vm0, %v2306_v54, 0.0 }
 0xb7e   : > { %2308 = vadd.xlane.f32.xlu0 %v2307_v55  ;;  %2478 = vmatpush.bf16.msrb.mxu2 %v3700_v1  ;;  %v4060_v1 = vld [vmem:[%s5440_s16 + $0xf8] sm:$0xff] }
 0xb80   : > { %v2304_v56 = vpop.f32.mrf.mxu0 }
 0xb81   : > { %v4215_v56 = vld [vmem:[%s4840_s25 + $0x1] ss:$0 sm:$0xff] }
 0xb82   : > { %2479 = vmatpush.bf16.msrb.mxu2 %v3668_v14  ;;  %v4041_v14 = vld [vmem:[%s5440_s16 + $0x60] sm:$0xff] }
 0xb86   : > { %2530 = vmatpush.bf16.msra.mxu2 %v3716_v27  ;;  %v4029_v27 = vld [vmem:[%s5440_s16] sm:$0xff] }
 0xb8a   : > { %2531 = vmatpush.bf16.msra.mxu2 %v3684_v40  ;;  %v4083_v40 = vld [vmem:[%s5440_s16 + $0x1b0] sm:$0xff] }
 0xbf1   : > { %v2309_v57 = vpop.xlane.xlu0 %2308 }
 0xbf2   : > { %v2310_v59 = vmul.f32 %v2309_v57, %v5013_v21 }
 0xbf4   : > { %v5172_v60 = vsub.f32 %v2306_v54, %v2310_v59  ;;  %v4216_v59 = vld [vmem:[%s4845_s26 + $0x1] ss:$0 sm:$0xff] }
 0xbf6   : > { %v2312_v61 = vmul.f32 %v5172_v60, %v5172_v60 }
 0xbf8   : > { %v2313_v62 = vsel %vm1071_vm0, %v2312_v61, 0.0 }
 0xbf9   : > { %2314 = vadd.xlane.f32.xlu2 %v2313_v62 }
 0xc6c   : > { %v2315_v22 = vpop.xlane.xlu2 %2314 }
 0xc6d   : > { %v2316_v26 = vmul.f32 %v2315_v22, %v5013_v21  ;;  %v4047_v22 = vld [vmem:[%s5440_s16 + $0x90] sm:$0xff] }
 0xc6f   : > { %v2317_v36 = vadd.f32 1e-05, %v2316_v26  ;;  %v4046_v26 = vld [vmem:[%s5440_s16 + $0x88] sm:$0xff] }
 0xc71   : > { %4288 = vrsqrt.f32 %v2317_v36  ;;  %vm2324_vm14 = vweird.f32 %v2317_v36 }
 0xc77   : > { %v4289_v53 = vpop.eup %4288 }
 0xc78   : > { %v2319_v50 = vmul.f32 %v4289_v53, %v2317_v36  ;;  %vm2325_vm13 = vweird.f32 %v4289_v53  ;;  %v4091_v36 = vld [vmem:[%s5440_s16 + $0x1f0] sm:$0xff] }
 0xc79   : > { %vm2326_vm15 = vmor %vm2324_vm14, %vm2325_vm13 }
 0xc7a   : > { %v2320_v51 = vmul.f32 %v4289_v53, %v2319_v50  ;;  %v4087_v50 = vld [vmem:[%s5440_s16 + $0x1d0] sm:$0xff] }
 0xc7c   : > { %v2321_v52 = vmul.f32 0.5, %v2320_v51  ;;  %v4072_v51 = vld [vmem:[%s5440_s16 + $0x158] sm:$0xff] }
 0xc7e   : > { %v2322_v54 = vsub.f32 1.5, %v2321_v52  ;;  %v4080_v52 = vld [vmem:[%s5440_s16 + $0x198] sm:$0xff] }
 0xc80   : > { %v2323_v55 = vmul.f32 %v4289_v53, %v2322_v54  ;;  %v4062_v54 = vld [vmem:[%s5440_s16 + $0x108] sm:$0xff] }
 0xc82   : > { %v2327_v57 = vsel %vm2326_vm15, %v4289_v53, %v2323_v55  ;;  %v4063_v53 = vld [vmem:[%s5440_s16 + $0x110] sm:$0xff]  ;;  %v4086_v55 = vld [vmem:[%s5440_s16 + $0x1c8] sm:$0xff] }
 0xc83   : > { %v2328_v61 = vmul.f32 %v2327_v57, %v5172_v60  ;;  %v4035_v60 = vld [vmem:[%s5440_s16 + $0x30] sm:$0xff] }
 0xc84   : > { %v4079_v57 = vld [vmem:[%s5440_s16 + $0x190] sm:$0xff] }
 0xc85   : > { %v2334_v62 = vmul.f32 %v4215_v56, %v2328_v61  ;;  %v4071_v56 = vld [vmem:[%s5440_s16 + $0x150] sm:$0xff]  ;;  %v4085_v61 = vld [vmem:[%s5440_s16 + $0x1c0] sm:$0xff] }
 0xc87   : > { %v5213_v45 = vadd.f32 %v4216_v59, %v2334_v62  ;;  %v4061_v59 = vld [vmem:[%s5440_s16 + $0x100] sm:$0xff]  ;;  %v4070_v62 = vld [vmem:[%s5440_s16 + $0x148] sm:$0xff] }
 0xc89   : > { %v2341_v63 = vpack.c.bf16 %v5213_v45, %v5213_v45 }
 0xc8b   : > { %3725 = vmatmul.msk.bf16.vlgmr.msrb.gmra.mxu1 %vm1071_vm0, %v2341_v63  ;;  %3726 = vmatmul.msk.bf16.vlgmr.msrb.gmra.mxu2 %vm1071_vm0, %v2341_v63 }
 0xc8c   : > { %3727 = vmatmul.msk.bf16.vlgmr.msra.gmra.mxu3 %vm1071_vm0, %v2341_v63  ;;  %3728 = vmatmul.msk.bf16.vlgmr.msra.gmra.mxu0 %vm1071_vm0, %v2341_v63 }
 0xc8d   : > { %3095 = vmatpush.bf16.msrb.mxu1 %v4036_v0  ;;  %3134 = vmatpush.bf16.msra.mxu0 %v4060_v1  ;;  %v4069_v0 = vld [vmem:[%s5440_s16 + $0x140] sm:$0xff] }
 0xc8e   : > { %3108 = vmatpush.bf16.msrb.mxu2 %v4044_v2  ;;  %3121 = vmatpush.bf16.msra.mxu3 %v4052_v3  ;;  %v4077_v1 = vld [vmem:[%s5440_s16 + $0x180] sm:$0xff] }
 0xc8f   : > { %v2358_v2 = vld [vmem:[%s4829_s17] sm:$0xff] }
 0xc90   : > { %v2360_v3 = vperm.slane %v2358_v2, 0 }
 0xc91   : > { %3096 = vmatpush.bf16.msrb.mxu1 %v4035_v60  ;;  %3135 = vmatpush.bf16.msra.mxu0 %v4059_v4  ;;  %v2363_v60 = vperm.slane %v2358_v2, 3 }
 0xc92   : > { %3109 = vmatpush.bf16.msrb.mxu2 %v4043_v6  ;;  %3122 = vmatpush.bf16.msra.mxu3 %v4051_v8 }
 0xc95   : > { %3097 = vmatpush.bf16.msrb.mxu1 %v4034_v58  ;;  %3136 = vmatpush.bf16.msra.mxu0 %v4058_v7 }
 0xc96   : > { %3110 = vmatpush.bf16.msrb.mxu2 %v4042_v9  ;;  %3123 = vmatpush.bf16.msra.mxu3 %v4050_v10  ;;  %v2361_v9 = vperm.slane %v2358_v2, 1 }
 0xc99   : > { %3098 = vmatpush.bf16.msrb.mxu1 %v4033_v11  ;;  %3137 = vmatpush.bf16.msra.mxu0 %v4057_v12  ;;  %v2362_v11 = vperm.slane %v2358_v2, 2 }
 0xc9a   : > { %3111 = vmatpush.bf16.msrb.mxu2 %v4041_v14  ;;  %3124 = vmatpush.bf16.msra.mxu3 %v4049_v16 }
 0xc9b   : > { %3729 = vmatmul.msk.bf16.vlgmr.msra.gmra.mxu1 %vm1071_vm0, %v2341_v63  ;;  %3730 = vmatmul.msk.bf16.vlgmr.msra.gmra.mxu2 %vm1071_vm0, %v2341_v63 }
 0xc9c   : > { %3731 = vmatmul.msk.bf16.vlgmr.msrb.gmra.mxu3 %vm1071_vm0, %v2341_v63  ;;  %3732 = vmatmul.msk.bf16.vlgmr.msrb.gmra.mxu0 %vm1071_vm0, %v2341_v63  ;;  %v4078_v63 = vld [vmem:[%s5440_s16 + $0x188] sm:$0xff] }
 0xc9d   : > { %3099 = vmatpush.bf16.msrb.mxu1 %v4032_v15  ;;  %3138 = vmatpush.bf16.msra.mxu0 %v4056_v13 }
 0xc9e   : > { %3112 = vmatpush.bf16.msrb.mxu2 %v4040_v17  ;;  %3125 = vmatpush.bf16.msra.mxu3 %v4048_v18 }
 0xca1   : > { %3100 = vmatpush.bf16.msrb.mxu1 %v4031_v19  ;;  %3139 = vmatpush.bf16.msra.mxu0 %v4055_v20 }
 0xca2   : > { %3113 = vmatpush.bf16.msrb.mxu2 %v4039_v5  ;;  %3126 = vmatpush.bf16.msra.mxu3 %v4047_v22 }
 0xca5   : > { %3101 = vmatpush.bf16.msrb.mxu1 %v4030_v23  ;;  %3140 = vmatpush.bf16.msra.mxu0 %v4054_v24  ;;  %v2364_v24 = vperm.slane %v2358_v2, 4 }
 0xca6   : > { %3114 = vmatpush.bf16.msrb.mxu2 %v4038_v25  ;;  %3127 = vmatpush.bf16.msra.mxu3 %v4046_v26  ;;  %v2367_v26 = vperm.slane %v2358_v2, 7 }
 0xca9   : > { %3102 = vmatpush.bf16.msrb.mxu1 %v4029_v27  ;;  %3141 = vmatpush.bf16.msra.mxu0 %v4053_v28 }
 0xcaa   : > { %3115 = vmatpush.bf16.msrb.mxu2 %v4037_v31  ;;  %3128 = vmatpush.bf16.msra.mxu3 %v4045_v32 }
 0xcad   : > { %3147 = vmatpush.bf16.msra.mxu1 %v4068_v29  ;;  %3186 = vmatpush.bf16.msrb.mxu0 %v4092_v30 }
 0xcae   : > { %3160 = vmatpush.bf16.msra.mxu2 %v4076_v33  ;;  %3173 = vmatpush.bf16.msrb.mxu3 %v4084_v34  ;;  %v2365_v33 = vperm.slane %v2358_v2, 5 }
 0xcb1   : > { %3148 = vmatpush.bf16.msra.mxu1 %v4067_v35  ;;  %3187 = vmatpush.bf16.msrb.mxu0 %v4091_v36  ;;  %v2366_v35 = vperm.slane %v2358_v2, 6 }
 0xcb2   : > { %3161 = vmatpush.bf16.msra.mxu2 %v4075_v39  ;;  %3174 = vmatpush.bf16.msrb.mxu3 %v4083_v40 }
 0xcb5   : > { %3149 = vmatpush.bf16.msra.mxu1 %v4066_v37  ;;  %3188 = vmatpush.bf16.msrb.mxu0 %v4090_v38 }
 0xcb6   : > { %3162 = vmatpush.bf16.msra.mxu2 %v4074_v43  ;;  %3175 = vmatpush.bf16.msrb.mxu3 %v4082_v44 }
 0xcb9   : > { %3150 = vmatpush.bf16.msra.mxu1 %v4065_v41  ;;  %3189 = vmatpush.bf16.msrb.mxu0 %v4089_v42 }
 0xcba   : > { %3163 = vmatpush.bf16.msra.mxu2 %v4073_v48  ;;  %3176 = vmatpush.bf16.msrb.mxu3 %v4081_v49 }
 0xcbd   : > { %3151 = vmatpush.bf16.msra.mxu1 %v4064_v46  ;;  %3190 = vmatpush.bf16.msrb.mxu0 %v4088_v47 }
 0xcbe   : > { %3164 = vmatpush.bf16.msra.mxu2 %v4072_v51  ;;  %3177 = vmatpush.bf16.msrb.mxu3 %v4080_v52 }
 0xcc1   : > { %3152 = vmatpush.bf16.msra.mxu1 %v4063_v53  ;;  %3191 = vmatpush.bf16.msrb.mxu0 %v4087_v50 }
 0xcc2   : > { %3165 = vmatpush.bf16.msra.mxu2 %v4071_v56  ;;  %3178 = vmatpush.bf16.msrb.mxu3 %v4079_v57 }
 0xcc5   : > { %3153 = vmatpush.bf16.msra.mxu1 %v4062_v54  ;;  %3192 = vmatpush.bf16.msrb.mxu0 %v4086_v55  ;;  %v4217_v54 = vld [vmem:[%s5442_s8] ss:$0 sm:$0xff] }
 0xcc6   : > { %3166 = vmatpush.bf16.msra.mxu2 %v4070_v62  ;;  %3179 = vmatpush.bf16.msrb.mxu3 %v4078_v63 }
 0xcc9   : > { %3154 = vmatpush.bf16.msra.mxu1 %v4061_v59  ;;  %3193 = vmatpush.bf16.msrb.mxu0 %v4085_v61 }
 0xcca   : > { %3167 = vmatpush.bf16.msra.mxu2 %v4069_v0  ;;  %3180 = vmatpush.bf16.msrb.mxu3 %v4077_v1 }
 0xd08   : > { %v2468_v4 = vpop.f32.mrf.mxu1 }
 0xd09   : > { %v2469_v6 = vadd.f32 %v2468_v4, %v2360_v3  ;;  %v2507_v8 = vpop.f32.mrf.mxu0 }
 0xd0a   : > { %v2508_v58 = vadd.f32 %v2507_v8, %v2363_v60 }
 0xd0b   : > { %v2563_v7 = vmax.f32 %v2469_v6, 0.0 }
 0xd0c   : > { %v2566_v10 = vmax.f32 %v2508_v58, 0.0 }
 0xd0d   : > { %v2571_v12 = vpack.c.bf16 %v2563_v7, %v2563_v7 }
 0xd0e   : > { %v2574_v14 = vpack.c.bf16 %v2566_v10, %v2566_v10  ;;  %v2481_v16 = vpop.f32.mrf.mxu2 }
 0xd0f   : > { %v2482_v15 = vadd.f32 %v2481_v16, %v2361_v9  ;;  %v2494_v13 = vpop.f32.mrf.mxu3  ;;  %3103 = vmatmul.bf16.vlgmr.msrb.gmra.mxu1 %v2571_v12 }
 0xd10   : > { %v2495_v17 = vadd.f32 %v2494_v13, %v2362_v11  ;;  %3142 = vmatmul.bf16.vlgmr.msra.gmra.mxu0 %v2574_v14  ;;  %v2470_v18 = vpop.f32.mrf.mxu1 }
 0xd11   : > { %v2564_v19 = vmax.f32 %v2482_v15, 0.0  ;;  %v2509_v20 = vpop.f32.mrf.mxu0 }
 0xd12   : > { %v2565_v5 = vmax.f32 %v2495_v17, 0.0 }
 0xd13   : > { %v2572_v22 = vpack.c.bf16 %v2564_v19, %v2564_v19 }
 0xd14   : > { %v2573_v23 = vpack.c.bf16 %v2565_v5, %v2565_v5 }
 0xd15   : > { %3116 = vmatmul.bf16.vlgmr.msrb.gmra.mxu2 %v2572_v22 }
 0xd16   : > { %3129 = vmatmul.bf16.vlgmr.msra.gmra.mxu3 %v2573_v23  ;;  %v2483_v25 = vpop.f32.mrf.mxu2 }
 0xd17   : > { %v2496_v27 = vpop.f32.mrf.mxu3 }
 0xd18   : > { %v2520_v28 = vpop.f32.mrf.mxu1 }
 0xd19   : > { %v2521_v29 = vadd.f32 %v2520_v28, %v2364_v24  ;;  %v2559_v30 = vpop.f32.mrf.mxu0  ;;  %v4218_v28 = vld [vmem:[%s4840_s25 + $0x2] ss:$0 sm:$0xff] }
 0xd1a   : > { %v2560_v31 = vadd.f32 %v2559_v30, %v2367_v26  ;;  %v4219_v30 = vld [vmem:[%s4845_s26 + $0x2] ss:$0 sm:$0xff] }
 0xd1b   : > { %v2567_v32 = vmax.f32 %v2521_v29, 0.0 }
 0xd1c   : > { %v2570_v34 = vmax.f32 %v2560_v31, 0.0 }
 0xd1d   : > { %v2575_v36 = vpack.c.bf16 %v2567_v32, %v2567_v32 }
 0xd1e   : > { %v2578_v37 = vpack.c.bf16 %v2570_v34, %v2570_v34  ;;  %v2533_v38 = vpop.f32.mrf.mxu2 }
 0xd1f   : > { %v2534_v39 = vadd.f32 %v2533_v38, %v2365_v33  ;;  %v2546_v40 = vpop.f32.mrf.mxu3  ;;  %3155 = vmatmul.bf16.vlgmr.msra.gmra.mxu1 %v2575_v36 }
 0xd20   : > { %v2547_v41 = vadd.f32 %v2546_v40, %v2366_v35  ;;  %3194 = vmatmul.bf16.vlgmr.msrb.gmra.mxu0 %v2578_v37  ;;  %v2522_v42 = vpop.f32.mrf.mxu1 }
 0xd21   : > { %v2568_v43 = vmax.f32 %v2534_v39, 0.0  ;;  %v2561_v44 = vpop.f32.mrf.mxu0 }
 0xd22   : > { %v2569_v46 = vmax.f32 %v2547_v41, 0.0 }
 0xd23   : > { %v2576_v47 = vpack.c.bf16 %v2568_v43, %v2568_v43 }
 0xd24   : > { %v2577_v48 = vpack.c.bf16 %v2569_v46, %v2569_v46 }
 0xd25   : > { %3168 = vmatmul.bf16.vlgmr.msra.gmra.mxu2 %v2576_v47 }
 0xd26   : > { %3181 = vmatmul.bf16.vlgmr.msrb.gmra.mxu3 %v2577_v48  ;;  %v2535_v49 = vpop.f32.mrf.mxu2 }
 0xd27   : > { %v2548_v53 = vpop.f32.mrf.mxu3 }
 0xd8c   : > { %v3104_v50 = vpop.f32.mrf.mxu1 }
 0xd8d   : > { %v3143_v51 = vpop.f32.mrf.mxu0  ;;  %v3105_v57 = vadd.f32 %v4217_v54, %v3104_v50 }
 0xd94   : > { %v3106_v52 = vpop.f32.mrf.mxu1 }
 0xd95   : > { %v3145_v55 = vpop.f32.mrf.mxu0 }
 0xd98   : > { %v3117_v56 = vpop.f32.mrf.mxu2 }
 0xd99   : > { %v3130_v59 = vpop.f32.mrf.mxu3  ;;  %v3118_v61 = vadd.f32 %v3117_v56, %v3105_v57 }
 0xd9b   : > { %v3131_v0 = vadd.f32 %v3130_v59, %v3118_v61 }
 0xd9c   : > { %v3156_v62 = vpop.f32.mrf.mxu1 }
 0xd9d   : > { %v3195_v63 = vpop.f32.mrf.mxu0  ;;  %v3144_v3 = vadd.f32 %v3143_v51, %v3131_v0 }
 0xd9f   : > { %v3157_v6 = vadd.f32 %v3156_v62, %v3144_v3 }
 0xda0   : > { %v3119_v1 = vpop.f32.mrf.mxu2 }
 0xda1   : > { %v3132_v2 = vpop.f32.mrf.mxu3 }
 0xda4   : > { %v3158_v60 = vpop.f32.mrf.mxu1 }
 0xda5   : > { %v3197_v4 = vpop.f32.mrf.mxu0 }
 0xda8   : > { %v3169_v8 = vpop.f32.mrf.mxu2 }
 0xda9   : > { %v3170_v58 = vadd.f32 %v3169_v8, %v3157_v6  ;;  %v3182_v7 = vpop.f32.mrf.mxu3 }
 0xdab   : > { %v3183_v9 = vadd.f32 %v3182_v7, %v3170_v58 }
 0xdad   : > { %v3196_v10 = vadd.f32 %v3195_v63, %v3183_v9 }
 0xdaf   : > { %v3199_v11 = vadd.f32 %v3196_v10, %v5213_v45 }
 0xdb0   : > { %v3171_v12 = vpop.f32.mrf.mxu2 }
 0xdb1   : > { %v3184_v14 = vpop.f32.mrf.mxu3  ;;  %v3200_v16 = vsel %vm1071_vm0, %v3199_v11, 0.0 }
 0xdb2   : > { %3201 = vadd.xlane.f32.xlu1 %v3200_v16 }
 0xe25   : > { %v3202_v15 = vpop.xlane.xlu1 %3201 }
 0xe26   : > { %v3203_v13 = vmul.f32 %v3202_v15, %v5013_v21 }
 0xe28   : > { %v3204_v17 = vsub.f32 %v3199_v11, %v3203_v13 }
 0xe2a   : > { %v3205_v18 = vmul.f32 %v3204_v17, %v3204_v17 }
 0xe2c   : > { %v3206_v19 = vsel %vm1071_vm0, %v3205_v18, 0.0 }
 0xe2d   : > { %3207 = vadd.xlane.f32.xlu0 %v3206_v19 }
 0xea0   : > { %v3208_v20 = vpop.xlane.xlu0 %3207 }
 0xea1   : > { %v3209_v5 = vmul.f32 %v3208_v20, %v5013_v21 }
 0xea3   : > { %v3210_v22 = vadd.f32 1e-05, %v3209_v5 }
 0xea5   : > { %4290 = vrsqrt.f32 %v3210_v22  ;;  %vm3217_vm2 = vweird.f32 %v3210_v22 }
 0xeab   : > { %v4291_v45 = vpop.eup %4290 }
 0xeac   : > { %v3212_v23 = vmul.f32 %v4291_v45, %v3210_v22  ;;  %vm3218_vm1 = vweird.f32 %v4291_v45 }
 0xead   : > { %vm3219_vm3 = vmor %vm3217_vm2, %vm3218_vm1 }
 0xeae   : > { %v3213_v24 = vmul.f32 %v4291_v45, %v3212_v23 }
 0xeb0   : > { %v3214_v25 = vmul.f32 0.5, %v3213_v24 }
 0xeb2   : > { %v3215_v26 = vsub.f32 1.5, %v3214_v25 }
 0xeb4   : > { %v3216_v27 = vmul.f32 %v4291_v45, %v3215_v26 }
 0xeb6   : > { %v3220_v29 = vsel %vm3219_vm3, %v4291_v45, %v3216_v27 }
 0xeb7   : > { %v3221_v31 = vmul.f32 %v3220_v29, %v3204_v17 }
 0xeb9   : > { %v3227_v32 = vmul.f32 %v4218_v28, %v3221_v31 }
 0xebb   : > { %v3233_v33 = vadd.f32 %v4219_v30, %v3227_v32 }
 0xebd   : > { %3234 = vst.msk [vmem:[%s4835_s9] sm:$0xff] %vm1071_vm0, %v3233_v33 }
 0xebe PF: > { %s5443_s29 = sld [smem:[#allocation19_spill]] }
 0xebf   : > { %s5444_s1 = sld [smem:[#allocation15_spill]] }
 0xec0   : > { %s5445_s22 = sld [smem:[#allocation16_spill]] }
 0xec1   : > { %s5446_s23 = sld [smem:[#allocation22_spill]] }
 0xec2   : > { %s5447_s24 = sld [smem:[#allocation17_spill]] }
 0xec3   : > { %s5448_s2 = sld [smem:[#allocation18_spill]] }
 0xec4   : > { %s39_s26 = sadd.s32 1, %s5443_s29   ;;  %s5449_s25 = sld [smem:[#allocation20_spill]] }
 0xec5   : > { %p36_p3 = scmp.ge.s32.totalorder %s39_s26, 6   ;;  %s5450_s3 = sld [smem:[#allocation21_spill]] }
 0xec7   :  { %38 = sbr.rel (!%p36_p3) target bundleno = 30 (0x1e), region = 266 }
 0xecc   :  { %3254 = vsyncpa [#allocation3], 1 }
 0xecd   :  { %3256 = vsyncpa [#allocation3 + $0x1], 1 }
 0xece   :  { %3257 = vsyncpa [#allocation5], 1 }
 0xecf   :  { %3259 = vsyncpa [#allocation5 + $0x1], 1 }
 0xed0   :  { %3260 = vsyncpa [#allocation8], 1 }
 0xed1   :  { %3262 = vsyncpa [#allocation8 + $0x1], 1 }

</bundles_post_ra>
